<compile_context>
chip_gen: v7x
topology: tpu7x:2x2x1
jax: 0.10.0
libtpu: 0.0.40
codegen_flags: <defaults>
</compile_context>

<pallas_src>
import functools

import jax
import jax.numpy as jnp
from jax.experimental import pallas as pl
from jax.experimental.pallas import tpu as pltpu

_TAPS = tuple((dh, dw) for dh in range(3) for dw in range(3))


@functools.lru_cache(maxsize=1)
def _vmem_limit_bytes():
    """Per-generation scoped-VMEM limit: 3/4 of physical, capped at 96 MiB."""
    try:
        cap = int(pltpu.get_tpu_info().vmem_capacity_bytes)
    except Exception:
        cap = 64 * 1024 * 1024          # conservative fallback (v7x-sized)
    return int(max(32 * 1024 * 1024, min(96 * 1024 * 1024, (3 * cap) // 4)))


def _silu(y):
    return y * jax.nn.sigmoid(y)


def _pick_row_tile(m, target):
    """Largest row tile <= target that divides m with sublane dim a multiple of 8."""
    if m <= target:
        return m
    for t in range(target, 7, -1):
        if m % t == 0 and t % 8 == 0:
            return t
    # TODO(synk): pad M / mask a partial last tile instead of a whole-array block.
    return m


def _pick_row_block(h, target):
    """Largest EVEN spatial row block that divides h (falls back to h)."""
    best = None
    for t in range(2, min(h, target) + 1):
        if h % t == 0 and t % 2 == 0:
            best = t
    return best if best is not None else h


# ---------------------------------------------------------------------------
# 1x1 conv + BN + SiLU, row-tiled matmul over N*H*W, lane-dense (M, Cout) output.
# Used for cv1 (Cout = 2c); the chunk(2) split is taken as views in the wrapper.
# ---------------------------------------------------------------------------
def _conv1x1_bn_silu_kernel(x_ref, w_ref, s_ref, b_ref, o_ref):
    y = jnp.dot(x_ref[...], w_ref[...], preferred_element_type=jnp.float32)
    o_ref[...] = _silu(y * s_ref[...] + b_ref[...]).astype(o_ref.dtype)


def conv1x1_bn_silu(x2d, w, scale, bias, *, row_tile=512):
    M, Cin = x2d.shape
    Cout = w.shape[1]
    tm = _pick_row_tile(M, row_tile)
    cost = pl.CostEstimate(
        flops=int(2 * M * Cin * Cout),
        transcendentals=int(M * Cout),
        bytes_accessed=int(4 * (M * Cin + Cin * Cout + 2 * Cout + M * Cout)))
    return pl.pallas_call(
        _conv1x1_bn_silu_kernel,
        out_shape=jax.ShapeDtypeStruct((M, Cout), jnp.float32),
        grid=(M // tm,),
        in_specs=[
            pl.BlockSpec((tm, Cin), lambda i: (i, 0)),
            pl.BlockSpec((Cin, Cout), lambda i: (0, 0)),
            pl.BlockSpec((1, Cout), lambda i: (0, 0)),
            pl.BlockSpec((1, Cout), lambda i: (0, 0)),
        ],
        out_specs=pl.BlockSpec((tm, Cout), lambda i: (i, 0)),
        compiler_params=pltpu.CompilerParams(
            dimension_semantics=("parallel",),
            vmem_limit_bytes=_vmem_limit_bytes()),
        cost_estimate=cost,
    )(x2d, w, scale.reshape(1, Cout), bias.reshape(1, Cout))


# ---------------------------------------------------------------------------
# cv2 fused with the channel concat:
#   cv2(concat(y_0..y_{k-1})) == SiLU(BN(sum_i y_i @ W2[off_i:off_i+c_i]))
# The first "branch" is the full lane-dense (M, 2c) cv1 slab; the concat is never
# materialized in HBM.
# ---------------------------------------------------------------------------
def _cv2_concat_kernel(*refs, split_sizes):
    nb = len(split_sizes)
    y_refs = refs[:nb]
    w_ref, s_ref, b_ref, o_ref = refs[nb:]
    acc = None
    off = 0
    for yr, sz in zip(y_refs, split_sizes):
        part = jnp.dot(yr[...], w_ref[off:off + sz, :],
                       preferred_element_type=jnp.float32)
        acc = part if acc is None else acc + part
        off += sz
    y = acc * s_ref[...] + b_ref[...]
    o_ref[...] = _silu(y).astype(o_ref.dtype)


def conv1x1_concat_bn_silu(branches, w, scale, bias, *, row_tile=512):
    split_sizes = tuple(b.shape[1] for b in branches)
    M = branches[0].shape[0]
    K = sum(split_sizes)
    Cout = w.shape[1]
    assert w.shape[0] == K
    tm = _pick_row_tile(M, row_tile)
    cost = pl.CostEstimate(
        flops=int(2 * M * K * Cout),
        transcendentals=int(M * Cout),
        bytes_accessed=int(4 * (M * K + K * Cout + 2 * Cout + M * Cout)))
    in_specs = [pl.BlockSpec((tm, sz), lambda i: (i, 0)) for sz in split_sizes]
    in_specs += [
        pl.BlockSpec((K, Cout), lambda i: (0, 0)),
        pl.BlockSpec((1, Cout), lambda i: (0, 0)),
        pl.BlockSpec((1, Cout), lambda i: (0, 0)),
    ]
    return pl.pallas_call(
        functools.partial(_cv2_concat_kernel, split_sizes=split_sizes),
        out_shape=jax.ShapeDtypeStruct((M, Cout), jnp.float32),
        grid=(M // tm,),
        in_specs=in_specs,
        out_specs=pl.BlockSpec((tm, Cout), lambda i: (i, 0)),
        compiler_params=pltpu.CompilerParams(
            dimension_semantics=("parallel",),
            vmem_limit_bytes=_vmem_limit_bytes()),
        cost_estimate=cost,
    )(*branches, w, scale.reshape(1, Cout), bias.reshape(1, Cout))


# ---------------------------------------------------------------------------
# Fused Bottleneck: (3x3 conv + BN + SiLU) x 2 (+ residual) on one row tile.
# grid = (N, H/T); only 2-row halo blocks are fetched from the neighbouring tiles;
# the intermediate activation never leaves VMEM; each conv is 9 accumulated matmuls.
# ---------------------------------------------------------------------------
def _bottleneck_kernel(xtop_ref, xcur_ref, xbot_ref,
                       w1_ref, s1_ref, b1_ref,
                       w2_ref, s2_ref, b2_ref,
                       o_ref, xpad_ref, hpad_ref,
                       *, T, W, C, shortcut):
    t = pl.program_id(1)
    nt = pl.num_programs(1)
    H1 = T + 2                          # intermediate rows needed by conv2

    # ---- zero-padded input slab: xpad[i, j] = x[t*T - 2 + i, j - 1] --------
    # Zero only the border columns and the out-of-image halo rows; the interior
    # and in-image halo rows are overwritten below.
    zcol = jnp.zeros((T + 4, 1, C), jnp.float32)
    xpad_ref[:, 0:1, :] = zcol
    xpad_ref[:, W + 1:W + 2, :] = zcol
    xpad_ref[2:T + 2, 1:W + 1, :] = xcur_ref[0]

    @pl.when(t > 0)                     # top halo: last 2 rows of the tile above
    def _():
        xpad_ref[0:2, 1:W + 1, :] = xtop_ref[0]

    @pl.when(t == 0)                    # above the image: zero padding
    def _():
        xpad_ref[0:2, 1:W + 1, :] = jnp.zeros((2, W, C), jnp.float32)

    @pl.when(t < nt - 1)                # bottom halo: first 2 rows of the tile below
    def _():
        xpad_ref[T + 2:T + 4, 1:W + 1, :] = xbot_ref[0]

    @pl.when(t == nt - 1)               # below the image: zero padding
    def _():
        xpad_ref[T + 2:T + 4, 1:W + 1, :] = jnp.zeros((2, W, C), jnp.float32)

    # ---- conv1: 9 accumulated matmuls (K = C), no im2col buffer ------------
    acc = None
    for tap, (dh, dw) in enumerate(_TAPS):
        xw = xpad_ref[dh:dh + H1, dw:dw + W, :].reshape(H1 * W, C)
        p = jnp.dot(xw, w1_ref[tap * C:(tap + 1) * C, :],
                    preferred_element_type=jnp.float32)
        acc = p if acc is None else acc + p
    h = _silu(acc * s1_ref[...] + b1_ref[...])

    # ---- zero-padded intermediate: hpad[j, m] = conv1(x)[t*T - 1 + j, m - 1] ---
    zcol_h = jnp.zeros((H1, 1, C), jnp.float32)
    hpad_ref[:, 0:1, :] = zcol_h
    hpad_ref[:, W + 1:W + 2, :] = zcol_h
    hpad_ref[:, 1:W + 1, :] = h.reshape(H1, W, C)

    @pl.when(t == 0)                    # the h-row above the image is zero pad
    def _():
        hpad_ref[0:1, 1:W + 1, :] = jnp.zeros((1, W, C), jnp.float32)

    @pl.when(t == nt - 1)               # the h-row below the image is zero pad
    def _():
        hpad_ref[H1 - 1:H1, 1:W + 1, :] = jnp.zeros((1, W, C), jnp.float32)

    # ---- conv2: 9 accumulated matmuls ---------------------------------------
    acc2 = None
    for tap, (dh, dw) in enumerate(_TAPS):
        hw = hpad_ref[dh:dh + T, dw:dw + W, :].reshape(T * W, C)
        p = jnp.dot(hw, w2_ref[tap * C:(tap + 1) * C, :],
                    preferred_element_type=jnp.float32)
        acc2 = p if acc2 is None else acc2 + p
    y = _silu(acc2 * s2_ref[...] + b2_ref[...])
    if shortcut:
        y = y + xcur_ref[0].reshape(T * W, C)
    o_ref[0] = y.reshape(T, W, C).astype(o_ref.dtype)


def bottleneck_fused(x_nhwc, p_cv1, p_cv2, *, shortcut, row_block=32):
    N, H, W, C = x_nhwc.shape
    assert H % 2 == 0, "TODO(synk): odd spatial height not supported"
    T = _pick_row_block(H, row_block)   # even divisor of H (or H itself)
    nt = H // T
    assert T % 2 == 0 and T >= 2

    # Slab width padded to a multiple of 8 sublanes; interior lives at cols [1, W+1).
    Wp = ((W + 2 + 7) // 8) * 8

    w1 = p_cv1["w"].reshape(9 * C, C)   # (3,3,Cin,Cout) -> (9*Cin, Cout)
    w2 = p_cv2["w"].reshape(9 * C, C)

    th = T // 2                          # halo blocks are indexed in 2-row units
    hb_last = H // 2 - 1

    cur_sp = lambda n, t: (n, t, 0, 0)
    top_sp = lambda n, t: (n, jnp.maximum(t * th - 1, 0), 0, 0)
    bot_sp = lambda n, t: (n, jnp.minimum((t + 1) * th, hb_last), 0, 0)
    const2 = lambda n, t: (0, 0)

    cost = pl.CostEstimate(
        flops=int(2 * 2 * N * H * W * 9 * C * C),
        transcendentals=int(2 * N * (H + 2 * nt) * W * C),
        bytes_accessed=int(4 * (N * (H + 4 * nt) * W * C          # input + halos
                                + 2 * (9 * C * C + 2 * C)         # weights + BN
                                + N * H * W * C)))                # output

    return pl.pallas_call(
        functools.partial(_bottleneck_kernel, T=T, W=W, C=C, shortcut=shortcut),
        out_shape=jax.ShapeDtypeStruct((N, H, W, C), jnp.float32),
        grid=(N, nt),
        in_specs=[
            pl.BlockSpec((1, 2, W, C), top_sp),       # 2-row top halo
            pl.BlockSpec((1, T, W, C), cur_sp),       # current row tile
            pl.BlockSpec((1, 2, W, C), bot_sp),       # 2-row bottom halo
            pl.BlockSpec((9 * C, C), const2),
            pl.BlockSpec((1, C), const2),
            pl.BlockSpec((1, C), const2),
            pl.BlockSpec((9 * C, C), const2),
            pl.BlockSpec((1, C), const2),
            pl.BlockSpec((1, C), const2),
        ],
        out_specs=pl.BlockSpec((1, T, W, C), cur_sp),
        scratch_shapes=[
            pltpu.VMEM((T + 4, Wp, C), jnp.float32),      # padded input slab
            pltpu.VMEM((T + 2, Wp, C), jnp.float32),      # padded intermediate
        ],
        compiler_params=pltpu.CompilerParams(
            dimension_semantics=("parallel", "parallel"),
            vmem_limit_bytes=_vmem_limit_bytes()),
        cost_estimate=cost,
    )(x_nhwc, x_nhwc, x_nhwc,
      w1, p_cv1["scale"].reshape(1, C), p_cv1["bias"].reshape(1, C),
      w2, p_cv2["scale"].reshape(1, C), p_cv2["bias"].reshape(1, C))


# ---------------------------------------------------------------------------
# Parameter init (deterministic, synthetic).  Eval-mode BN folded:
#   scale = gamma / sqrt(running_var + eps);  bias = beta - running_mean*scale
# ---------------------------------------------------------------------------
def make_conv_bn_params(key, cin, cout, k):
    kw, kg, kb, km, kv = jax.random.split(key, 5)
    if k == 1:
        w = jax.random.normal(kw, (cin, cout), jnp.float32) / jnp.sqrt(float(cin))
    else:
        w = jax.random.normal(kw, (k, k, cin, cout), jnp.float32) / jnp.sqrt(float(cin * k * k))
    gamma = 1.0 + 0.1 * jax.random.normal(kg, (cout,), jnp.float32)
    beta = 0.1 * jax.random.normal(kb, (cout,), jnp.float32)
    mean = 0.1 * jax.random.normal(km, (cout,), jnp.float32)
    var = jnp.abs(jax.random.normal(kv, (cout,), jnp.float32)) + 1.0
    eps = 1e-5
    scale = gamma / jnp.sqrt(var + eps)
    bias = beta - mean * scale
    return {"w": w, "scale": scale, "bias": bias}


def init_c2f_params(key, c1, c2, n, e=0.5):
    c = int(c2 * e)
    keys = jax.random.split(key, 2 + 2 * n)
    params = {
        "cv1": make_conv_bn_params(keys[0], c1, 2 * c, 1),
        "cv2": make_conv_bn_params(keys[1], (2 + n) * c, c2, 1),
        "m": [
            {"cv1": make_conv_bn_params(keys[2 + 2 * i], c, c, 3),
             "cv2": make_conv_bn_params(keys[3 + 2 * i], c, c, 3)}
            for i in range(n)
        ],
    }
    return params, c


# ---------------------------------------------------------------------------
# C2f forward (mirrors the PyTorch module's forward)
# ---------------------------------------------------------------------------
def c2f_forward(x_nchw, params, c, shortcut, *, row_tile_1x1=512, row_block_3x3=32):
    x = jnp.transpose(x_nchw, (0, 2, 3, 1))             # NCHW -> NHWC
    N, H, W, C1 = x.shape
    M = N * H * W

    cv1 = params["cv1"]
    # Lane-dense (M, 2c) slab; .chunk(2, dim=C) is just a view of this slab.
    y01 = conv1x1_bn_silu(x.reshape(M, C1), cv1["w"], cv1["scale"], cv1["bias"],
                          row_tile=row_tile_1x1)
    branches = [y01]                                     # consumed whole by cv2

    cur = y01[:, c:].reshape(N, H, W, c)                 # y[-1] for the bottlenecks
    for bp in params["m"]:                               # fused Bottleneck pairs
        cur = bottleneck_fused(cur, bp["cv1"], bp["cv2"], shortcut=shortcut,
                               row_block=row_block_3x3)
        branches.append(cur.reshape(M, c))

    cv2 = params["cv2"]
    out2d = conv1x1_concat_bn_silu(branches, cv2["w"], cv2["scale"], cv2["bias"],
                                   row_tile=row_tile_1x1)
    out = out2d.reshape(N, H, W, cv2["w"].shape[1])
    return jnp.transpose(out, (0, 3, 1, 2))              # NHWC -> NCHW


# ---------------------------------------------------------------------------
# Pure-JAX reference (lax.conv) for correctness checking
# ---------------------------------------------------------------------------
def _ref_conv_bn_silu(x_nhwc, w, scale, bias):
    if w.ndim == 2:
        w4 = w.reshape(1, 1, w.shape[0], w.shape[1]); pad = [(0, 0), (0, 0)]
    else:
        w4 = w; pad = [(1, 1), (1, 1)]
    y = jax.lax.conv_general_dilated(
        x_nhwc, w4, window_strides=(1, 1), padding=pad,
        dimension_numbers=("NHWC", "HWIO", "NHWC"))
    y = y * scale + bias
    return y * jax.nn.sigmoid(y)


def c2f_reference(x_nchw, params, c, shortcut):
    x = jnp.transpose(x_nchw, (0, 2, 3, 1))
    cv1 = params["cv1"]
    y0 = _ref_conv_bn_silu(x, cv1["w"], cv1["scale"], cv1["bias"])
    ys = [y0[..., :c], y0[..., c:]]
    for bp in params["m"]:
        inp = ys[-1]
        h = _ref_conv_bn_silu(inp, bp["cv1"]["w"], bp["cv1"]["scale"], bp["cv1"]["bias"])
        o = _ref_conv_bn_silu(h, bp["cv2"]["w"], bp["cv2"]["scale"], bp["cv2"]["bias"])
        ys.append(o + inp if shortcut else o)
    cat = jnp.concatenate(ys, axis=-1)
    cv2 = params["cv2"]
    out = _ref_conv_bn_silu(cat, cv2["w"], cv2["scale"], cv2["bias"])
    return jnp.transpose(out, (0, 3, 1, 2))


if __name__ == "__main__":
    key = jax.random.PRNGKey(0)
    kx, kp = jax.random.split(key)

    # C2f(c1=8, c2=8, n=2, shortcut=True, g=1, e=0.5) -> hidden c = 4
    N, C1, H, W = 2, 8, 16, 16
    C2, n, shortcut = 8, 2, True

    x = jax.random.normal(kx, (N, C1, H, W), jnp.float32)   # NCHW, like PyTorch
    params, c = init_c2f_params(kp, C1, C2, n, e=0.5)

    # row_block_3x3=8 so the demo (H=16) exercises the 2-row halo paths (nt=2).
    fwd = jax.jit(functools.partial(c2f_forward, c=c, shortcut=shortcut,
                                    row_tile_1x1=512, row_block_3x3=8))
    out = fwd(x, params)
    jax.block_until_ready(out)

    assert out.shape == (N, C2, H, W), out.shape
    assert bool(jnp.all(jnp.isfinite(out)))

    ref = c2f_reference(x, params, c, shortcut)
    err = float(jnp.max(jnp.abs(out - ref)))
    assert err < 5e-2, f"max abs diff vs reference conv: {err}"

    print("KERNEL_OK")
</pallas_src>

<mosaic_0001>
module attributes {stable_mosaic.version = 11 : i64} {
  func.func @_conv1x1_bn_silu_kernel(%arg0: i32, %arg1: memref<512x8xf32, #tpu.memory_space<vmem>>, %arg2: memref<8x8xf32, #tpu.memory_space<vmem>>, %arg3: memref<1x8xf32, #tpu.memory_space<vmem>>, %arg4: memref<1x8xf32, #tpu.memory_space<vmem>>, %arg5: memref<512x8xf32, #tpu.memory_space<vmem>>) attributes {dimension_semantics = [#tpu.dimension_semantics<parallel>], iteration_bounds = array<i64: 1>, scalar_prefetch = 0 : i64, scratch_operands = 0 : i64, tpu.core_type = #tpu.core_type<tc>, window_params = [{transform_indices = @transform_0, window_bounds = array<i64: 512, 8>}, {pipeline_mode = #tpu.pipeline_mode<synchronous>, transform_indices = @transform_1, window_bounds = array<i64: 8, 8>}, {pipeline_mode = #tpu.pipeline_mode<synchronous>, transform_indices = @transform_2, window_bounds = array<i64: 1, 8>}, {pipeline_mode = #tpu.pipeline_mode<synchronous>, transform_indices = @transform_3, window_bounds = array<i64: 1, 8>}, {transform_indices = @transform_4, window_bounds = array<i64: 512, 8>}]} {
    %c0 = arith.constant 0 : index
    %c0_0 = arith.constant 0 : index
    %0 = vector.load %arg1[%c0, %c0_0] : memref<512x8xf32, #tpu.memory_space<vmem>>, vector<512x8xf32>
    %c0_1 = arith.constant 0 : index
    %c0_2 = arith.constant 0 : index
    %1 = vector.load %arg2[%c0_1, %c0_2] : memref<8x8xf32, #tpu.memory_space<vmem>>, vector<8x8xf32>
    %cst = arith.constant dense<0.000000e+00> : vector<512x8xf32>
    %2 = tpu.matmul %0, %1, %cst {dimension_numbers = #tpu.dot_dimension_numbers<[1], [0], [0], [1], [0, 0, 1, 1], [], []>} : vector<512x8xf32>, vector<8x8xf32>, vector<512x8xf32> -> vector<512x8xf32>
    %c0_3 = arith.constant 0 : index
    %c0_4 = arith.constant 0 : index
    %3 = vector.load %arg3[%c0_3, %c0_4] : memref<1x8xf32, #tpu.memory_space<vmem>>, vector<1x8xf32>
    %4 = vector.broadcast %3 : vector<1x8xf32> to vector<512x8xf32>
    %5 = arith.mulf %2, %4 : vector<512x8xf32>
    %c0_5 = arith.constant 0 : index
    %c0_6 = arith.constant 0 : index
    %6 = vector.load %arg4[%c0_5, %c0_6] : memref<1x8xf32, #tpu.memory_space<vmem>>, vector<1x8xf32>
    %7 = vector.broadcast %6 : vector<1x8xf32> to vector<512x8xf32>
    %8 = arith.addf %5, %7 : vector<512x8xf32>
    %9 = arith.negf %8 : vector<512x8xf32>
    %10 = math.exp %9 : vector<512x8xf32>
    %cst_7 = arith.constant 1.000000e+00 : f32
    %11 = vector.broadcast %cst_7 : f32 to vector<512x8xf32>
    %12 = arith.addf %11, %10 : vector<512x8xf32>
    %13 = arith.divf %11, %12 : vector<512x8xf32>
    %14 = arith.mulf %8, %13 : vector<512x8xf32>
    %c0_8 = arith.constant 0 : index
    %c0_9 = arith.constant 0 : index
    %15 = vector.load %arg5[%c0_8, %c0_9] : memref<512x8xf32, #tpu.memory_space<vmem>>, vector<512x8xf32>
    tpu.vector_store %arg5[%c0_8, %c0_9], %14 {strides = array<i32>} : memref<512x8xf32, #tpu.memory_space<vmem>>, vector<512x8xf32>,
    return
  }
  func.func @transform_0(%arg0: i32) -> (i32, i32) {
    %c0_i32 = arith.constant 0 : i32
    %c0_i32_0 = arith.constant 0 : i32
    return %arg0, %c0_i32 : i32, i32
  }
  func.func @transform_1(%arg0: i32) -> (i32, i32) {
    %c0_i32 = arith.constant 0 : i32
    %c0_i32_0 = arith.constant 0 : i32
    %c0_i32_1 = arith.constant 0 : i32
    return %c0_i32, %c0_i32_0 : i32, i32
  }
  func.func @transform_2(%arg0: i32) -> (i32, i32) {
    %c0_i32 = arith.constant 0 : i32
    %c0_i32_0 = arith.constant 0 : i32
    %c0_i32_1 = arith.constant 0 : i32
    return %c0_i32, %c0_i32_0 : i32, i32
  }
  func.func @transform_3(%arg0: i32) -> (i32, i32) {
    %c0_i32 = arith.constant 0 : i32
    %c0_i32_0 = arith.constant 0 : i32
    %c0_i32_1 = arith.constant 0 : i32
    return %c0_i32, %c0_i32_0 : i32, i32
  }
  func.func @transform_4(%arg0: i32) -> (i32, i32) {
    %c0_i32 = arith.constant 0 : i32
    %c0_i32_0 = arith.constant 0 : i32
    return %arg0, %c0_i32 : i32, i32
  }
}

module attributes {stable_mosaic.version = 11 : i64} {
  func.func @_bottleneck_kernel(%arg0: i32, %arg1: i32, %arg2: memref<1x2x16x4xf32, #tpu.memory_space<vmem>>, %arg3: memref<1x8x16x4xf32, #tpu.memory_space<vmem>>, %arg4: memref<1x2x16x4xf32, #tpu.memory_space<vmem>>, %arg5: memref<36x4xf32, #tpu.memory_space<vmem>>, %arg6: memref<1x4xf32, #tpu.memory_space<vmem>>, %arg7: memref<1x4xf32, #tpu.memory_space<vmem>>, %arg8: memref<36x4xf32, #tpu.memory_space<vmem>>, %arg9: memref<1x4xf32, #tpu.memory_space<vmem>>, %arg10: memref<1x4xf32, #tpu.memory_space<vmem>>, %arg11: memref<1x8x16x4xf32, #tpu.memory_space<vmem>>, %arg12: memref<12x24x4xf32, #tpu.memory_space<vmem>>, %arg13: memref<10x24x4xf32, #tpu.memory_space<vmem>>) attributes {dimension_semantics = [#tpu.dimension_semantics<parallel>, #tpu.dimension_semantics<parallel>], iteration_bounds = array<i64: 2, 2>, scalar_prefetch = 0 : i64, scratch_operands = 2 : i64, tpu.core_type = #tpu.core_type<tc>, window_params = [{transform_indices = @transform_0, window_bounds = array<i64: 1, 2, 16, 4>}, {transform_indices = @transform_1, window_bounds = array<i64: 1, 8, 16, 4>}, {transform_indices = @transform_2, window_bounds = array<i64: 1, 2, 16, 4>}, {pipeline_mode = #tpu.pipeline_mode<synchronous>, transform_indices = @transform_3, window_bounds = array<i64: 36, 4>}, {pipeline_mode = #tpu.pipeline_mode<synchronous>, transform_indices = @transform_4, window_bounds = array<i64: 1, 4>}, {pipeline_mode = #tpu.pipeline_mode<synchronous>, transform_indices = @transform_5, window_bounds = array<i64: 1, 4>}, {pipeline_mode = #tpu.pipeline_mode<synchronous>, transform_indices = @transform_6, window_bounds = array<i64: 36, 4>}, {pipeline_mode = #tpu.pipeline_mode<synchronous>, transform_indices = @transform_7, window_bounds = array<i64: 1, 4>}, {pipeline_mode = #tpu.pipeline_mode<synchronous>, transform_indices = @transform_8, window_bounds = array<i64: 1, 4>}, {transform_indices = @transform_9, window_bounds = array<i64: 1, 8, 16, 4>}]} {
    %cst = arith.constant 0.000000e+00 : f32
    %0 = vector.broadcast %cst : f32 to vector<12x1x4xf32>
    %c0 = arith.constant 0 : index
    %c0_0 = arith.constant 0 : index
    %c0_1 = arith.constant 0 : index
    %1 = vector.load %arg12[%c0, %c0_0, %c0_1] : memref<12x24x4xf32, #tpu.memory_space<vmem>>, vector<12x1x4xf32>
    tpu.vector_store %arg12[%c0, %c0_0, %c0_1], %0 {strides = array<i32>} : memref<12x24x4xf32, #tpu.memory_space<vmem>>, vector<12x1x4xf32>,
    %c0_2 = arith.constant 0 : index
    %c17 = arith.constant 17 : index
    %c0_3 = arith.constant 0 : index
    %2 = vector.load %arg12[%c0_2, %c17, %c0_3] : memref<12x24x4xf32, #tpu.memory_space<vmem>>, vector<12x1x4xf32>
    tpu.vector_store %arg12[%c0_2, %c17, %c0_3], %0 {strides = array<i32>} : memref<12x24x4xf32, #tpu.memory_space<vmem>>, vector<12x1x4xf32>,
    %c0_4 = arith.constant 0 : index
    %c0_5 = arith.constant 0 : index
    %c0_6 = arith.constant 0 : index
    %c0_7 = arith.constant 0 : index
    %3 = vector.load %arg3[%c0_4, %c0_5, %c0_6, %c0_7] : memref<1x8x16x4xf32, #tpu.memory_space<vmem>>, vector<1x8x16x4xf32>
    %4 = vector.shape_cast %3 : vector<1x8x16x4xf32> to vector<8x16x4xf32>
    %c2 = arith.constant 2 : index
    %c1 = arith.constant 1 : index
    %c0_8 = arith.constant 0 : index
    %5 = vector.load %arg12[%c2, %c1, %c0_8] : memref<12x24x4xf32, #tpu.memory_space<vmem>>, vector<8x16x4xf32>
    tpu.vector_store %arg12[%c2, %c1, %c0_8], %4 {strides = array<i32>} : memref<12x24x4xf32, #tpu.memory_space<vmem>>, vector<8x16x4xf32>,
    %c0_i32 = arith.constant 0 : i32
    %6 = arith.cmpi sgt, %arg1, %c0_i32 : i32
    %7 = arith.extui %6 : i1 to i32
    %c0_i32_9 = arith.constant 0 : i32
    %8 = arith.cmpi ne, %7, %c0_i32_9 : i32
    scf.if %8 {
      %c0_147 = arith.constant 0 : index
      %c0_148 = arith.constant 0 : index
      %c0_149 = arith.constant 0 : index
      %c0_150 = arith.constant 0 : index
      %149 = vector.load %arg2[%c0_147, %c0_148, %c0_149, %c0_150] : memref<1x2x16x4xf32, #tpu.memory_space<vmem>>, vector<1x2x16x4xf32>
      %150 = vector.shape_cast %149 : vector<1x2x16x4xf32> to vector<2x16x4xf32>
      %c0_151 = arith.constant 0 : index
      %c1_152 = arith.constant 1 : index
      %c0_153 = arith.constant 0 : index
      %151 = vector.load %arg12[%c0_151, %c1_152, %c0_153] : memref<12x24x4xf32, #tpu.memory_space<vmem>>, vector<2x16x4xf32>
      tpu.vector_store %arg12[%c0_151, %c1_152, %c0_153], %150 {strides = array<i32>} : memref<12x24x4xf32, #tpu.memory_space<vmem>>, vector<2x16x4xf32>,
    } else {
    }
    %c0_i32_10 = arith.constant 0 : i32
    %9 = arith.cmpi eq, %arg1, %c0_i32_10 : i32
    %10 = arith.extui %9 : i1 to i32
    %c0_i32_11 = arith.constant 0 : i32
    %11 = arith.cmpi ne, %10, %c0_i32_11 : i32
    scf.if %11 {
      %cst_147 = arith.constant 0.000000e+00 : f32
      %149 = vector.broadcast %cst_147 : f32 to vector<2x16x4xf32>
      %c0_148 = arith.constant 0 : index
      %c1_149 = arith.constant 1 : index
      %c0_150 = arith.constant 0 : index
      %150 = vector.load %arg12[%c0_148, %c1_149, %c0_150] : memref<12x24x4xf32, #tpu.memory_space<vmem>>, vector<2x16x4xf32>
      tpu.vector_store %arg12[%c0_148, %c1_149, %c0_150], %149 {strides = array<i32>} : memref<12x24x4xf32, #tpu.memory_space<vmem>>, vector<2x16x4xf32>,
    } else {
    }
    %c1_i32 = arith.constant 1 : i32
    %12 = arith.cmpi slt, %arg1, %c1_i32 : i32
    %13 = arith.extui %12 : i1 to i32
    %c0_i32_12 = arith.constant 0 : i32
    %14 = arith.cmpi ne, %13, %c0_i32_12 : i32
    scf.if %14 {
      %c0_147 = arith.constant 0 : index
      %c0_148 = arith.constant 0 : index
      %c0_149 = arith.constant 0 : index
      %c0_150 = arith.constant 0 : index
      %149 = vector.load %arg4[%c0_147, %c0_148, %c0_149, %c0_150] : memref<1x2x16x4xf32, #tpu.memory_space<vmem>>, vector<1x2x16x4xf32>
      %150 = vector.shape_cast %149 : vector<1x2x16x4xf32> to vector<2x16x4xf32>
      %c10 = arith.constant 10 : index
      %c1_151 = arith.constant 1 : index
      %c0_152 = arith.constant 0 : index
      %151 = vector.load %arg12[%c10, %c1_151, %c0_152] : memref<12x24x4xf32, #tpu.memory_space<vmem>>, vector<2x16x4xf32>
      tpu.vector_store %arg12[%c10, %c1_151, %c0_152], %150 {strides = array<i32>} : memref<12x24x4xf32, #tpu.memory_space<vmem>>, vector<2x16x4xf32>,
    } else {
    }
    %c1_i32_13 = arith.constant 1 : i32
    %15 = arith.cmpi eq, %arg1, %c1_i32_13 : i32
    %16 = arith.extui %15 : i1 to i32
    %c0_i32_14 = arith.constant 0 : i32
    %17 = arith.cmpi ne, %16, %c0_i32_14 : i32
    scf.if %17 {
      %cst_147 = arith.constant 0.000000e+00 : f32
      %149 = vector.broadcast %cst_147 : f32 to vector<2x16x4xf32>
      %c10 = arith.constant 10 : index
      %c1_148 = arith.constant 1 : index
      %c0_149 = arith.constant 0 : index
      %150 = vector.load %arg12[%c10, %c1_148, %c0_149] : memref<12x24x4xf32, #tpu.memory_space<vmem>>, vector<2x16x4xf32>
      tpu.vector_store %arg12[%c10, %c1_148, %c0_149], %149 {strides = array<i32>} : memref<12x24x4xf32, #tpu.memory_space<vmem>>, vector<2x16x4xf32>,
    } else {
    }
    %c0_15 = arith.constant 0 : index
    %c0_16 = arith.constant 0 : index
    %c0_17 = arith.constant 0 : index
    %18 = vector.load %arg12[%c0_15, %c0_16, %c0_17] : memref<12x24x4xf32, #tpu.memory_space<vmem>>, vector<10x16x4xf32>
    %19 = vector.shape_cast %18 : vector<10x16x4xf32> to vector<160x4xf32>
    %c0_18 = arith.constant 0 : index
    %c0_19 = arith.constant 0 : index
    %20 = vector.load %arg5[%c0_18, %c0_19] : memref<36x4xf32, #tpu.memory_space<vmem>>, vector<4x4xf32>
    %cst_20 = arith.constant dense<0.000000e+00> : vector<160x4xf32>
    %21 = tpu.matmul %19, %20, %cst_20 {dimension_numbers = #tpu.dot_dimension_numbers<[1], [0], [0], [1], [0, 0, 1, 1], [], []>} : vector<160x4xf32>, vector<4x4xf32>, vector<160x4xf32> -> vector<160x4xf32>
    %c0_21 = arith.constant 0 : index
    %c1_22 = arith.constant 1 : index
    %c0_23 = arith.constant 0 : index
    %22 = vector.load %arg12[%c0_21, %c1_22, %c0_23] : memref<12x24x4xf32, #tpu.memory_space<vmem>>, vector<10x16x4xf32>
    %23 = vector.shape_cast %22 : vector<10x16x4xf32> to vector<160x4xf32>
    %c4 = arith.constant 4 : index
    %c0_24 = arith.constant 0 : index
    %24 = vector.load %arg5[%c4, %c0_24] : memref<36x4xf32, #tpu.memory_space<vmem>>, vector<4x4xf32>
    %cst_25 = arith.constant dense<0.000000e+00> : vector<160x4xf32>
    %25 = tpu.matmul %23, %24, %cst_25 {dimension_numbers = #tpu.dot_dimension_numbers<[1], [0], [0], [1], [0, 0, 1, 1], [], []>} : vector<160x4xf32>, vector<4x4xf32>, vector<160x4xf32> -> vector<160x4xf32>
    %26 = arith.addf %21, %25 : vector<160x4xf32>
    %c0_26 = arith.constant 0 : index
    %c2_27 = arith.constant 2 : index
    %c0_28 = arith.constant 0 : index
    %27 = vector.load %arg12[%c0_26, %c2_27, %c0_28] : memref<12x24x4xf32, #tpu.memory_space<vmem>>, vector<10x16x4xf32>
    %28 = vector.shape_cast %27 : vector<10x16x4xf32> to vector<160x4xf32>
    %c8 = arith.constant 8 : index
    %c0_29 = arith.constant 0 : index
    %29 = vector.load %arg5[%c8, %c0_29] : memref<36x4xf32, #tpu.memory_space<vmem>>, vector<4x4xf32>
    %cst_30 = arith.constant dense<0.000000e+00> : vector<160x4xf32>
    %30 = tpu.matmul %28, %29, %cst_30 {dimension_numbers = #tpu.dot_dimension_numbers<[1], [0], [0], [1], [0, 0, 1, 1], [], []>} : vector<160x4xf32>, vector<4x4xf32>, vector<160x4xf32> -> vector<160x4xf32>
    %31 = arith.addf %26, %30 : vector<160x4xf32>
    %c1_31 = arith.constant 1 : index
    %c0_32 = arith.constant 0 : index
    %c0_33 = arith.constant 0 : index
    %32 = vector.load %arg12[%c1_31, %c0_32, %c0_33] : memref<12x24x4xf32, #tpu.memory_space<vmem>>, vector<10x16x4xf32>
    %33 = vector.shape_cast %32 : vector<10x16x4xf32> to vector<160x4xf32>
    %c12 = arith.constant 12 : index
    %c0_34 = arith.constant 0 : index
    %34 = vector.load %arg5[%c12, %c0_34] : memref<36x4xf32, #tpu.memory_space<vmem>>, vector<4x4xf32>
    %cst_35 = arith.constant dense<0.000000e+00> : vector<160x4xf32>
    %35 = tpu.matmul %33, %34, %cst_35 {dimension_numbers = #tpu.dot_dimension_numbers<[1], [0], [0], [1], [0, 0, 1, 1], [], []>} : vector<160x4xf32>, vector<4x4xf32>, vector<160x4xf32> -> vector<160x4xf32>
    %36 = arith.addf %31, %35 : vector<160x4xf32>
    %c1_36 = arith.constant 1 : index
    %c1_37 = arith.constant 1 : index
    %c0_38 = arith.constant 0 : index
    %37 = vector.load %arg12[%c1_36, %c1_37, %c0_38] : memref<12x24x4xf32, #tpu.memory_space<vmem>>, vector<10x16x4xf32>
    %38 = vector.shape_cast %37 : vector<10x16x4xf32> to vector<160x4xf32>
    %c16 = arith.constant 16 : index
    %c0_39 = arith.constant 0 : index
    %39 = vector.load %arg5[%c16, %c0_39] : memref<36x4xf32, #tpu.memory_space<vmem>>, vector<4x4xf32>
    %cst_40 = arith.constant dense<0.000000e+00> : vector<160x4xf32>
    %40 = tpu.matmul %38, %39, %cst_40 {dimension_numbers = #tpu.dot_dimension_numbers<[1], [0], [0], [1], [0, 0, 1, 1], [], []>} : vector<160x4xf32>, vector<4x4xf32>, vector<160x4xf32> -> vector<160x4xf32>
    %41 = arith.addf %36, %40 : vector<160x4xf32>
    %c1_41 = arith.constant 1 : index
    %c2_42 = arith.constant 2 : index
    %c0_43 = arith.constant 0 : index
    %42 = vector.load %arg12[%c1_41, %c2_42, %c0_43] : memref<12x24x4xf32, #tpu.memory_space<vmem>>, vector<10x16x4xf32>
    %43 = vector.shape_cast %42 : vector<10x16x4xf32> to vector<160x4xf32>
    %c20 = arith.constant 20 : index
    %c0_44 = arith.constant 0 : index
    %44 = vector.load %arg5[%c20, %c0_44] : memref<36x4xf32, #tpu.memory_space<vmem>>, vector<4x4xf32>
    %cst_45 = arith.constant dense<0.000000e+00> : vector<160x4xf32>
    %45 = tpu.matmul %43, %44, %cst_45 {dimension_numbers = #tpu.dot_dimension_numbers<[1], [0], [0], [1], [0, 0, 1, 1], [], []>} : vector<160x4xf32>, vector<4x4xf32>, vector<160x4xf32> -> vector<160x4xf32>
    %46 = arith.addf %41, %45 : vector<160x4xf32>
    %c2_46 = arith.constant 2 : index
    %c0_47 = arith.constant 0 : index
    %c0_48 = arith.constant 0 : index
    %47 = vector.load %arg12[%c2_46, %c0_47, %c0_48] : memref<12x24x4xf32, #tpu.memory_space<vmem>>, vector<10x16x4xf32>
    %48 = vector.shape_cast %47 : vector<10x16x4xf32> to vector<160x4xf32>
    %c24 = arith.constant 24 : index
    %c0_49 = arith.constant 0 : index
    %49 = vector.load %arg5[%c24, %c0_49] : memref<36x4xf32, #tpu.memory_space<vmem>>, vector<4x4xf32>
    %cst_50 = arith.constant dense<0.000000e+00> : vector<160x4xf32>
    %50 = tpu.matmul %48, %49, %cst_50 {dimension_numbers = #tpu.dot_dimension_numbers<[1], [0], [0], [1], [0, 0, 1, 1], [], []>} : vector<160x4xf32>, vector<4x4xf32>, vector<160x4xf32> -> vector<160x4xf32>
    %51 = arith.addf %46, %50 : vector<160x4xf32>
    %c2_51 = arith.constant 2 : index
    %c1_52 = arith.constant 1 : index
    %c0_53 = arith.constant 0 : index
    %52 = vector.load %arg12[%c2_51, %c1_52, %c0_53] : memref<12x24x4xf32, #tpu.memory_space<vmem>>, vector<10x16x4xf32>
    %53 = vector.shape_cast %52 : vector<10x16x4xf32> to vector<160x4xf32>
    %c28 = arith.constant 28 : index
    %c0_54 = arith.constant 0 : index
    %54 = vector.load %arg5[%c28, %c0_54] : memref<36x4xf32, #tpu.memory_space<vmem>>, vector<4x4xf32>
    %cst_55 = arith.constant dense<0.000000e+00> : vector<160x4xf32>
    %55 = tpu.matmul %53, %54, %cst_55 {dimension_numbers = #tpu.dot_dimension_numbers<[1], [0], [0], [1], [0, 0, 1, 1], [], []>} : vector<160x4xf32>, vector<4x4xf32>, vector<160x4xf32> -> vector<160x4xf32>
    %56 = arith.addf %51, %55 : vector<160x4xf32>
    %c2_56 = arith.constant 2 : index
    %c2_57 = arith.constant 2 : index
    %c0_58 = arith.constant 0 : index
    %57 = vector.load %arg12[%c2_56, %c2_57, %c0_58] : memref<12x24x4xf32, #tpu.memory_space<vmem>>, vector<10x16x4xf32>
    %58 = vector.shape_cast %57 : vector<10x16x4xf32> to vector<160x4xf32>
    %c32 = arith.constant 32 : index
    %c0_59 = arith.constant 0 : index
    %59 = vector.load %arg5[%c32, %c0_59] : memref<36x4xf32, #tpu.memory_space<vmem>>, vector<4x4xf32>
    %cst_60 = arith.constant dense<0.000000e+00> : vector<160x4xf32>
    %60 = tpu.matmul %58, %59, %cst_60 {dimension_numbers = #tpu.dot_dimension_numbers<[1], [0], [0], [1], [0, 0, 1, 1], [], []>} : vector<160x4xf32>, vector<4x4xf32>, vector<160x4xf32> -> vector<160x4xf32>
    %61 = arith.addf %56, %60 : vector<160x4xf32>
    %c0_61 = arith.constant 0 : index
    %c0_62 = arith.constant 0 : index
    %62 = vector.load %arg6[%c0_61, %c0_62] : memref<1x4xf32, #tpu.memory_space<vmem>>, vector<1x4xf32>
    %63 = vector.broadcast %62 : vector<1x4xf32> to vector<160x4xf32>
    %64 = arith.mulf %61, %63 : vector<160x4xf32>
    %c0_63 = arith.constant 0 : index
    %c0_64 = arith.constant 0 : index
    %65 = vector.load %arg7[%c0_63, %c0_64] : memref<1x4xf32, #tpu.memory_space<vmem>>, vector<1x4xf32>
    %66 = vector.broadcast %65 : vector<1x4xf32> to vector<160x4xf32>
    %67 = arith.addf %64, %66 : vector<160x4xf32>
    %68 = arith.negf %67 : vector<160x4xf32>
    %69 = math.exp %68 : vector<160x4xf32>
    %cst_65 = arith.constant 1.000000e+00 : f32
    %70 = vector.broadcast %cst_65 : f32 to vector<160x4xf32>
    %71 = arith.addf %70, %69 : vector<160x4xf32>
    %72 = arith.divf %70, %71 : vector<160x4xf32>
    %73 = arith.mulf %67, %72 : vector<160x4xf32>
    %cst_66 = arith.constant 0.000000e+00 : f32
    %74 = vector.broadcast %cst_66 : f32 to vector<10x1x4xf32>
    %c0_67 = arith.constant 0 : index
    %c0_68 = arith.constant 0 : index
    %c0_69 = arith.constant 0 : index
    %75 = vector.load %arg13[%c0_67, %c0_68, %c0_69] : memref<10x24x4xf32, #tpu.memory_space<vmem>>, vector<10x1x4xf32>
    tpu.vector_store %arg13[%c0_67, %c0_68, %c0_69], %74 {strides = array<i32>} : memref<10x24x4xf32, #tpu.memory_space<vmem>>, vector<10x1x4xf32>,
    %c0_70 = arith.constant 0 : index
    %c17_71 = arith.constant 17 : index
    %c0_72 = arith.constant 0 : index
    %76 = vector.load %arg13[%c0_70, %c17_71, %c0_72] : memref<10x24x4xf32, #tpu.memory_space<vmem>>, vector<10x1x4xf32>
    tpu.vector_store %arg13[%c0_70, %c17_71, %c0_72], %74 {strides = array<i32>} : memref<10x24x4xf32, #tpu.memory_space<vmem>>, vector<10x1x4xf32>,
    %77 = vector.shape_cast %73 : vector<160x4xf32> to vector<10x16x4xf32>
    %c0_73 = arith.constant 0 : index
    %c1_74 = arith.constant 1 : index
    %c0_75 = arith.constant 0 : index
    %78 = vector.load %arg13[%c0_73, %c1_74, %c0_75] : memref<10x24x4xf32, #tpu.memory_space<vmem>>, vector<10x16x4xf32>
    tpu.vector_store %arg13[%c0_73, %c1_74, %c0_75], %77 {strides = array<i32>} : memref<10x24x4xf32, #tpu.memory_space<vmem>>, vector<10x16x4xf32>,
    %c0_i32_76 = arith.constant 0 : i32
    %79 = arith.cmpi eq, %arg1, %c0_i32_76 : i32
    %80 = arith.extui %79 : i1 to i32
    %c0_i32_77 = arith.constant 0 : i32
    %81 = arith.cmpi ne, %80, %c0_i32_77 : i32
    scf.if %81 {
      %cst_147 = arith.constant 0.000000e+00 : f32
      %149 = vector.broadcast %cst_147 : f32 to vector<1x16x4xf32>
      %c0_148 = arith.constant 0 : index
      %c1_149 = arith.constant 1 : index
      %c0_150 = arith.constant 0 : index
      %150 = vector.load %arg13[%c0_148, %c1_149, %c0_150] : memref<10x24x4xf32, #tpu.memory_space<vmem>>, vector<1x16x4xf32>
      tpu.vector_store %arg13[%c0_148, %c1_149, %c0_150], %149 {strides = array<i32>} : memref<10x24x4xf32, #tpu.memory_space<vmem>>, vector<1x16x4xf32>,
    } else {
    }
    %c1_i32_78 = arith.constant 1 : i32
    %82 = arith.cmpi eq, %arg1, %c1_i32_78 : i32
    %83 = arith.extui %82 : i1 to i32
    %c0_i32_79 = arith.constant 0 : i32
    %84 = arith.cmpi ne, %83, %c0_i32_79 : i32
    scf.if %84 {
      %cst_147 = arith.constant 0.000000e+00 : f32
      %149 = vector.broadcast %cst_147 : f32 to vector<1x16x4xf32>
      %c9 = arith.constant 9 : index
      %c1_148 = arith.constant 1 : index
      %c0_149 = arith.constant 0 : index
      %150 = vector.load %arg13[%c9, %c1_148, %c0_149] : memref<10x24x4xf32, #tpu.memory_space<vmem>>, vector<1x16x4xf32>
      tpu.vector_store %arg13[%c9, %c1_148, %c0_149], %149 {strides = array<i32>} : memref<10x24x4xf32, #tpu.memory_space<vmem>>, vector<1x16x4xf32>,
    } else {
    }
    %c0_80 = arith.constant 0 : index
    %c0_81 = arith.constant 0 : index
    %c0_82 = arith.constant 0 : index
    %85 = vector.load %arg13[%c0_80, %c0_81, %c0_82] : memref<10x24x4xf32, #tpu.memory_space<vmem>>, vector<8x16x4xf32>
    %86 = vector.shape_cast %85 : vector<8x16x4xf32> to vector<128x4xf32>
    %c0_83 = arith.constant 0 : index
    %c0_84 = arith.constant 0 : index
    %87 = vector.load %arg8[%c0_83, %c0_84] : memref<36x4xf32, #tpu.memory_space<vmem>>, vector<4x4xf32>
    %cst_85 = arith.constant dense<0.000000e+00> : vector<128x4xf32>
    %88 = tpu.matmul %86, %87, %cst_85 {dimension_numbers = #tpu.dot_dimension_numbers<[1], [0], [0], [1], [0, 0, 1, 1], [], []>} : vector<128x4xf32>, vector<4x4xf32>, vector<128x4xf32> -> vector<128x4xf32>
    %c0_86 = arith.constant 0 : index
    %c1_87 = arith.constant 1 : index
    %c0_88 = arith.constant 0 : index
    %89 = vector.load %arg13[%c0_86, %c1_87, %c0_88] : memref<10x24x4xf32, #tpu.memory_space<vmem>>, vector<8x16x4xf32>
    %90 = vector.shape_cast %89 : vector<8x16x4xf32> to vector<128x4xf32>
    %c4_89 = arith.constant 4 : index
    %c0_90 = arith.constant 0 : index
    %91 = vector.load %arg8[%c4_89, %c0_90] : memref<36x4xf32, #tpu.memory_space<vmem>>, vector<4x4xf32>
    %cst_91 = arith.constant dense<0.000000e+00> : vector<128x4xf32>
    %92 = tpu.matmul %90, %91, %cst_91 {dimension_numbers = #tpu.dot_dimension_numbers<[1], [0], [0], [1], [0, 0, 1, 1], [], []>} : vector<128x4xf32>, vector<4x4xf32>, vector<128x4xf32> -> vector<128x4xf32>
    %93 = arith.addf %88, %92 : vector<128x4xf32>
    %c0_92 = arith.constant 0 : index
    %c2_93 = arith.constant 2 : index
    %c0_94 = arith.constant 0 : index
    %94 = vector.load %arg13[%c0_92, %c2_93, %c0_94] : memref<10x24x4xf32, #tpu.memory_space<vmem>>, vector<8x16x4xf32>
    %95 = vector.shape_cast %94 : vector<8x16x4xf32> to vector<128x4xf32>
    %c8_95 = arith.constant 8 : index
    %c0_96 = arith.constant 0 : index
    %96 = vector.load %arg8[%c8_95, %c0_96] : memref<36x4xf32, #tpu.memory_space<vmem>>, vector<4x4xf32>
    %cst_97 = arith.constant dense<0.000000e+00> : vector<128x4xf32>
    %97 = tpu.matmul %95, %96, %cst_97 {dimension_numbers = #tpu.dot_dimension_numbers<[1], [0], [0], [1], [0, 0, 1, 1], [], []>} : vector<128x4xf32>, vector<4x4xf32>, vector<128x4xf32> -> vector<128x4xf32>
    %98 = arith.addf %93, %97 : vector<128x4xf32>
    %c1_98 = arith.constant 1 : index
    %c0_99 = arith.constant 0 : index
    %c0_100 = arith.constant 0 : index
    %99 = vector.load %arg13[%c1_98, %c0_99, %c0_100] : memref<10x24x4xf32, #tpu.memory_space<vmem>>, vector<8x16x4xf32>
    %100 = vector.shape_cast %99 : vector<8x16x4xf32> to vector<128x4xf32>
    %c12_101 = arith.constant 12 : index
    %c0_102 = arith.constant 0 : index
    %101 = vector.load %arg8[%c12_101, %c0_102] : memref<36x4xf32, #tpu.memory_space<vmem>>, vector<4x4xf32>
    %cst_103 = arith.constant dense<0.000000e+00> : vector<128x4xf32>
    %102 = tpu.matmul %100, %101, %cst_103 {dimension_numbers = #tpu.dot_dimension_numbers<[1], [0], [0], [1], [0, 0, 1, 1], [], []>} : vector<128x4xf32>, vector<4x4xf32>, vector<128x4xf32> -> vector<128x4xf32>
    %103 = arith.addf %98, %102 : vector<128x4xf32>
    %c1_104 = arith.constant 1 : index
    %c1_105 = arith.constant 1 : index
    %c0_106 = arith.constant 0 : index
    %104 = vector.load %arg13[%c1_104, %c1_105, %c0_106] : memref<10x24x4xf32, #tpu.memory_space<vmem>>, vector<8x16x4xf32>
    %105 = vector.shape_cast %104 : vector<8x16x4xf32> to vector<128x4xf32>
    %c16_107 = arith.constant 16 : index
    %c0_108 = arith.constant 0 : index
    %106 = vector.load %arg8[%c16_107, %c0_108] : memref<36x4xf32, #tpu.memory_space<vmem>>, vector<4x4xf32>
    %cst_109 = arith.constant dense<0.000000e+00> : vector<128x4xf32>
    %107 = tpu.matmul %105, %106, %cst_109 {dimension_numbers = #tpu.dot_dimension_numbers<[1], [0], [0], [1], [0, 0, 1, 1], [], []>} : vector<128x4xf32>, vector<4x4xf32>, vector<128x4xf32> -> vector<128x4xf32>
    %108 = arith.addf %103, %107 : vector<128x4xf32>
    %c1_110 = arith.constant 1 : index
    %c2_111 = arith.constant 2 : index
    %c0_112 = arith.constant 0 : index
    %109 = vector.load %arg13[%c1_110, %c2_111, %c0_112] : memref<10x24x4xf32, #tpu.memory_space<vmem>>, vector<8x16x4xf32>
    %110 = vector.shape_cast %109 : vector<8x16x4xf32> to vector<128x4xf32>
    %c20_113 = arith.constant 20 : index
    %c0_114 = arith.constant 0 : index
    %111 = vector.load %arg8[%c20_113, %c0_114] : memref<36x4xf32, #tpu.memory_space<vmem>>, vector<4x4xf32>
    %cst_115 = arith.constant dense<0.000000e+00> : vector<128x4xf32>
    %112 = tpu.matmul %110, %111, %cst_115 {dimension_numbers = #tpu.dot_dimension_numbers<[1], [0], [0], [1], [0, 0, 1, 1], [], []>} : vector<128x4xf32>, vector<4x4xf32>, vector<128x4xf32> -> vector<128x4xf32>
    %113 = arith.addf %108, %112 : vector<128x4xf32>
    %c2_116 = arith.constant 2 : index
    %c0_117 = arith.constant 0 : index
    %c0_118 = arith.constant 0 : index
    %114 = vector.load %arg13[%c2_116, %c0_117, %c0_118] : memref<10x24x4xf32, #tpu.memory_space<vmem>>, vector<8x16x4xf32>
    %115 = vector.shape_cast %114 : vector<8x16x4xf32> to vector<128x4xf32>
    %c24_119 = arith.constant 24 : index
    %c0_120 = arith.constant 0 : index
    %116 = vector.load %arg8[%c24_119, %c0_120] : memref<36x4xf32, #tpu.memory_space<vmem>>, vector<4x4xf32>
    %cst_121 = arith.constant dense<0.000000e+00> : vector<128x4xf32>
    %117 = tpu.matmul %115, %116, %cst_121 {dimension_numbers = #tpu.dot_dimension_numbers<[1], [0], [0], [1], [0, 0, 1, 1], [], []>} : vector<128x4xf32>, vector<4x4xf32>, vector<128x4xf32> -> vector<128x4xf32>
    %118 = arith.addf %113, %117 : vector<128x4xf32>
    %c2_122 = arith.constant 2 : index
    %c1_123 = arith.constant 1 : index
    %c0_124 = arith.constant 0 : index
    %119 = vector.load %arg13[%c2_122, %c1_123, %c0_124] : memref<10x24x4xf32, #tpu.memory_space<vmem>>, vector<8x16x4xf32>
    %120 = vector.shape_cast %119 : vector<8x16x4xf32> to vector<128x4xf32>
    %c28_125 = arith.constant 28 : index
    %c0_126 = arith.constant 0 : index
    %121 = vector.load %arg8[%c28_125, %c0_126] : memref<36x4xf32, #tpu.memory_space<vmem>>, vector<4x4xf32>
    %cst_127 = arith.constant dense<0.000000e+00> : vector<128x4xf32>
    %122 = tpu.matmul %120, %121, %cst_127 {dimension_numbers = #tpu.dot_dimension_numbers<[1], [0], [0], [1], [0, 0, 1, 1], [], []>} : vector<128x4xf32>, vector<4x4xf32>, vector<128x4xf32> -> vector<128x4xf32>
    %123 = arith.addf %118, %122 : vector<128x4xf32>
    %c2_128 = arith.constant 2 : index
    %c2_129 = arith.constant 2 : index
    %c0_130 = arith.constant 0 : index
    %124 = vector.load %arg13[%c2_128, %c2_129, %c0_130] : memref<10x24x4xf32, #tpu.memory_space<vmem>>, vector<8x16x4xf32>
    %125 = vector.shape_cast %124 : vector<8x16x4xf32> to vector<128x4xf32>
    %c32_131 = arith.constant 32 : index
    %c0_132 = arith.constant 0 : index
    %126 = vector.load %arg8[%c32_131, %c0_132] : memref<36x4xf32, #tpu.memory_space<vmem>>, vector<4x4xf32>
    %cst_133 = arith.constant dense<0.000000e+00> : vector<128x4xf32>
    %127 = tpu.matmul %125, %126, %cst_133 {dimension_numbers = #tpu.dot_dimension_numbers<[1], [0], [0], [1], [0, 0, 1, 1], [], []>} : vector<128x4xf32>, vector<4x4xf32>, vector<128x4xf32> -> vector<128x4xf32>
    %128 = arith.addf %123, %127 : vector<128x4xf32>
    %c0_134 = arith.constant 0 : index
    %c0_135 = arith.constant 0 : index
    %129 = vector.load %arg9[%c0_134, %c0_135] : memref<1x4xf32, #tpu.memory_space<vmem>>, vector<1x4xf32>
    %130 = vector.broadcast %129 : vector<1x4xf32> to vector<128x4xf32>
    %131 = arith.mulf %128, %130 : vector<128x4xf32>
    %c0_136 = arith.constant 0 : index
    %c0_137 = arith.constant 0 : index
    %132 = vector.load %arg10[%c0_136, %c0_137] : memref<1x4xf32, #tpu.memory_space<vmem>>, vector<1x4xf32>
    %133 = vector.broadcast %132 : vector<1x4xf32> to vector<128x4xf32>
    %134 = arith.addf %131, %133 : vector<128x4xf32>
    %135 = arith.negf %134 : vector<128x4xf32>
    %136 = math.exp %135 : vector<128x4xf32>
    %cst_138 = arith.constant 1.000000e+00 : f32
    %137 = vector.broadcast %cst_138 : f32 to vector<128x4xf32>
    %138 = arith.addf %137, %136 : vector<128x4xf32>
    %139 = arith.divf %137, %138 : vector<128x4xf32>
    %140 = arith.mulf %134, %139 : vector<128x4xf32>
    %c0_139 = arith.constant 0 : index
    %c0_140 = arith.constant 0 : index
    %c0_141 = arith.constant 0 : index
    %c0_142 = arith.constant 0 : index
    %141 = vector.load %arg3[%c0_139, %c0_140, %c0_141, %c0_142] : memref<1x8x16x4xf32, #tpu.memory_space<vmem>>, vector<1x8x16x4xf32>
    %142 = vector.shape_cast %141 : vector<1x8x16x4xf32> to vector<8x16x4xf32>
    %143 = vector.shape_cast %142 : vector<8x16x4xf32> to vector<128x4xf32>
    %144 = arith.addf %140, %143 : vector<128x4xf32>
    %145 = vector.shape_cast %144 : vector<128x4xf32> to vector<8x16x4xf32>
    %c0_143 = arith.constant 0 : index
    %c0_144 = arith.constant 0 : index
    %c0_145 = arith.constant 0 : index
    %c0_146 = arith.constant 0 : index
    %146 = vector.load %arg11[%c0_143, %c0_144, %c0_145, %c0_146] : memref<1x8x16x4xf32, #tpu.memory_space<vmem>>, vector<1x8x16x4xf32>
    %147 = vector.shape_cast %146 : vector<1x8x16x4xf32> to vector<8x16x4xf32>
    %148 = vector.shape_cast %145 : vector<8x16x4xf32> to vector<1x8x16x4xf32>
    tpu.vector_store %arg11[%c0_143, %c0_144, %c0_145, %c0_146], %148 {strides = array<i32>} : memref<1x8x16x4xf32, #tpu.memory_space<vmem>>, vector<1x8x16x4xf32>,
    return
  }
  func.func @transform_0(%arg0: i32, %arg1: i32) -> (i32, i32, i32, i32) {
    %c4_i32 = arith.constant 4 : i32
    %0 = arith.muli %arg1, %c4_i32 : i32
    %c1_i32 = arith.constant 1 : i32
    %1 = arith.subi %0, %c1_i32 : i32
    %c0_i32 = arith.constant 0 : i32
    %2 = arith.maxsi %1, %c0_i32 : i32
    %c0_i32_0 = arith.constant 0 : i32
    %c0_i32_1 = arith.constant 0 : i32
    %c0_i32_2 = arith.constant 0 : i32
    return %arg0, %2, %c0_i32_0, %c0_i32_1 : i32, i32, i32, i32
  }
  func.func @transform_1(%arg0: i32, %arg1: i32) -> (i32, i32, i32, i32) {
    %c0_i32 = arith.constant 0 : i32
    %c0_i32_0 = arith.constant 0 : i32
    %c0_i32_1 = arith.constant 0 : i32
    return %arg0, %arg1, %c0_i32, %c0_i32_0 : i32, i32, i32, i32
  }
  func.func @transform_2(%arg0: i32, %arg1: i32) -> (i32, i32, i32, i32) {
    %c1_i32 = arith.constant 1 : i32
    %0 = arith.addi %arg1, %c1_i32 : i32
    %c4_i32 = arith.constant 4 : i32
    %1 = arith.muli %0, %c4_i32 : i32
    %c7_i32 = arith.constant 7 : i32
    %2 = arith.minsi %1, %c7_i32 : i32
    %c0_i32 = arith.constant 0 : i32
    %c0_i32_0 = arith.constant 0 : i32
    %c0_i32_1 = arith.constant 0 : i32
    return %arg0, %2, %c0_i32, %c0_i32_0 : i32, i32, i32, i32
  }
  func.func @transform_3(%arg0: i32, %arg1: i32) -> (i32, i32) {
    %c0_i32 = arith.constant 0 : i32
    %c0_i32_0 = arith.constant 0 : i32
    %c0_i32_1 = arith.constant 0 : i32
    return %c0_i32, %c0_i32_0 : i32, i32
  }
  func.func @transform_4(%arg0: i32, %arg1: i32) -> (i32, i32) {
    %c0_i32 = arith.constant 0 : i32
    %c0_i32_0 = arith.constant 0 : i32
    %c0_i32_1 = arith.constant 0 : i32
    return %c0_i32, %c0_i32_0 : i32, i32
  }
  func.func @transform_5(%arg0: i32, %arg1: i32) -> (i32, i32) {
    %c0_i32 = arith.constant 0 : i32
    %c0_i32_0 = arith.constant 0 : i32
    %c0_i32_1 = arith.constant 0 : i32
    return %c0_i32, %c0_i32_0 : i32, i32
  }
  func.func @transform_6(%arg0: i32, %arg1: i32) -> (i32, i32) {
    %c0_i32 = arith.constant 0 : i32
    %c0_i32_0 = arith.constant 0 : i32
    %c0_i32_1 = arith.constant 0 : i32
    return %c0_i32, %c0_i32_0 : i32, i32
  }
  func.func @transform_7(%arg0: i32, %arg1: i32) -> (i32, i32) {
    %c0_i32 = arith.constant 0 : i32
    %c0_i32_0 = arith.constant 0 : i32
    %c0_i32_1 = arith.constant 0 : i32
    return %c0_i32, %c0_i32_0 : i32, i32
  }
  func.func @transform_8(%arg0: i32, %arg1: i32) -> (i32, i32) {
    %c0_i32 = arith.constant 0 : i32
    %c0_i32_0 = arith.constant 0 : i32
    %c0_i32_1 = arith.constant 0 : i32
    return %c0_i32, %c0_i32_0 : i32, i32
  }
  func.func @transform_9(%arg0: i32, %arg1: i32) -> (i32, i32, i32, i32) {
    %c0_i32 = arith.constant 0 : i32
    %c0_i32_0 = arith.constant 0 : i32
    %c0_i32_1 = arith.constant 0 : i32
    return %arg0, %arg1, %c0_i32, %c0_i32_0 : i32, i32, i32, i32
  }
}

module attributes {stable_mosaic.version = 11 : i64} {
  func.func @_cv2_concat_kernel(%arg0: i32, %arg1: memref<512x8xf32, #tpu.memory_space<vmem>>, %arg2: memref<512x4xf32, #tpu.memory_space<vmem>>, %arg3: memref<512x4xf32, #tpu.memory_space<vmem>>, %arg4: memref<16x8xf32, #tpu.memory_space<vmem>>, %arg5: memref<1x8xf32, #tpu.memory_space<vmem>>, %arg6: memref<1x8xf32, #tpu.memory_space<vmem>>, %arg7: memref<512x8xf32, #tpu.memory_space<vmem>>) attributes {dimension_semantics = [#tpu.dimension_semantics<parallel>], iteration_bounds = array<i64: 1>, scalar_prefetch = 0 : i64, scratch_operands = 0 : i64, tpu.core_type = #tpu.core_type<tc>, window_params = [{transform_indices = @transform_0, window_bounds = array<i64: 512, 8>}, {transform_indices = @transform_1, window_bounds = array<i64: 512, 4>}, {transform_indices = @transform_2, window_bounds = array<i64: 512, 4>}, {pipeline_mode = #tpu.pipeline_mode<synchronous>, transform_indices = @transform_3, window_bounds = array<i64: 16, 8>}, {pipeline_mode = #tpu.pipeline_mode<synchronous>, transform_indices = @transform_4, window_bounds = array<i64: 1, 8>}, {pipeline_mode = #tpu.pipeline_mode<synchronous>, transform_indices = @transform_5, window_bounds = array<i64: 1, 8>}, {transform_indices = @transform_6, window_bounds = array<i64: 512, 8>}]} {
    %c0 = arith.constant 0 : index
    %c0_0 = arith.constant 0 : index
    %0 = vector.load %arg1[%c0, %c0_0] : memref<512x8xf32, #tpu.memory_space<vmem>>, vector<512x8xf32>
    %c0_1 = arith.constant 0 : index
    %c0_2 = arith.constant 0 : index
    %1 = vector.load %arg4[%c0_1, %c0_2] : memref<16x8xf32, #tpu.memory_space<vmem>>, vector<8x8xf32>
    %cst = arith.constant dense<0.000000e+00> : vector<512x8xf32>
    %2 = tpu.matmul %0, %1, %cst {dimension_numbers = #tpu.dot_dimension_numbers<[1], [0], [0], [1], [0, 0, 1, 1], [], []>} : vector<512x8xf32>, vector<8x8xf32>, vector<512x8xf32> -> vector<512x8xf32>
    %c0_3 = arith.constant 0 : index
    %c0_4 = arith.constant 0 : index
    %3 = vector.load %arg2[%c0_3, %c0_4] : memref<512x4xf32, #tpu.memory_space<vmem>>, vector<512x4xf32>
    %c8 = arith.constant 8 : index
    %c0_5 = arith.constant 0 : index
    %4 = vector.load %arg4[%c8, %c0_5] : memref<16x8xf32, #tpu.memory_space<vmem>>, vector<4x8xf32>
    %cst_6 = arith.constant dense<0.000000e+00> : vector<512x8xf32>
    %5 = tpu.matmul %3, %4, %cst_6 {dimension_numbers = #tpu.dot_dimension_numbers<[1], [0], [0], [1], [0, 0, 1, 1], [], []>} : vector<512x4xf32>, vector<4x8xf32>, vector<512x8xf32> -> vector<512x8xf32>
    %6 = arith.addf %2, %5 : vector<512x8xf32>
    %c0_7 = arith.constant 0 : index
    %c0_8 = arith.constant 0 : index
    %7 = vector.load %arg3[%c0_7, %c0_8] : memref<512x4xf32, #tpu.memory_space<vmem>>, vector<512x4xf32>
    %c12 = arith.constant 12 : index
    %c0_9 = arith.constant 0 : index
    %8 = vector.load %arg4[%c12, %c0_9] : memref<16x8xf32, #tpu.memory_space<vmem>>, vector<4x8xf32>
    %cst_10 = arith.constant dense<0.000000e+00> : vector<512x8xf32>
    %9 = tpu.matmul %7, %8, %cst_10 {dimension_numbers = #tpu.dot_dimension_numbers<[1], [0], [0], [1], [0, 0, 1, 1], [], []>} : vector<512x4xf32>, vector<4x8xf32>, vector<512x8xf32> -> vector<512x8xf32>
    %10 = arith.addf %6, %9 : vector<512x8xf32>
    %c0_11 = arith.constant 0 : index
    %c0_12 = arith.constant 0 : index
    %11 = vector.load %arg5[%c0_11, %c0_12] : memref<1x8xf32, #tpu.memory_space<vmem>>, vector<1x8xf32>
    %12 = vector.broadcast %11 : vector<1x8xf32> to vector<512x8xf32>
    %13 = arith.mulf %10, %12 : vector<512x8xf32>
    %c0_13 = arith.constant 0 : index
    %c0_14 = arith.constant 0 : index
    %14 = vector.load %arg6[%c0_13, %c0_14] : memref<1x8xf32, #tpu.memory_space<vmem>>, vector<1x8xf32>
    %15 = vector.broadcast %14 : vector<1x8xf32> to vector<512x8xf32>
    %16 = arith.addf %13, %15 : vector<512x8xf32>
    %17 = arith.negf %16 : vector<512x8xf32>
    %18 = math.exp %17 : vector<512x8xf32>
    %cst_15 = arith.constant 1.000000e+00 : f32
    %19 = vector.broadcast %cst_15 : f32 to vector<512x8xf32>
    %20 = arith.addf %19, %18 : vector<512x8xf32>
    %21 = arith.divf %19, %20 : vector<512x8xf32>
    %22 = arith.mulf %16, %21 : vector<512x8xf32>
    %c0_16 = arith.constant 0 : index
    %c0_17 = arith.constant 0 : index
    %23 = vector.load %arg7[%c0_16, %c0_17] : memref<512x8xf32, #tpu.memory_space<vmem>>, vector<512x8xf32>
    tpu.vector_store %arg7[%c0_16, %c0_17], %22 {strides = array<i32>} : memref<512x8xf32, #tpu.memory_space<vmem>>, vector<512x8xf32>,
    return
  }
  func.func @transform_0(%arg0: i32) -> (i32, i32) {
    %c0_i32 = arith.constant 0 : i32
    %c0_i32_0 = arith.constant 0 : i32
    return %arg0, %c0_i32 : i32, i32
  }
  func.func @transform_1(%arg0: i32) -> (i32, i32) {
    %c0_i32 = arith.constant 0 : i32
    %c0_i32_0 = arith.constant 0 : i32
    return %arg0, %c0_i32 : i32, i32
  }
  func.func @transform_2(%arg0: i32) -> (i32, i32) {
    %c0_i32 = arith.constant 0 : i32
    %c0_i32_0 = arith.constant 0 : i32
    return %arg0, %c0_i32 : i32, i32
  }
  func.func @transform_3(%arg0: i32) -> (i32, i32) {
    %c0_i32 = arith.constant 0 : i32
    %c0_i32_0 = arith.constant 0 : i32
    %c0_i32_1 = arith.constant 0 : i32
    return %c0_i32, %c0_i32_0 : i32, i32
  }
  func.func @transform_4(%arg0: i32) -> (i32, i32) {
    %c0_i32 = arith.constant 0 : i32
    %c0_i32_0 = arith.constant 0 : i32
    %c0_i32_1 = arith.constant 0 : i32
    return %c0_i32, %c0_i32_0 : i32, i32
  }
  func.func @transform_5(%arg0: i32) -> (i32, i32) {
    %c0_i32 = arith.constant 0 : i32
    %c0_i32_0 = arith.constant 0 : i32
    %c0_i32_1 = arith.constant 0 : i32
    return %c0_i32, %c0_i32_0 : i32, i32
  }
  func.func @transform_6(%arg0: i32) -> (i32, i32) {
    %c0_i32 = arith.constant 0 : i32
    %c0_i32_0 = arith.constant 0 : i32
    return %arg0, %c0_i32 : i32, i32
  }
}

</mosaic_0001>

<bundles_post_ra>
// kernel: c2f_forward.4
= control target key start
LH: loop header
LB: loop body
LE: loop exit
PB: predicated region body
PF: predicated region fallthrough
CT: control target
= control target key end

     0   :  { %vm82_vm0 = vcmask 64512   ;;  %s2921_s1 = inlined_call_operand.vmem [shape: f32[8,8], index: 1, kind: input, shape index: {}]   ;;  %s2922_s0 = inlined_call_operand.vmem [shape: f32[512,8], index: 0, kind: input, shape index: {}]   ;;  %s2923_s2 = inlined_call_operand.vmem [shape: f32[1,8], index: 2, kind: input, shape index: {}]   ;;  %s2924_s3 = inlined_call_operand.vmem [shape: f32[1,8], index: 3, kind: input, shape index: {}]   ;;  %s2925_s4 = inlined_call_operand.vmem [shape: f32[512,8], index: 4, kind: output, shape index: {}]  }
   0x1   :  { %v81_v0 = vld [vmem:[%s2921_s1] sm:$0xff]  ;;  %v18_v3 = vld [vmem:[%s2922_s0 + $0x8] sm:$0xff]  ;;  %v19_v5 = vld [vmem:[%s2922_s0 + $0x10] sm:$0xff] }
   0x2   :  { %v17_v1 = vld [vmem:[%s2922_s0] sm:$0xff]  ;;  %1513 = vmatprep.subr.mxu0 %v81_v0  ;;  %1611 = vmatprep.subr.mxu1 %v81_v0  ;;  %v50_v4 = vld [vmem:[%s2922_s0 + $0x108] sm:$0xff]  ;;  %v51_v6 = vld [vmem:[%s2922_s0 + $0x110] sm:$0xff] }
   0x3   :  { %v49_v2 = vld [vmem:[%s2922_s0 + $0x100] sm:$0xff]  ;;  %1514 = vmatpush3.msra.mxu0 %v81_v0  ;;  %1612 = vmatpush3.msra.mxu1 %v81_v0  ;;  %v20_v7 = vld [vmem:[%s2922_s0 + $0x18] sm:$0xff]  ;;  %v22_v11 = vld [vmem:[%s2922_s0 + $0x28] sm:$0xff] }
   0x4   :  { %1515 = vmatprep.mubr.msk.f32.mxu0 %vm82_vm0, %v17_v1  ;;  %1563 = vmatprep.mubr.msk.f32.mxu1 %vm82_vm0, %v49_v2  ;;  %v52_v8 = vld [vmem:[%s2922_s0 + $0x118] sm:$0xff]  ;;  %v21_v9 = vld [vmem:[%s2922_s0 + $0x20] sm:$0xff]  ;;  %v54_v12 = vld [vmem:[%s2922_s0 + $0x128] sm:$0xff] }
   0x5   :  { %1516 = vmatmul.mubr.msk.f32.vlgmr.msra.gmra.mrb[0].mxu0 %vm82_vm0, %v18_v3  ;;  %1564 = vmatmul.mubr.msk.f32.vlgmr.msra.gmra.mrb[0].mxu1 %vm82_vm0, %v50_v4  ;;  %v53_v10 = vld [vmem:[%s2922_s0 + $0x120] sm:$0xff]  ;;  %v23_v13 = vld [vmem:[%s2922_s0 + $0x30] sm:$0xff]  ;;  %v24_v15 = vld [vmem:[%s2922_s0 + $0x38] sm:$0xff] }
   0x6   :  { %1518 = vmatprep.mubr.msk.f32.mxu0 %vm82_vm0, %v19_v5  ;;  %1566 = vmatprep.mubr.msk.f32.mxu1 %vm82_vm0, %v51_v6  ;;  %v55_v14 = vld [vmem:[%s2922_s0 + $0x130] sm:$0xff]  ;;  %v56_v16 = vld [vmem:[%s2922_s0 + $0x138] sm:$0xff]  ;;  %v25_v17 = vld [vmem:[%s2922_s0 + $0x40] sm:$0xff] }
   0x7   :  { %v57_v18 = vld [vmem:[%s2922_s0 + $0x140] sm:$0xff]  ;;  %v26_v19 = vld [vmem:[%s2922_s0 + $0x48] sm:$0xff]  ;;  %v27_v21 = vld [vmem:[%s2922_s0 + $0x50] sm:$0xff] }
   0x8   :  { %v58_v20 = vld [vmem:[%s2922_s0 + $0x148] sm:$0xff]  ;;  %v59_v22 = vld [vmem:[%s2922_s0 + $0x150] sm:$0xff]  ;;  %v28_v23 = vld [vmem:[%s2922_s0 + $0x58] sm:$0xff] }
   0x9   :  { %1519 = vmatmul.mubr.msk.f32.gmra.mrb[2].mxu0 %vm82_vm0, %v20_v7  ;;  %1567 = vmatmul.mubr.msk.f32.gmra.mrb[2].mxu1 %vm82_vm0, %v52_v8  ;;  %v60_v24 = vld [vmem:[%s2922_s0 + $0x158] sm:$0xff]  ;;  %v29_v25 = vld [vmem:[%s2922_s0 + $0x60] sm:$0xff]  ;;  %v30_v27 = vld [vmem:[%s2922_s0 + $0x68] sm:$0xff] }
   0xa   :  { %1521 = vmatprep.mubr.msk.f32.mxu0 %vm82_vm0, %v21_v9  ;;  %1569 = vmatprep.mubr.msk.f32.mxu1 %vm82_vm0, %v53_v10  ;;  %v61_v26 = vld [vmem:[%s2922_s0 + $0x160] sm:$0xff]  ;;  %v62_v28 = vld [vmem:[%s2922_s0 + $0x168] sm:$0xff]  ;;  %v31_v29 = vld [vmem:[%s2922_s0 + $0x70] sm:$0xff] }
   0xb   :  { %v63_v30 = vld [vmem:[%s2922_s0 + $0x170] sm:$0xff]  ;;  %v32_v31 = vld [vmem:[%s2922_s0 + $0x78] sm:$0xff]  ;;  %v33_v33 = vld [vmem:[%s2922_s0 + $0x80] sm:$0xff] }
   0xc   :  { %v64_v32 = vld [vmem:[%s2922_s0 + $0x178] sm:$0xff]  ;;  %v65_v34 = vld [vmem:[%s2922_s0 + $0x180] sm:$0xff]  ;;  %v34_v35 = vld [vmem:[%s2922_s0 + $0x88] sm:$0xff] }
   0xd   :  { %1522 = vmatmul.mubr.msk.f32.gmra.mrb[4].mxu0 %vm82_vm0, %v22_v11  ;;  %1570 = vmatmul.mubr.msk.f32.gmra.mrb[4].mxu1 %vm82_vm0, %v54_v12  ;;  %v66_v36 = vld [vmem:[%s2922_s0 + $0x188] sm:$0xff]  ;;  %v35_v37 = vld [vmem:[%s2922_s0 + $0x90] sm:$0xff]  ;;  %v36_v39 = vld [vmem:[%s2922_s0 + $0x98] sm:$0xff] }
   0xe   :  { %1524 = vmatprep.mubr.msk.f32.mxu0 %vm82_vm0, %v23_v13  ;;  %1572 = vmatprep.mubr.msk.f32.mxu1 %vm82_vm0, %v55_v14  ;;  %v67_v38 = vld [vmem:[%s2922_s0 + $0x190] sm:$0xff]  ;;  %v68_v40 = vld [vmem:[%s2922_s0 + $0x198] sm:$0xff]  ;;  %v37_v41 = vld [vmem:[%s2922_s0 + $0xa0] sm:$0xff] }
   0xf   :  { %v69_v42 = vld [vmem:[%s2922_s0 + $0x1a0] sm:$0xff]  ;;  %v38_v43 = vld [vmem:[%s2922_s0 + $0xa8] sm:$0xff]  ;;  %v39_v45 = vld [vmem:[%s2922_s0 + $0xb0] sm:$0xff] }
  0x10   :  { %v70_v44 = vld [vmem:[%s2922_s0 + $0x1a8] sm:$0xff]  ;;  %v71_v46 = vld [vmem:[%s2922_s0 + $0x1b0] sm:$0xff]  ;;  %v40_v47 = vld [vmem:[%s2922_s0 + $0xb8] sm:$0xff] }
  0x11   :  { %1525 = vmatmul.mubr.msk.f32.gmra.mrb[6].mxu0 %vm82_vm0, %v24_v15  ;;  %1573 = vmatmul.mubr.msk.f32.gmra.mrb[6].mxu1 %vm82_vm0, %v56_v16  ;;  %v72_v48 = vld [vmem:[%s2922_s0 + $0x1b8] sm:$0xff]  ;;  %v41_v49 = vld [vmem:[%s2922_s0 + $0xc0] sm:$0xff]  ;;  %v42_v51 = vld [vmem:[%s2922_s0 + $0xc8] sm:$0xff] }
  0x12   :  { %1527 = vmatprep.mubr.msk.f32.mxu0 %vm82_vm0, %v25_v17  ;;  %1575 = vmatprep.mubr.msk.f32.mxu1 %vm82_vm0, %v57_v18  ;;  %v73_v50 = vld [vmem:[%s2922_s0 + $0x1c0] sm:$0xff]  ;;  %v74_v52 = vld [vmem:[%s2922_s0 + $0x1c8] sm:$0xff]  ;;  %v43_v53 = vld [vmem:[%s2922_s0 + $0xd0] sm:$0xff] }
  0x13   :  { %v75_v54 = vld [vmem:[%s2922_s0 + $0x1d0] sm:$0xff]  ;;  %v44_v55 = vld [vmem:[%s2922_s0 + $0xd8] sm:$0xff]  ;;  %v45_v57 = vld [vmem:[%s2922_s0 + $0xe0] sm:$0xff] }
  0x14   :  { %v76_v56 = vld [vmem:[%s2922_s0 + $0x1d8] sm:$0xff]  ;;  %v77_v58 = vld [vmem:[%s2922_s0 + $0x1e0] sm:$0xff]  ;;  %v46_v59 = vld [vmem:[%s2922_s0 + $0xe8] sm:$0xff] }
  0x15   :  { %1528 = vmatmul.mubr.msk.f32.gmra.mrb[8].mxu0 %vm82_vm0, %v26_v19  ;;  %1576 = vmatmul.mubr.msk.f32.gmra.mrb[8].mxu1 %vm82_vm0, %v58_v20  ;;  %v78_v60 = vld [vmem:[%s2922_s0 + $0x1e8] sm:$0xff]  ;;  %v47_v61 = vld [vmem:[%s2922_s0 + $0xf0] sm:$0xff]  ;;  %v48_v63 = vld [vmem:[%s2922_s0 + $0xf8] sm:$0xff] }
  0x16   :  { %1530 = vmatprep.mubr.msk.f32.mxu0 %vm82_vm0, %v27_v21  ;;  %1578 = vmatprep.mubr.msk.f32.mxu1 %vm82_vm0, %v59_v22  ;;  %v79_v62 = vld [vmem:[%s2922_s0 + $0x1f0] sm:$0xff]  ;;  %v80_v0 = vld [vmem:[%s2922_s0 + $0x1f8] sm:$0xff]  ;;  %v2158_v1 = vld [vmem:[%s2923_s2] ss:$0 sm:$0xff] }
  0x17   :  { %v2163_v3 = vld [vmem:[%s2924_s3] ss:$0 sm:$0xff] }
  0x19   :  { %1531 = vmatmul.mubr.msk.f32.gmra.mrb[10].mxu0 %vm82_vm0, %v28_v23  ;;  %1579 = vmatmul.mubr.msk.f32.gmra.mrb[10].mxu1 %vm82_vm0, %v60_v24 }
  0x1a   :  { %1533 = vmatprep.mubr.msk.f32.mxu0 %vm82_vm0, %v29_v25  ;;  %1581 = vmatprep.mubr.msk.f32.mxu1 %vm82_vm0, %v61_v26 }
  0x1d   :  { %1534 = vmatmul.mubr.msk.f32.gmra.mrb[12].mxu0 %vm82_vm0, %v30_v27  ;;  %1582 = vmatmul.mubr.msk.f32.gmra.mrb[12].mxu1 %vm82_vm0, %v62_v28 }
  0x1e   :  { %1536 = vmatprep.mubr.msk.f32.mxu0 %vm82_vm0, %v31_v29  ;;  %1584 = vmatprep.mubr.msk.f32.mxu1 %vm82_vm0, %v63_v30 }
  0x21   :  { %1537 = vmatmul.mubr.msk.f32.gmra.mrb[14].mxu0 %vm82_vm0, %v32_v31  ;;  %1585 = vmatmul.mubr.msk.f32.gmra.mrb[14].mxu1 %vm82_vm0, %v64_v32 }
  0x22   :  { %1539 = vmatprep.mubr.msk.f32.mxu0 %vm82_vm0, %v33_v33  ;;  %1587 = vmatprep.mubr.msk.f32.mxu1 %vm82_vm0, %v65_v34 }
  0x25   :  { %1540 = vmatmul.mubr.msk.f32.gmra.mrb[16].mxu0 %vm82_vm0, %v34_v35  ;;  %1588 = vmatmul.mubr.msk.f32.gmra.mrb[16].mxu1 %vm82_vm0, %v66_v36 }
  0x26   :  { %1542 = vmatprep.mubr.msk.f32.mxu0 %vm82_vm0, %v35_v37  ;;  %1590 = vmatprep.mubr.msk.f32.mxu1 %vm82_vm0, %v67_v38 }
  0x29   :  { %1543 = vmatmul.mubr.msk.f32.gmra.mrb[18].mxu0 %vm82_vm0, %v36_v39  ;;  %1591 = vmatmul.mubr.msk.f32.gmra.mrb[18].mxu1 %vm82_vm0, %v68_v40 }
  0x2a   :  { %1545 = vmatprep.mubr.msk.f32.mxu0 %vm82_vm0, %v37_v41  ;;  %1593 = vmatprep.mubr.msk.f32.mxu1 %vm82_vm0, %v69_v42 }
  0x2d   :  { %1546 = vmatmul.mubr.msk.f32.gmra.mrb[20].mxu0 %vm82_vm0, %v38_v43  ;;  %1594 = vmatmul.mubr.msk.f32.gmra.mrb[20].mxu1 %vm82_vm0, %v70_v44 }
  0x2e   :  { %1548 = vmatprep.mubr.msk.f32.mxu0 %vm82_vm0, %v39_v45  ;;  %1596 = vmatprep.mubr.msk.f32.mxu1 %vm82_vm0, %v71_v46 }
  0x31   :  { %1549 = vmatmul.mubr.msk.f32.gmra.mrb[22].mxu0 %vm82_vm0, %v40_v47  ;;  %1597 = vmatmul.mubr.msk.f32.gmra.mrb[22].mxu1 %vm82_vm0, %v72_v48 }
  0x32   :  { %1551 = vmatprep.mubr.msk.f32.mxu0 %vm82_vm0, %v41_v49  ;;  %1599 = vmatprep.mubr.msk.f32.mxu1 %vm82_vm0, %v73_v50 }
  0x35   :  { %1552 = vmatmul.mubr.msk.f32.gmra.mrb[24].mxu0 %vm82_vm0, %v42_v51  ;;  %1600 = vmatmul.mubr.msk.f32.gmra.mrb[24].mxu1 %vm82_vm0, %v74_v52 }
  0x36   :  { %1554 = vmatprep.mubr.msk.f32.mxu0 %vm82_vm0, %v43_v53  ;;  %1602 = vmatprep.mubr.msk.f32.mxu1 %vm82_vm0, %v75_v54 }
  0x39   :  { %1555 = vmatmul.mubr.msk.f32.gmra.mrb[26].mxu0 %vm82_vm0, %v44_v55  ;;  %1603 = vmatmul.mubr.msk.f32.gmra.mrb[26].mxu1 %vm82_vm0, %v76_v56 }
  0x3a   :  { %1557 = vmatprep.mubr.msk.f32.mxu0 %vm82_vm0, %v45_v57  ;;  %1605 = vmatprep.mubr.msk.f32.mxu1 %vm82_vm0, %v77_v58 }
  0x3d   :  { %1558 = vmatmul.mubr.msk.f32.gmra.mrb[28].mxu0 %vm82_vm0, %v46_v59  ;;  %1606 = vmatmul.mubr.msk.f32.gmra.mrb[28].mxu1 %vm82_vm0, %v78_v60 }
  0x3e   :  { %1560 = vmatprep.mubr.msk.f32.mxu0 %vm82_vm0, %v47_v61  ;;  %1608 = vmatprep.mubr.msk.f32.mxu1 %vm82_vm0, %v79_v62 }
  0x41   :  { %1561 = vmatmul.mubr.msk.f32.gmra.mrb[30].mxu0 %vm82_vm0, %v48_v63  ;;  %1609 = vmatmul.mubr.msk.f32.gmra.mrb[30].mxu1 %vm82_vm0, %v80_v0 }
  0xd8   :  { %v1517_v2 = vpop.f32.mrb[0].mxu0  ;;  %v1565_v4 = vpop.f32.mrb[0].mxu1 }
  0xd9   :  { %v668_v5 = vmul.f32 %v1517_v2, %v2158_v1  ;;  %v700_v6 = vmul.f32 %v1565_v4, %v2158_v1  ;;  %v341_v7 = vpop.f32.mrb[1].mxu0  ;;  %v501_v8 = vpop.f32.mrb[1].mxu1 }
  0xda   :  { %v667_v9 = vmul.f32 %v2158_v1, %v341_v7  ;;  %v699_v10 = vmul.f32 %v2158_v1, %v501_v8 }
  0xdb   :  { %v2170_v11 = vadd.f32 %v2163_v3, %v668_v5  ;;  %v2173_v12 = vadd.f32 %v2163_v3, %v700_v6 }
  0xdc   :  { %v2176_v13 = vadd.f32 %v2163_v3, %v667_v9  ;;  %v2179_v14 = vadd.f32 %v2163_v3, %v699_v10  ;;  %v1520_v15 = vpop.f32.mrb[2].mxu0  ;;  %v1568_v16 = vpop.f32.mrb[2].mxu1 }
  0xdd   :  { %v1385_v17 = vmul.f32 -1.442695, %v2170_v11  ;;  %v1417_v18 = vmul.f32 -1.442695, %v2173_v12  ;;  %v670_v19 = vmul.f32 %v1520_v15, %v2158_v1  ;;  %v702_v20 = vmul.f32 %v1568_v16, %v2158_v1  ;;  %v351_v21 = vpop.f32.mrb[3].mxu0  ;;  %v511_v22 = vpop.f32.mrb[3].mxu1 }
  0xde   :  { %v1384_v23 = vmul.f32 -1.442695, %v2176_v13  ;;  %v1416_v24 = vmul.f32 -1.442695, %v2179_v14  ;;  %v669_v25 = vmul.f32 %v2158_v1, %v351_v21  ;;  %v701_v26 = vmul.f32 %v2158_v1, %v511_v22 }
  0xdf   :  { %1613 = vpow2.f32 %v1385_v17  ;;  %v2190_v27 = vadd.f32 %v2163_v3, %v670_v19  ;;  %v2193_v28 = vadd.f32 %v2163_v3, %v702_v20 }
  0xe0   :  { %1615 = vpow2.f32 %v1417_v18  ;;  %v2196_v29 = vadd.f32 %v2163_v3, %v669_v25  ;;  %v2199_v30 = vadd.f32 %v2163_v3, %v701_v26  ;;  %v1523_v31 = vpop.f32.mrb[4].mxu0  ;;  %v1571_v32 = vpop.f32.mrb[4].mxu1 }
  0xe1   :  { %1617 = vpow2.f32 %v1384_v23  ;;  %v1387_v33 = vmul.f32 -1.442695, %v2190_v27  ;;  %v1419_v34 = vmul.f32 -1.442695, %v2193_v28  ;;  %v672_v35 = vmul.f32 %v1523_v31, %v2158_v1  ;;  %v361_v36 = vpop.f32.mrb[5].mxu0  ;;  %v521_v37 = vpop.f32.mrb[5].mxu1 }
  0xe2   :  { %1619 = vpow2.f32 %v1416_v24  ;;  %v1386_v38 = vmul.f32 -1.442695, %v2196_v29  ;;  %v1418_v39 = vmul.f32 -1.442695, %v2199_v30  ;;  %v704_v40 = vmul.f32 %v1571_v32, %v2158_v1 }
  0xe3   :  { %1621 = vpow2.f32 %v1387_v33  ;;  %v2208_v41 = vadd.f32 %v2163_v3, %v672_v35  ;;  %v671_v42 = vmul.f32 %v2158_v1, %v361_v36  ;;  %v703_v43 = vmul.f32 %v2158_v1, %v521_v37 }
  0xe4   :  { %1623 = vpow2.f32 %v1419_v34  ;;  %v2213_v44 = vadd.f32 %v2163_v3, %v704_v40  ;;  %v1526_v45 = vpop.f32.mrb[6].mxu0  ;;  %v1574_v46 = vpop.f32.mrb[6].mxu1 }
  0xe5   :  { %1625 = vpow2.f32 %v1386_v38  ;;  %v1389_v47 = vmul.f32 -1.442695, %v2208_v41  ;;  %v2217_v48 = vadd.f32 %v2163_v3, %v671_v42  ;;  %v2220_v49 = vadd.f32 %v2163_v3, %v703_v43  ;;  %v371_v50 = vpop.f32.mrb[7].mxu0  ;;  %v531_v51 = vpop.f32.mrb[7].mxu1 }
  0xe6   :  { %1627 = vpow2.f32 %v1418_v39  ;;  %v1421_v52 = vmul.f32 -1.442695, %v2213_v44  ;;  %v674_v55 = vmul.f32 %v1526_v45, %v2158_v1  ;;  %v706_v59 = vmul.f32 %v1574_v46, %v2158_v1 }
  0xe7   :  { %1629 = vpow2.f32 %v1389_v47  ;;  %v1388_v53 = vmul.f32 -1.442695, %v2217_v48  ;;  %v1420_v54 = vmul.f32 -1.442695, %v2220_v49  ;;  %v673_v4 = vmul.f32 %v2158_v1, %v371_v50 }
  0xe8   :  { %1631 = vpow2.f32 %v1421_v52  ;;  %v1529_v56 = vpop.f32.mrb[8].mxu0  ;;  %v1577_v57 = vpop.f32.mrb[8].mxu1  ;;  %v2229_v7 = vadd.f32 %v2163_v3, %v674_v55  ;;  %v2232_v16 = vadd.f32 %v2163_v3, %v706_v59  ;;  %v705_v17 = vmul.f32 %v2158_v1, %v531_v51 }
  0xe9   :  { %v1614_v58 = vpop.eup %1613  ;;  %1633 = vpow2.f32 %v1388_v53  ;;  %v381_v60 = vpop.f32.mrb[9].mxu0  ;;  %v676_v21 = vmul.f32 %v1529_v56, %v2158_v1  ;;  %v2237_v25 = vadd.f32 %v2163_v3, %v673_v4  ;;  %v708_v33 = vmul.f32 %v1577_v57, %v2158_v1 }
  0xea   :  { %v541_v61 = vpop.f32.mrb[9].mxu1  ;;  %v1616_v62 = vpop.eup %1615  ;;  %v995_v63 = vadd.f32 1.0, %v1614_v58  ;;  %1635 = vpow2.f32 %v1420_v54  ;;  %v1391_v32 = vmul.f32 -1.442695, %v2229_v7  ;;  %v1423_v38 = vmul.f32 -1.442695, %v2232_v16 }
  0xeb   :  { %v1618_v0 = vpop.eup %1617  ;;  %v1027_v2 = vadd.f32 1.0, %v1616_v62  ;;  %v2245_v39 = vadd.f32 %v2163_v3, %v705_v17  ;;  %v2252_v46 = vadd.f32 %v2163_v3, %v676_v21  ;;  %v675_v47 = vmul.f32 %v2158_v1, %v381_v60 }
  0xec   :  { %v1620_v5 = vpop.eup %1619  ;;  %1637 = vrcp.f32 %v995_v63  ;;  %v994_v6 = vadd.f32 1.0, %v1618_v0  ;;  %v1532_v8 = vpop.f32.mrb[10].mxu0  ;;  %v1390_v52 = vmul.f32 -1.442695, %v2237_v25  ;;  %v707_v53 = vmul.f32 %v2158_v1, %v541_v61 }
  0xed   :  { %v1580_v9 = vpop.f32.mrb[10].mxu1  ;;  %v1622_v10 = vpop.eup %1621  ;;  %1639 = vrcp.f32 %v1027_v2  ;;  %v1026_v15 = vadd.f32 1.0, %v1620_v5  ;;  %v2258_v56 = vadd.f32 %v2163_v3, %v708_v33  ;;  %v678_v57 = vmul.f32 %v1532_v8, %v2158_v1 }
  0xee   :  { %v391_v18 = vpop.f32.mrb[11].mxu0  ;;  %v1624_v19 = vpop.eup %1623  ;;  %1641 = vrcp.f32 %v994_v6  ;;  %v997_v20 = vadd.f32 1.0, %v1622_v10  ;;  %v1422_v62 = vmul.f32 -1.442695, %v2245_v39  ;;  %v710_v63 = vmul.f32 %v1580_v9, %v2158_v1 }
  0xef   :  { %v551_v22 = vpop.f32.mrb[11].mxu1  ;;  %v1626_v23 = vpop.eup %1625  ;;  %1643 = vrcp.f32 %v1026_v15  ;;  %v1029_v24 = vadd.f32 1.0, %v1624_v19  ;;  %v1393_v4 = vmul.f32 -1.442695, %v2252_v46  ;;  %v2273_v5 = vadd.f32 %v2163_v3, %v675_v47 }
  0xf0   :  { %v1628_v26 = vpop.eup %1627  ;;  %1645 = vrcp.f32 %v997_v20  ;;  %v996_v31 = vadd.f32 1.0, %v1626_v23  ;;  %v1535_v34 = vpop.f32.mrb[12].mxu0  ;;  %v677_v6 = vmul.f32 %v2158_v1, %v391_v18  ;;  %v2278_v15 = vadd.f32 %v2163_v3, %v707_v53 }
  0xf1   :  { %v2241_v35 = vpop.f32.mrb[12].mxu1  ;;  %v1630_v36 = vpop.eup %1629  ;;  %1647 = vrcp.f32 %v1029_v24  ;;  %v1028_v37 = vadd.f32 1.0, %v1628_v26  ;;  %v709_v9 = vmul.f32 %v2158_v1, %v551_v22  ;;  %v2283_v20 = vadd.f32 %v2163_v3, %v678_v57 }
  0xf2   :  { %v2247_v40 = vpop.f32.mrb[13].mxu0  ;;  %v2249_v42 = vpop.f32.mrb[13].mxu1  ;;  %1649 = vrcp.f32 %v996_v31  ;;  %v999_v45 = vadd.f32 1.0, %v1630_v36  ;;  %v680_v21 = vmul.f32 %v1535_v34, %v2158_v1  ;;  %v2297_v24 = vadd.f32 %v2163_v3, %v710_v63 }
  0xf3   :  { %v1632_v43 = vpop.eup %1631  ;;  %1651 = vrcp.f32 %v1028_v37  ;;  %v2310_v34 = vadd.f32 %v2163_v3, %v677_v6  ;;  %v1395_v47 = vmul.f32 -1.442695, %v2283_v20 }
  0xf4   :  { %v1634_v50 = vpop.eup %1633  ;;  %v1031_v51 = vadd.f32 1.0, %v1632_v43  ;;  %1653 = vrcp.f32 %v999_v45  ;;  %v2261_v58 = vpop.f32.mrb[14].mxu0  ;;  %v2319_v43 = vadd.f32 %v2163_v3, %v709_v9 }
  0xf5   :  { %v1636_v54 = vpop.eup %1635  ;;  %v998_v55 = vadd.f32 1.0, %v1634_v50  ;;  %v2263_v59 = vpop.f32.mrb[14].mxu1  ;;  %v2328_v50 = vadd.f32 %v2163_v3, %v680_v21 }
  0xf6   :  { %1655 = vrcp.f32 %v1031_v51  ;;  %v1030_v60 = vadd.f32 1.0, %v1636_v54  ;;  %v2267_v0 = vpop.f32.mrb[15].mxu0  ;;  %v2269_v61 = vpop.f32.mrb[15].mxu1 }
  0xf7   :  { %v1638_v2 = vpop.eup %1637  ;;  %1657 = vrcp.f32 %v998_v55  ;;  %v1397_v6 = vmul.f32 -1.442695, %v2328_v50 }
  0xf8   :  { %v1640_v8 = vpop.eup %1639  ;;  %v1187_v10 = vmul.f32 %v1638_v2, %v2170_v11  ;;  %1659 = vrcp.f32 %v1030_v60  ;;  %v2286_v23 = vpop.f32.mrb[16].mxu0  ;;  %v1426_v2 = vmul.f32 -1.442695, %v2319_v43 }
  0xf9   :  { %v1642_v17 = vpop.eup %1641  ;;  %v1219_v19 = vmul.f32 %v1640_v8, %v2173_v12  ;;  %1661 = vpow2.f32 %v1391_v32  ;;  %v2288_v18 = vpop.f32.mrb[16].mxu1  ;;  %v1425_v12 = vmul.f32 -1.442695, %v2258_v56 }
  0xfa   :  { %v1644_v11 = vpop.eup %1643  ;;  %1251 = vst.msk [vmem:[%s2925_s4 + $0x8] sm:$0xff] %vm82_vm0, %v1187_v10  ;;  %v1186_v22 = vmul.f32 %v1642_v17, %v2176_v13  ;;  %1663 = vpow2.f32 %v1423_v38  ;;  %v2299_v26 = vpop.f32.mrb[17].mxu0  ;;  %v1392_v13 = vmul.f32 -1.442695, %v2273_v5  ;;  %v1424_v38 = vmul.f32 -1.442695, %v2278_v15 }
  0xfb   :  { %v2301_v31 = vpop.f32.mrb[17].mxu1  ;;  %v1646_v32 = vpop.eup %1645  ;;  %1283 = vst.msk [vmem:[%s2925_s4 + $0x108] sm:$0xff] %vm82_vm0, %v1219_v19  ;;  %v1218_v33 = vmul.f32 %v1644_v11, %v2179_v14  ;;  %1665 = vpow2.f32 %v1390_v52  ;;  %v712_v11 = vmul.f32 %v2241_v35, %v2158_v1 }
  0xfc   :  { %v1648_v36 = vpop.eup %1647  ;;  %1250 = vst.msk [vmem:[%s2925_s4] sm:$0xff] %vm82_vm0, %v1186_v22  ;;  %v1189_v37 = vmul.f32 %v1646_v32, %v2190_v27  ;;  %1667 = vpow2.f32 %v1422_v62  ;;  %v2330_v27 = vpop.f32.mrb[18].mxu0  ;;  %v1394_v62 = vmul.f32 -1.442695, %v2310_v34 }
  0xfd   :  { %v1650_v14 = vpop.eup %1649  ;;  %1282 = vst.msk [vmem:[%s2925_s4 + $0x100] sm:$0xff] %vm82_vm0, %v1218_v33  ;;  %v1221_v45 = vmul.f32 %v1648_v36, %v2193_v28  ;;  %1669 = vpow2.f32 %v1393_v4  ;;  %v2332_v51 = vpop.f32.mrb[18].mxu1  ;;  %v1427_v28 = vmul.f32 -1.442695, %v2297_v24 }
  0xfe   :  { %v1652_v52 = vpop.eup %1651  ;;  %1253 = vst.msk [vmem:[%s2925_s4 + $0x18] sm:$0xff] %vm82_vm0, %v1189_v37  ;;  %v1188_v53 = vmul.f32 %v1650_v14, %v2196_v29  ;;  %1671 = vpow2.f32 %v1425_v12  ;;  %v2340_v54 = vpop.f32.mrb[19].mxu0  ;;  %v679_v12 = vmul.f32 %v2158_v1, %v2247_v40  ;;  %v711_v37 = vmul.f32 %v2158_v1, %v2249_v42 }
  0xff   :  { %v2342_v55 = vpop.f32.mrb[19].mxu1  ;;  %v1654_v57 = vpop.eup %1653  ;;  %1285 = vst.msk [vmem:[%s2925_s4 + $0x118] sm:$0xff] %vm82_vm0, %v1221_v45  ;;  %v1220_v60 = vmul.f32 %v1652_v52, %v2199_v30  ;;  %1673 = vpow2.f32 %v1392_v13  ;;  %v2401_v45 = vadd.f32 %v2163_v3, %v712_v11  ;;  %v714_v42 = vmul.f32 %v2263_v59, %v2158_v1 }
 0x100   :  { %v1656_v63 = vpop.eup %1655  ;;  %1252 = vst.msk [vmem:[%s2925_s4 + $0x10] sm:$0xff] %vm82_vm0, %v1188_v53  ;;  %v1191_v29 = vmul.f32 %v1654_v57, %v2208_v41  ;;  %1675 = vpow2.f32 %v1424_v38  ;;  %v2362_v8 = vpop.f32.mrb[20].mxu0  ;;  %v2408_v57 = vadd.f32 %v2163_v3, %v679_v12 }
 0x101   :  { %v1658_v4 = vpop.eup %1657  ;;  %1284 = vst.msk [vmem:[%s2925_s4 + $0x110] sm:$0xff] %vm82_vm0, %v1220_v60  ;;  %v1223_v30 = vmul.f32 %v1656_v63, %v2213_v44  ;;  %1677 = vpow2.f32 %v1395_v47  ;;  %v2364_v10 = vpop.f32.mrb[20].mxu1  ;;  %v682_v47 = vmul.f32 %v2261_v58, %v2158_v1  ;;  %v681_v63 = vmul.f32 %v2158_v1, %v2267_v0 }
 0x102   :  { %v1660_v9 = vpop.eup %1659  ;;  %1255 = vst.msk [vmem:[%s2925_s4 + $0x28] sm:$0xff] %vm82_vm0, %v1191_v29  ;;  %v1190_v41 = vmul.f32 %v1658_v4, %v2217_v48  ;;  %1679 = vpow2.f32 %v1427_v28  ;;  %v2371_v17 = vpop.f32.mrb[21].mxu0 }
 0x103   :  { %v2373_v19 = vpop.f32.mrb[21].mxu1  ;;  %v1662_v44 = vpop.eup %1661  ;;  %1287 = vst.msk [vmem:[%s2925_s4 + $0x128] sm:$0xff] %vm82_vm0, %v1223_v30  ;;  %v1222_v21 = vmul.f32 %v1660_v9, %v2220_v49  ;;  %1681 = vpow2.f32 %v1394_v62  ;;  %v2419_v30 = vadd.f32 %v2163_v3, %v711_v37  ;;  %v2427_v0 = vadd.f32 %v2163_v3, %v682_v47 }
 0x104   :  { %v1664_v22 = vpop.eup %1663  ;;  %1254 = vst.msk [vmem:[%s2925_s4 + $0x20] sm:$0xff] %vm82_vm0, %v1190_v41  ;;  %v1001_v48 = vadd.f32 1.0, %v1662_v44  ;;  %1683 = vpow2.f32 %v1426_v2  ;;  %v2392_v35 = vpop.f32.mrb[22].mxu0  ;;  %v1429_v44 = vmul.f32 -1.442695, %v2401_v45  ;;  %v684_v47 = vmul.f32 %v2286_v23, %v2158_v1 }
 0x105   :  { %v1666_v32 = vpop.eup %1665  ;;  %1286 = vst.msk [vmem:[%s2925_s4 + $0x120] sm:$0xff] %vm82_vm0, %v1222_v21  ;;  %v1033_v49 = vadd.f32 1.0, %v1664_v22  ;;  %1685 = vpow2.f32 %v1397_v6  ;;  %v2394_v33 = vpop.f32.mrb[22].mxu1  ;;  %v1396_v22 = vmul.f32 -1.442695, %v2408_v57  ;;  %v683_v23 = vmul.f32 %v2158_v1, %v2299_v26 }
 0x106   :  { %v1668_v13 = vpop.eup %1667  ;;  %1687 = vrcp.f32 %v1001_v48  ;;  %v1000_v36 = vadd.f32 1.0, %v1666_v32  ;;  %v2398_v38 = vpop.f32.mrb[23].mxu0  ;;  %v2431_v48 = vadd.f32 %v2163_v3, %v714_v42  ;;  %v2467_v26 = vadd.f32 %v2163_v3, %v684_v47 }
 0x107   :  { %v1670_v40 = vpop.eup %1669  ;;  %1689 = vrcp.f32 %v1033_v49  ;;  %v1032_v14 = vadd.f32 1.0, %v1668_v13  ;;  %v2405_v52 = vpop.f32.mrb[23].mxu1  ;;  %v2434_v49 = vadd.f32 %v2163_v3, %v681_v63  ;;  %v713_v13 = vmul.f32 %v2158_v1, %v2269_v61 }
 0x108   :  { %v1672_v53 = vpop.eup %1671  ;;  %1691 = vrcp.f32 %v1000_v36  ;;  %v1003_v28 = vadd.f32 1.0, %v1670_v40  ;;  %v2414_v29 = vpop.f32.mrb[24].mxu0  ;;  %v716_v61 = vmul.f32 %v2288_v18, %v2158_v1  ;;  %v715_v18 = vmul.f32 %v2158_v1, %v2301_v31 }
 0x109   :  { %v1674_v60 = vpop.eup %1673  ;;  %1693 = vrcp.f32 %v1032_v14  ;;  %v1035_v62 = vadd.f32 1.0, %v1672_v53  ;;  %v2416_v58 = vpop.f32.mrb[24].mxu1  ;;  %v1428_v14 = vmul.f32 -1.442695, %v2419_v30  ;;  %v718_v47 = vmul.f32 %v2332_v51, %v2158_v1 }
 0x10a   :  { %v1676_v2 = vpop.eup %1675  ;;  %1695 = vrcp.f32 %v1003_v28  ;;  %v1002_v4 = vadd.f32 1.0, %v1674_v60  ;;  %v2421_v6 = vpop.f32.mrb[25].mxu0 }
 0x10b   :  { %v2423_v9 = vpop.f32.mrb[25].mxu1  ;;  %v1678_v59 = vpop.eup %1677  ;;  %1697 = vrcp.f32 %v1035_v62  ;;  %v1034_v41 = vadd.f32 1.0, %v1676_v2  ;;  %v1399_v62 = vmul.f32 -1.442695, %v2427_v0 }
 0x10c   :  { %v1680_v21 = vpop.eup %1679  ;;  %1699 = vrcp.f32 %v1002_v4  ;;  %v1005_v11 = vadd.f32 1.0, %v1678_v59  ;;  %v2438_v36 = vpop.f32.mrb[26].mxu0  ;;  %v1431_v59 = vmul.f32 -1.442695, %v2431_v48 }
 0x10d   :  { %v1682_v12 = vpop.eup %1681  ;;  %1701 = vrcp.f32 %v1034_v41  ;;  %v1037_v32 = vadd.f32 1.0, %v1680_v21  ;;  %v2443_v53 = vpop.f32.mrb[26].mxu1 }
 0x10e   :  { %v1684_v37 = vpop.eup %1683  ;;  %1703 = vrcp.f32 %v1005_v11  ;;  %v1004_v40 = vadd.f32 1.0, %v1682_v12  ;;  %v2445_v28 = vpop.f32.mrb[27].mxu0  ;;  %v2457_v11 = vadd.f32 %v2163_v3, %v713_v13 }
 0x10f   :  { %v1686_v42 = vpop.eup %1685  ;;  %1705 = vrcp.f32 %v1037_v32  ;;  %v1036_v60 = vadd.f32 1.0, %v1684_v37  ;;  %v2450_v63 = vpop.f32.mrb[27].mxu1 }
 0x110   :  { %v1688_v2 = vpop.eup %1687  ;;  %1707 = vrcp.f32 %v1004_v40  ;;  %v1007_v4 = vadd.f32 1.0, %v1686_v42  ;;  %v2461_v12 = vpop.f32.mrb[28].mxu0 }
 0x111   :  { %v1690_v41 = vpop.eup %1689  ;;  %v1193_v21 = vmul.f32 %v1688_v2, %v2229_v7  ;;  %1709 = vrcp.f32 %v1036_v60  ;;  %v2463_v32 = vpop.f32.mrb[28].mxu1  ;;  %v686_v7 = vmul.f32 %v2330_v27, %v2158_v1 }
 0x112   :  { %v1692_v37 = vpop.eup %1691  ;;  %v1225_v40 = vmul.f32 %v1690_v41, %v2232_v16  ;;  %1711 = vrcp.f32 %v1007_v4  ;;  %v2471_v42 = vpop.f32.mrb[29].mxu0  ;;  %v2481_v16 = vadd.f32 %v2163_v3, %v716_v61  ;;  %v1398_v4 = vmul.f32 -1.442695, %v2434_v49 }
 0x113   :  { %v2473_v13 = vpop.f32.mrb[29].mxu1  ;;  %v1694_v60 = vpop.eup %1693  ;;  %1257 = vst.msk [vmem:[%s2925_s4 + $0x38] sm:$0xff] %vm82_vm0, %v1193_v21  ;;  %v1192_v31 = vmul.f32 %v1692_v37, %v2237_v25  ;;  %1713 = vpow2.f32 %v1429_v44  ;;  %v2492_v25 = vadd.f32 %v2163_v3, %v683_v23  ;;  %v1430_v61 = vmul.f32 -1.442695, %v2457_v11 }
 0x114   :  { %v1696_v27 = vpop.eup %1695  ;;  %1289 = vst.msk [vmem:[%s2925_s4 + $0x138] sm:$0xff] %vm82_vm0, %v1225_v40  ;;  %v1224_v2 = vmul.f32 %v1694_v60, %v2245_v39  ;;  %1715 = vpow2.f32 %v1396_v22  ;;  %v2501_v41 = vadd.f32 %v2163_v3, %v715_v18  ;;  %v2503_v39 = vpop.f32.mrb[30].mxu0 }
 0x115   :  { %v1698_v44 = vpop.eup %1697  ;;  %1256 = vst.msk [vmem:[%s2925_s4 + $0x30] sm:$0xff] %vm82_vm0, %v1192_v31  ;;  %v1195_v51 = vmul.f32 %v1696_v27, %v2252_v46  ;;  %1717 = vpow2.f32 %v1428_v14  ;;  %v2505_v22 = vpop.f32.mrb[30].mxu1  ;;  %v1401_v46 = vmul.f32 -1.442695, %v2467_v26  ;;  %v2514_v14 = vadd.f32 %v2163_v3, %v686_v7 }
 0x116   :  { %v1700_v23 = vpop.eup %1699  ;;  %1288 = vst.msk [vmem:[%s2925_s4 + $0x130] sm:$0xff] %vm82_vm0, %v1224_v2  ;;  %v1227_v21 = vmul.f32 %v1698_v44, %v2258_v56  ;;  %1719 = vpow2.f32 %v1399_v62  ;;  %v2516_v18 = vpop.f32.mrb[31].mxu0  ;;  %v1433_v56 = vmul.f32 -1.442695, %v2481_v16  ;;  %v2527_v62 = vadd.f32 %v2163_v3, %v718_v47 }
 0x117   :  { %v2518_v37 = vpop.f32.mrb[31].mxu1  ;;  %v1702_v40 = vpop.eup %1701  ;;  %1259 = vst.msk [vmem:[%s2925_s4 + $0x48] sm:$0xff] %vm82_vm0, %v1195_v51  ;;  %v1194_v60 = vmul.f32 %v1700_v23, %v2273_v5  ;;  %1721 = vpow2.f32 %v1431_v59  ;;  %v1400_v27 = vmul.f32 -1.442695, %v2492_v25  ;;  %v1432_v59 = vmul.f32 -1.442695, %v2501_v41 }
 0x118   :  { %v1704_v7 = vpop.eup %1703  ;;  %1291 = vst.msk [vmem:[%s2925_s4 + $0x148] sm:$0xff] %vm82_vm0, %v1227_v21  ;;  %v1226_v31 = vmul.f32 %v1702_v40, %v2278_v15  ;;  %1723 = vpow2.f32 %v1398_v4  ;;  %v1403_v4 = vmul.f32 -1.442695, %v2514_v14  ;;  %v1435_v51 = vmul.f32 -1.442695, %v2527_v62 }
 0x119   :  { %v1706_v2 = vpop.eup %1705  ;;  %1258 = vst.msk [vmem:[%s2925_s4 + $0x40] sm:$0xff] %vm82_vm0, %v1194_v60  ;;  %v1197_v5 = vmul.f32 %v1704_v7, %v2283_v20  ;;  %1725 = vpow2.f32 %v1430_v61  ;;  %v685_v21 = vmul.f32 %v2158_v1, %v2340_v54  ;;  %v717_v40 = vmul.f32 %v2158_v1, %v2342_v55 }
 0x11a   :  { %v1708_v47 = vpop.eup %1707  ;;  %1290 = vst.msk [vmem:[%s2925_s4 + $0x140] sm:$0xff] %vm82_vm0, %v1226_v31  ;;  %v1229_v15 = vmul.f32 %v1706_v2, %v2297_v24  ;;  %1727 = vpow2.f32 %v1401_v46  ;;  %v688_v54 = vmul.f32 %v2362_v8, %v2158_v1  ;;  %v720_v31 = vmul.f32 %v2364_v10, %v2158_v1 }
 0x11b   :  { %v1710_v44 = vpop.eup %1709  ;;  %1261 = vst.msk [vmem:[%s2925_s4 + $0x58] sm:$0xff] %vm82_vm0, %v1197_v5  ;;  %v1196_v20 = vmul.f32 %v1708_v47, %v2310_v34  ;;  %1729 = vpow2.f32 %v1433_v56  ;;  %v2580_v2 = vadd.f32 %v2163_v3, %v685_v21  ;;  %v687_v5 = vmul.f32 %v2158_v1, %v2371_v17 }
 0x11c   :  { %v1712_v61 = vpop.eup %1711  ;;  %1293 = vst.msk [vmem:[%s2925_s4 + $0x158] sm:$0xff] %vm82_vm0, %v1229_v15  ;;  %v1228_v24 = vmul.f32 %v1710_v44, %v2319_v43  ;;  %1731 = vpow2.f32 %v1400_v27  ;;  %v2585_v8 = vadd.f32 %v2163_v3, %v717_v40  ;;  %v2588_v10 = vadd.f32 %v2163_v3, %v688_v54 }
 0x11d   :  { %v1714_v23 = vpop.eup %1713  ;;  %1260 = vst.msk [vmem:[%s2925_s4 + $0x50] sm:$0xff] %vm82_vm0, %v1196_v20  ;;  %v1199_v34 = vmul.f32 %v1712_v61, %v2328_v50  ;;  %1733 = vpow2.f32 %v1432_v59  ;;  %v690_v54 = vmul.f32 %v2392_v35, %v2158_v1 }
 0x11e   :  { %v1716_v46 = vpop.eup %1715  ;;  %1292 = vst.msk [vmem:[%s2925_s4 + $0x150] sm:$0xff] %vm82_vm0, %v1228_v24  ;;  %v1039_v43 = vadd.f32 1.0, %v1714_v23  ;;  %1735 = vpow2.f32 %v1403_v4  ;;  %v1402_v24 = vmul.f32 -1.442695, %v2580_v2  ;;  %v2595_v23 = vadd.f32 %v2163_v3, %v687_v5 }
 0x11f   :  { %v1718_v60 = vpop.eup %1717  ;;  %1263 = vst.msk [vmem:[%s2925_s4 + $0x68] sm:$0xff] %vm82_vm0, %v1199_v34  ;;  %v1006_v50 = vadd.f32 1.0, %v1716_v46  ;;  %1737 = vpow2.f32 %v1435_v51  ;;  %v2591_v51 = vadd.f32 %v2163_v3, %v720_v31  ;;  %v1434_v46 = vmul.f32 -1.442695, %v2585_v8 }
 0x120   :  { %v1720_v56 = vpop.eup %1719  ;;  %1739 = vrcp.f32 %v1039_v43  ;;  %v1038_v7 = vadd.f32 1.0, %v1718_v60  ;;  %v719_v43 = vmul.f32 %v2158_v1, %v2373_v19  ;;  %v1404_v19 = vmul.f32 -1.442695, %v2595_v23 }
 0x121   :  { %v1722_v27 = vpop.eup %1721  ;;  %1741 = vrcp.f32 %v1006_v50  ;;  %v1009_v55 = vadd.f32 1.0, %v1720_v56  ;;  %v1405_v50 = vmul.f32 -1.442695, %v2588_v10  ;;  %v1437_v31 = vmul.f32 -1.442695, %v2591_v51 }
 0x122   :  { %v1724_v59 = vpop.eup %1723  ;;  %1743 = vrcp.f32 %v1038_v7  ;;  %v1041_v47 = vadd.f32 1.0, %v1722_v27  ;;  %v722_v27 = vmul.f32 %v2394_v33, %v2158_v1  ;;  %v2610_v35 = vadd.f32 %v2163_v3, %v719_v43 }
 0x123   :  { %v1726_v15 = vpop.eup %1725  ;;  %1745 = vrcp.f32 %v1009_v55  ;;  %v1008_v4 = vadd.f32 1.0, %v1724_v59  ;;  %v689_v59 = vmul.f32 %v2158_v1, %v2398_v38 }
 0x124   :  { %v1728_v44 = vpop.eup %1727  ;;  %1747 = vrcp.f32 %v1041_v47  ;;  %v1040_v20 = vadd.f32 1.0, %v1726_v15 }
 0x125   :  { %v1730_v61 = vpop.eup %1729  ;;  %1749 = vrcp.f32 %v1008_v4  ;;  %v1011_v17 = vadd.f32 1.0, %v1728_v44  ;;  %v721_v4 = vmul.f32 %v2158_v1, %v2405_v52  ;;  %v724_v52 = vmul.f32 %v2416_v58, %v2158_v1 }
 0x126   :  { %v1732_v34 = vpop.eup %1731  ;;  %1751 = vrcp.f32 %v1040_v20  ;;  %v1043_v21 = vadd.f32 1.0, %v1730_v61  ;;  %v2616_v20 = vadd.f32 %v2163_v3, %v690_v54  ;;  %v692_v61 = vmul.f32 %v2414_v29, %v2158_v1 }
 0x127   :  { %v1734_v40 = vpop.eup %1733  ;;  %1753 = vrcp.f32 %v1011_v17  ;;  %v1010_v60 = vadd.f32 1.0, %v1732_v34  ;;  %v2622_v34 = vadd.f32 %v2163_v3, %v722_v27  ;;  %v2632_v29 = vadd.f32 %v2163_v3, %v689_v59 }
 0x128   :  { %v1736_v56 = vpop.eup %1735  ;;  %1755 = vrcp.f32 %v1043_v21  ;;  %v1042_v7 = vadd.f32 1.0, %v1734_v40  ;;  %v1436_v40 = vmul.f32 -1.442695, %v2610_v35  ;;  %v2652_v54 = vadd.f32 %v2163_v3, %v692_v61 }
 0x129   :  { %v1738_v55 = vpop.eup %1737  ;;  %1757 = vrcp.f32 %v1010_v60  ;;  %v1013_v5 = vadd.f32 1.0, %v1736_v56  ;;  %v1407_v60 = vmul.f32 -1.442695, %v2616_v20  ;;  %v1439_v56 = vmul.f32 -1.442695, %v2622_v34 }
 0x12a   :  { %v1740_v47 = vpop.eup %1739  ;;  %1759 = vrcp.f32 %v1042_v7  ;;  %v1045_v15 = vadd.f32 1.0, %v1738_v55  ;;  %v2661_v7 = vadd.f32 %v2163_v3, %v724_v52  ;;  %v1406_v27 = vmul.f32 -1.442695, %v2632_v29 }
 0x12b   :  { %v1742_v44 = vpop.eup %1741  ;;  %v1231_v33 = vmul.f32 %v1740_v47, %v2401_v45  ;;  %1761 = vrcp.f32 %v1013_v5  ;;  %v723_v61 = vmul.f32 %v2158_v1, %v2423_v9  ;;  %v726_v9 = vmul.f32 %v2443_v53, %v2158_v1 }
 0x12c   :  { %v1744_v38 = vpop.eup %1743  ;;  %v1198_v17 = vmul.f32 %v1742_v44, %v2408_v57  ;;  %1763 = vrcp.f32 %v1045_v15  ;;  %v691_v57 = vmul.f32 %v2158_v1, %v2421_v6  ;;  %v1441_v47 = vmul.f32 -1.442695, %v2661_v7 }
 0x12d   :  { %v1746_v21 = vpop.eup %1745  ;;  %1295 = vst.msk [vmem:[%s2925_s4 + $0x168] sm:$0xff] %vm82_vm0, %v1231_v33  ;;  %v1230_v45 = vmul.f32 %v1744_v38, %v2419_v30  ;;  %1765 = vpow2.f32 %v1402_v24  ;;  %v2643_v30 = vadd.f32 %v2163_v3, %v721_v4 }
 0x12e   :  { %v1748_v43 = vpop.eup %1747  ;;  %1262 = vst.msk [vmem:[%s2925_s4 + $0x60] sm:$0xff] %vm82_vm0, %v1198_v17  ;;  %v1201_v58 = vmul.f32 %v1746_v21, %v2427_v0  ;;  %1767 = vpow2.f32 %v1434_v46  ;;  %v2670_v55 = vadd.f32 %v2163_v3, %v691_v57  ;;  %v694_v17 = vmul.f32 %v2438_v36, %v2158_v1 }
 0x12f   :  { %v1750_v24 = vpop.eup %1749  ;;  %1294 = vst.msk [vmem:[%s2925_s4 + $0x160] sm:$0xff] %vm82_vm0, %v1230_v45  ;;  %v1233_v6 = vmul.f32 %v1748_v43, %v2431_v48  ;;  %1769 = vpow2.f32 %v1405_v50  ;;  %v1438_v5 = vmul.f32 -1.442695, %v2643_v30  ;;  %v693_v57 = vmul.f32 %v2158_v1, %v2445_v28 }
 0x130   :  { %v1752_v0 = vpop.eup %1751  ;;  %1265 = vst.msk [vmem:[%s2925_s4 + $0x78] sm:$0xff] %vm82_vm0, %v1201_v58  ;;  %v1200_v46 = vmul.f32 %v1750_v24, %v2434_v49  ;;  %1771 = vpow2.f32 %v1437_v31  ;;  %v1408_v4 = vmul.f32 -1.442695, %v2670_v55  ;;  %v2725_v58 = vld [vmem:[%s2924_s3] ss:$0 sm:$0xff] }
 0x131   :  { %v1754_v48 = vpop.eup %1753  ;;  %1297 = vst.msk [vmem:[%s2925_s4 + $0x178] sm:$0xff] %vm82_vm0, %v1233_v6  ;;  %v1232_v50 = vmul.f32 %v1752_v0, %v2457_v11  ;;  %1773 = vpow2.f32 %v1404_v19  ;;  %v1409_v11 = vmul.f32 -1.442695, %v2652_v54  ;;  %v2731_v6 = vadd.f32 %v2725_v58, %v694_v17 }
 0x132   :  { %v1756_v49 = vpop.eup %1755  ;;  %1264 = vst.msk [vmem:[%s2925_s4 + $0x70] sm:$0xff] %vm82_vm0, %v1200_v46  ;;  %v1203_v31 = vmul.f32 %v1754_v48, %v2467_v26  ;;  %1775 = vpow2.f32 %v1436_v40  ;;  %v2728_v40 = vadd.f32 %v2725_v58, %v723_v61  ;;  %v2734_v28 = vadd.f32 %v2725_v58, %v726_v9  ;;  %v1870_v48 = vld [vmem:[%s2923_s2] ss:$0 sm:$0xff] }
 0x133   :  { %v1758_v59 = vpop.eup %1757  ;;  %1296 = vst.msk [vmem:[%s2925_s4 + $0x170] sm:$0xff] %vm82_vm0, %v1232_v50  ;;  %v1235_v3 = vmul.f32 %v1756_v49, %v2481_v16  ;;  %1777 = vpow2.f32 %v1407_v60  ;;  %v725_v50 = vmul.f32 %v1870_v48, %v2450_v63  ;;  %v695_v63 = vmul.f32 %v1870_v48, %v2471_v42 }
 0x134   :  { %v1760_v19 = vpop.eup %1759  ;;  %1267 = vst.msk [vmem:[%s2925_s4 + $0x88] sm:$0xff] %vm82_vm0, %v1203_v31  ;;  %v1202_v26 = vmul.f32 %v1758_v59, %v2492_v25  ;;  %1779 = vpow2.f32 %v1439_v56  ;;  %v2737_v56 = vadd.f32 %v2725_v58, %v693_v57  ;;  %v1440_v31 = vmul.f32 -1.442695, %v2728_v40 }
 0x135   :  { %v1762_v15 = vpop.eup %1761  ;;  %1299 = vst.msk [vmem:[%s2925_s4 + $0x188] sm:$0xff] %vm82_vm0, %v1235_v3  ;;  %v1234_v16 = vmul.f32 %v1760_v19, %v2501_v41  ;;  %1781 = vpow2.f32 %v1406_v27  ;;  %v728_v19 = vmul.f32 %v1870_v48, %v2463_v32  ;;  %v730_v9 = vmul.f32 %v1870_v48, %v2505_v22 }
 0x136   :  { %v1764_v44 = vpop.eup %1763  ;;  %1266 = vst.msk [vmem:[%s2925_s4 + $0x80] sm:$0xff] %vm82_vm0, %v1202_v26  ;;  %v1205_v25 = vmul.f32 %v1762_v15, %v2514_v14  ;;  %1783 = vpow2.f32 %v1438_v5  ;;  %v696_v5 = vmul.f32 %v1870_v48, %v2461_v12  ;;  %v1443_v15 = vmul.f32 -1.442695, %v2734_v28 }
 0x137   :  { %v1766_v33 = vpop.eup %1765  ;;  %1298 = vst.msk [vmem:[%s2925_s4 + $0x180] sm:$0xff] %vm82_vm0, %v1234_v16  ;;  %v1237_v41 = vmul.f32 %v1764_v44, %v2527_v62  ;;  %1785 = vpow2.f32 %v1409_v11  ;;  %v1411_v11 = vmul.f32 -1.442695, %v2731_v6  ;;  %v1410_v44 = vmul.f32 -1.442695, %v2737_v56 }
 0x138   :  { %v1768_v38 = vpop.eup %1767  ;;  %1269 = vst.msk [vmem:[%s2925_s4 + $0x98] sm:$0xff] %vm82_vm0, %v1205_v25  ;;  %v1012_v14 = vadd.f32 1.0, %v1766_v33  ;;  %1787 = vpow2.f32 %v1441_v47  ;;  %v2751_v12 = vadd.f32 %v2725_v58, %v725_v50  ;;  %v2754_v32 = vadd.f32 %v2725_v58, %v696_v5 }
 0x139   :  { %v1770_v52 = vpop.eup %1769  ;;  %1301 = vst.msk [vmem:[%s2925_s4 + $0x198] sm:$0xff] %vm82_vm0, %v1237_v41  ;;  %v1044_v62 = vadd.f32 1.0, %v1768_v38  ;;  %1789 = vpow2.f32 %v1408_v4  ;;  %v727_v41 = vmul.f32 %v1870_v48, %v2473_v13  ;;  %v2758_v42 = vadd.f32 %v2725_v58, %v728_v19 }
 0x13a   :  { %v1772_v21 = vpop.eup %1771  ;;  %1791 = vrcp.f32 %v1012_v14  ;;  %v1015_v45 = vadd.f32 1.0, %v1770_v52  ;;  %v698_v14 = vmul.f32 %v1870_v48, %v2503_v39  ;;  %v697_v57 = vmul.f32 %v1870_v48, %v2516_v18 }
 0x13b   :  { %v1774_v43 = vpop.eup %1773  ;;  %1793 = vrcp.f32 %v1044_v62  ;;  %v1047_v36 = vadd.f32 1.0, %v1772_v21  ;;  %v2763_v62 = vadd.f32 %v2725_v58, %v695_v63  ;;  %v729_v22 = vmul.f32 %v1870_v48, %v2518_v37 }
 0x13c   :  { %v1776_v24 = vpop.eup %1775  ;;  %1795 = vrcp.f32 %v1015_v45  ;;  %v1014_v53 = vadd.f32 1.0, %v1774_v43  ;;  %v1442_v45 = vmul.f32 -1.442695, %v2751_v12 }
 0x13d   :  { %v1778_v60 = vpop.eup %1777  ;;  %1797 = vrcp.f32 %v1047_v36  ;;  %v1046_v1 = vadd.f32 1.0, %v1776_v24  ;;  %v1413_v36 = vmul.f32 -1.442695, %v2754_v32  ;;  %v2785_v24 = vadd.f32 %v2725_v58, %v698_v14 }
 0x13e   :  { %v1780_v0 = vpop.eup %1779  ;;  %1799 = vrcp.f32 %v1014_v53  ;;  %v1017_v46 = vadd.f32 1.0, %v1778_v60  ;;  %v1445_v53 = vmul.f32 -1.442695, %v2758_v42  ;;  %v2794_v60 = vadd.f32 %v2725_v58, %v730_v9 }
 0x13f   :  { %v1782_v27 = vpop.eup %1781  ;;  %1801 = vrcp.f32 %v1046_v1  ;;  %v1049_v49 = vadd.f32 1.0, %v1780_v0  ;;  %v1412_v0 = vmul.f32 -1.442695, %v2763_v62 }
 0x140   :  { %v1784_v59 = vpop.eup %1783  ;;  %1803 = vrcp.f32 %v1017_v46  ;;  %v1016_v3 = vadd.f32 1.0, %v1782_v27  ;;  %v2803_v46 = vadd.f32 %v2725_v58, %v697_v57  ;;  %v2812_v27 = vadd.f32 %v2725_v58, %v729_v22 }
 0x141   :  { %v1786_v26 = vpop.eup %1785  ;;  %1805 = vrcp.f32 %v1049_v49  ;;  %v1048_v47 = vadd.f32 1.0, %v1784_v59 }
 0x142   :  { %v1788_v16 = vpop.eup %1787  ;;  %1807 = vrcp.f32 %v1016_v3  ;;  %v1019_v4 = vadd.f32 1.0, %v1786_v26  ;;  %v1414_v3 = vmul.f32 -1.442695, %v2803_v46  ;;  %v1446_v19 = vmul.f32 -1.442695, %v2812_v27 }
 0x143   :  { %v1790_v25 = vpop.eup %1789  ;;  %1809 = vrcp.f32 %v1048_v47  ;;  %v1051_v33 = vadd.f32 1.0, %v1788_v16 }
 0x144   :  { %v1792_v61 = vpop.eup %1791  ;;  %1811 = vrcp.f32 %v1019_v4  ;;  %v1018_v38 = vadd.f32 1.0, %v1790_v25 }
 0x145   :  { %v1794_v17 = vpop.eup %1793  ;;  %v1204_v52 = vmul.f32 %v1792_v61, %v2580_v2  ;;  %1813 = vrcp.f32 %v1051_v33  ;;  %v2775_v2 = vadd.f32 %v2725_v58, %v727_v41  ;;  %v1447_v58 = vmul.f32 -1.442695, %v2794_v60 }
 0x146   :  { %v1796_v21 = vpop.eup %1795  ;;  %v1236_v13 = vmul.f32 %v1794_v17, %v2585_v8  ;;  %1815 = vrcp.f32 %v1018_v38 }
 0x147   :  { %v1798_v43 = vpop.eup %1797  ;;  %1268 = vst.msk [vmem:[%s2925_s4 + $0x90] sm:$0xff] %vm82_vm0, %v1204_v52  ;;  %v1207_v39 = vmul.f32 %v1796_v21, %v2588_v10  ;;  %1817 = vpow2.f32 %v1440_v31  ;;  %v1444_v50 = vmul.f32 -1.442695, %v2775_v2  ;;  %v1415_v31 = vmul.f32 -1.442695, %v2785_v24 }
 0x148   :  { %v1800_v8 = vpop.eup %1799  ;;  %1300 = vst.msk [vmem:[%s2925_s4 + $0x190] sm:$0xff] %vm82_vm0, %v1236_v13  ;;  %v1239_v18 = vmul.f32 %v1798_v43, %v2591_v51  ;;  %1819 = vpow2.f32 %v1411_v11 }
 0x149   :  { %v1802_v10 = vpop.eup %1801  ;;  %1271 = vst.msk [vmem:[%s2925_s4 + $0xa8] sm:$0xff] %vm82_vm0, %v1207_v39  ;;  %v1206_v37 = vmul.f32 %v1800_v8, %v2595_v23  ;;  %1821 = vpow2.f32 %v1443_v15 }
 0x14a   :  { %v1804_v51 = vpop.eup %1803  ;;  %1303 = vst.msk [vmem:[%s2925_s4 + $0x1a8] sm:$0xff] %vm82_vm0, %v1239_v18  ;;  %v1238_v1 = vmul.f32 %v1802_v10, %v2610_v35  ;;  %1823 = vpow2.f32 %v1410_v44 }
 0x14b   :  { %v1806_v23 = vpop.eup %1805  ;;  %1270 = vst.msk [vmem:[%s2925_s4 + $0xa0] sm:$0xff] %vm82_vm0, %v1206_v37  ;;  %v1209_v48 = vmul.f32 %v1804_v51, %v2616_v20  ;;  %1825 = vpow2.f32 %v1442_v45 }
 0x14c   :  { %v1808_v35 = vpop.eup %1807  ;;  %1302 = vst.msk [vmem:[%s2925_s4 + $0x1a0] sm:$0xff] %vm82_vm0, %v1238_v1  ;;  %v1241_v49 = vmul.f32 %v1806_v23, %v2622_v34  ;;  %1827 = vpow2.f32 %v1413_v36 }
 0x14d   :  { %v1810_v5 = vpop.eup %1809  ;;  %1273 = vst.msk [vmem:[%s2925_s4 + $0xb8] sm:$0xff] %vm82_vm0, %v1209_v48  ;;  %v1208_v20 = vmul.f32 %v1808_v35, %v2632_v29  ;;  %1829 = vpow2.f32 %v1445_v53 }
 0x14e   :  { %v1812_v59 = vpop.eup %1811  ;;  %1305 = vst.msk [vmem:[%s2925_s4 + $0x1b8] sm:$0xff] %vm82_vm0, %v1241_v49  ;;  %v1240_v34 = vmul.f32 %v1810_v5, %v2643_v30  ;;  %1831 = vpow2.f32 %v1412_v0 }
 0x14f   :  { %v1814_v11 = vpop.eup %1813  ;;  %1272 = vst.msk [vmem:[%s2925_s4 + $0xb0] sm:$0xff] %vm82_vm0, %v1208_v20  ;;  %v1211_v29 = vmul.f32 %v1812_v59, %v2652_v54  ;;  %1833 = vpow2.f32 %v1444_v50 }
 0x150   :  { %v1816_v26 = vpop.eup %1815  ;;  %1304 = vst.msk [vmem:[%s2925_s4 + $0x1b0] sm:$0xff] %vm82_vm0, %v1240_v34  ;;  %v1243_v30 = vmul.f32 %v1814_v11, %v2661_v7  ;;  %1835 = vpow2.f32 %v1415_v31 }
 0x151   :  { %v1818_v47 = vpop.eup %1817  ;;  %1275 = vst.msk [vmem:[%s2925_s4 + $0xc8] sm:$0xff] %vm82_vm0, %v1211_v29  ;;  %v1210_v54 = vmul.f32 %v1816_v26, %v2670_v55  ;;  %1837 = vpow2.f32 %v1447_v58 }
 0x152   :  { %v1820_v15 = vpop.eup %1819  ;;  %1307 = vst.msk [vmem:[%s2925_s4 + $0x1c8] sm:$0xff] %vm82_vm0, %v1243_v30  ;;  %v1050_v63 = vadd.f32 1.0, %v1818_v47  ;;  %1839 = vpow2.f32 %v1414_v3 }
 0x153   :  { %v1822_v16 = vpop.eup %1821  ;;  %1274 = vst.msk [vmem:[%s2925_s4 + $0xc0] sm:$0xff] %vm82_vm0, %v1210_v54  ;;  %v1021_v7 = vadd.f32 1.0, %v1820_v15  ;;  %1841 = vpow2.f32 %v1446_v19 }
 0x154   :  { %v1824_v4 = vpop.eup %1823  ;;  %1843 = vrcp.f32 %v1050_v63  ;;  %v1053_v55 = vadd.f32 1.0, %v1822_v16 }
 0x155   :  { %v1826_v44 = vpop.eup %1825  ;;  %1845 = vrcp.f32 %v1021_v7  ;;  %v1020_v25 = vadd.f32 1.0, %v1824_v4 }
 0x156   :  { %v1828_v33 = vpop.eup %1827  ;;  %1847 = vrcp.f32 %v1053_v55  ;;  %v1052_v41 = vadd.f32 1.0, %v1826_v44 }
 0x157   :  { %v1830_v61 = vpop.eup %1829  ;;  %1849 = vrcp.f32 %v1020_v25  ;;  %v1023_v38 = vadd.f32 1.0, %v1828_v33 }
 0x158   :  { %v1832_v14 = vpop.eup %1831  ;;  %1851 = vrcp.f32 %v1052_v41  ;;  %v1055_v17 = vadd.f32 1.0, %v1830_v61 }
 0x159   :  { %v1834_v52 = vpop.eup %1833  ;;  %1853 = vrcp.f32 %v1023_v38  ;;  %v1022_v9 = vadd.f32 1.0, %v1832_v14 }
 0x15a   :  { %v1836_v21 = vpop.eup %1835  ;;  %1855 = vrcp.f32 %v1055_v17  ;;  %v1054_v13 = vadd.f32 1.0, %v1834_v52 }
 0x15b   :  { %v1838_v45 = vpop.eup %1837  ;;  %1857 = vrcp.f32 %v1022_v9  ;;  %v1025_v57 = vadd.f32 1.0, %v1836_v21 }
 0x15c   :  { %v1840_v43 = vpop.eup %1839  ;;  %1859 = vrcp.f32 %v1054_v13  ;;  %v1057_v39 = vadd.f32 1.0, %v1838_v45 }
 0x15d   :  { %v1842_v22 = vpop.eup %1841  ;;  %1861 = vrcp.f32 %v1025_v57  ;;  %v1024_v8 = vadd.f32 1.0, %v1840_v43 }
 0x15e   :  { %v1844_v18 = vpop.eup %1843  ;;  %1863 = vrcp.f32 %v1057_v39  ;;  %v1056_v36 = vadd.f32 1.0, %v1842_v22 }
 0x15f   :  { %v1846_v10 = vpop.eup %1845  ;;  %v1242_v37 = vmul.f32 %v1844_v18, %v2728_v40  ;;  %1865 = vrcp.f32 %v1024_v8 }
 0x160   :  { %v1848_v53 = vpop.eup %1847  ;;  %v1213_v51 = vmul.f32 %v1846_v10, %v2731_v6  ;;  %1867 = vrcp.f32 %v1056_v36 }
 0x161   :  { %v1850_v1 = vpop.eup %1849  ;;  %1306 = vst.msk [vmem:[%s2925_s4 + $0x1c0] sm:$0xff] %vm82_vm0, %v1242_v37  ;;  %v1245_v0 = vmul.f32 %v1848_v53, %v2734_v28 }
 0x162   :  { %v1852_v23 = vpop.eup %1851  ;;  %1277 = vst.msk [vmem:[%s2925_s4 + $0xd8] sm:$0xff] %vm82_vm0, %v1213_v51  ;;  %v1212_v40 = vmul.f32 %v1850_v1, %v2737_v56 }
 0x163   :  { %v1854_v48 = vpop.eup %1853  ;;  %1309 = vst.msk [vmem:[%s2925_s4 + $0x1d8] sm:$0xff] %vm82_vm0, %v1245_v0  ;;  %v1244_v6 = vmul.f32 %v1852_v23, %v2751_v12 }
 0x164   :  { %v1856_v50 = vpop.eup %1855  ;;  %1276 = vst.msk [vmem:[%s2925_s4 + $0xd0] sm:$0xff] %vm82_vm0, %v1212_v40  ;;  %v1215_v28 = vmul.f32 %v1854_v48, %v2754_v32 }
 0x165   :  { %v1858_v35 = vpop.eup %1857  ;;  %1308 = vst.msk [vmem:[%s2925_s4 + $0x1d0] sm:$0xff] %vm82_vm0, %v1244_v6  ;;  %v1247_v56 = vmul.f32 %v1856_v50, %v2758_v42 }
 0x166   :  { %v1860_v49 = vpop.eup %1859  ;;  %1279 = vst.msk [vmem:[%s2925_s4 + $0xe8] sm:$0xff] %vm82_vm0, %v1215_v28  ;;  %v1214_v12 = vmul.f32 %v1858_v35, %v2763_v62 }
 0x167   :  { %v1862_v31 = vpop.eup %1861  ;;  %1311 = vst.msk [vmem:[%s2925_s4 + $0x1e8] sm:$0xff] %vm82_vm0, %v1247_v56  ;;  %v1246_v32 = vmul.f32 %v1860_v49, %v2775_v2 }
 0x168   :  { %v1864_v5 = vpop.eup %1863  ;;  %1278 = vst.msk [vmem:[%s2925_s4 + $0xe0] sm:$0xff] %vm82_vm0, %v1214_v12  ;;  %v1217_v42 = vmul.f32 %v1862_v31, %v2785_v24 }
 0x169   :  { %v1866_v20 = vpop.eup %1865  ;;  %1310 = vst.msk [vmem:[%s2925_s4 + $0x1e0] sm:$0xff] %vm82_vm0, %v1246_v32  ;;  %v1249_v62 = vmul.f32 %v1864_v5, %v2794_v60 }
 0x16a   :  { %v1868_v58 = vpop.eup %1867  ;;  %1281 = vst.msk [vmem:[%s2925_s4 + $0xf8] sm:$0xff] %vm82_vm0, %v1217_v42  ;;  %v1216_v2 = vmul.f32 %v1866_v20, %v2803_v46 }
 0x16b   :  { %1313 = vst.msk [vmem:[%s2925_s4 + $0x1f8] sm:$0xff] %vm82_vm0, %v1249_v62  ;;  %v1248_v24 = vmul.f32 %v1868_v58, %v2812_v27 }
 0x16c   :  { %1280 = vst.msk [vmem:[%s2925_s4 + $0xf0] sm:$0xff] %vm82_vm0, %v1216_v2 }
 0x16d   :  { %1312 = vst.msk [vmem:[%s2925_s4 + $0x1f0] sm:$0xff] %vm82_vm0, %v1248_v24 }

// kernel: c2f_forward.7
= control target key start
LH: loop header
LB: loop body
LE: loop exit
PB: predicated region body
PF: predicated region fallthrough
CT: control target
= control target key end

     0   :  { %vm346_vm0 = vcmask 1043456   ;;  %vm153_vm1 = vcmask 31744   ;;  %vm735_vm2 = vcmask 64512   ;;  %s5368_s3 = inlined_call_operand.vmem [shape: f32[16,8], index: 3, kind: input, shape index: {}]   ;;  %s5369_s1 = inlined_call_operand.vmem [shape: f32[512,4], index: 1, kind: input, shape index: {}]   ;;  %s5370_s0 = inlined_call_operand.vmem [shape: f32[512,8], index: 0, kind: input, shape index: {}]   ;;  %s5371_s2 = inlined_call_operand.vmem [shape: f32[512,4], index: 2, kind: input, shape index: {}]   ;;  %s5372_s4 = inlined_call_operand.vmem [shape: f32[1,8], index: 4, kind: input, shape index: {}]   ;;  %s5373_s5 = inlined_call_operand.vmem [shape: f32[1,8], index: 5, kind: input, shape index: {}]   ;;  %s5374_s6 = inlined_call_operand.vmem [shape: f32[512,8], index: 6, kind: output, shape index: {}]  }
   0x1   :  { %v152_v0 = vld [vmem:[%s5368_s3 + $0x8] sm:$0xf]  ;;  %v87_v1 = vld [vmem:[%s5368_s3] sm:$0xff]  ;;  %v1377_v6 = vld [vmem:[%s5368_s3 + $0xc] sm:$0xf] }
   0x2   :  { %v88_v2 = vld [vmem:[%s5369_s1] sm:$0xff]  ;;  %3135 = vmatprep.subr.msk.mxu1 %vm346_vm0, %v152_v0  ;;  %3233 = vmatprep.subr.mxu0 %v87_v1  ;;  %v89_v4 = vld [vmem:[%s5369_s1 + $0x8] sm:$0xff]  ;;  %v90_v7 = vld [vmem:[%s5369_s1 + $0x10] sm:$0xff] }
   0x3   :  { %v23_v3 = vld [vmem:[%s5370_s0] sm:$0xff]  ;;  %3136 = vmatpush3.msk.msra.mxu1 %vm346_vm0, %v152_v0  ;;  %3137 = vmatprep.mubr.msk.f32.mxu1 %vm153_vm1, %v88_v2  ;;  %v24_v5 = vld [vmem:[%s5370_s0 + $0x8] sm:$0xff]  ;;  %v25_v8 = vld [vmem:[%s5370_s0 + $0x10] sm:$0xff] }
   0x4   :  { %3234 = vmatpush3.msra.mxu0 %v87_v1  ;;  %3235 = vmatprep.mubr.msk.f32.mxu0 %vm735_vm2, %v23_v3  ;;  %v91_v9 = vld [vmem:[%s5369_s1 + $0x18] sm:$0xff]  ;;  %v92_v11 = vld [vmem:[%s5369_s1 + $0x20] sm:$0xff]  ;;  %v93_v13 = vld [vmem:[%s5369_s1 + $0x28] sm:$0xff] }
   0x5   :  { %3138 = vmatmul.mubr.msk.f32.vlgmr.msra.gmra.mrb[0].mxu1 %vm153_vm1, %v89_v4  ;;  %3429 = vmatprep.subr.mxu1 %v87_v1  ;;  %v26_v10 = vld [vmem:[%s5370_s0 + $0x18] sm:$0xff]  ;;  %v27_v12 = vld [vmem:[%s5370_s0 + $0x20] sm:$0xff]  ;;  %v28_v14 = vld [vmem:[%s5370_s0 + $0x28] sm:$0xff] }
   0x6   :  { %3236 = vmatmul.mubr.msk.f32.vlgmr.msra.gmra.mrb[0].mxu0 %vm735_vm2, %v24_v5  ;;  %3331 = vmatprep.subr.msk.mxu0 %vm346_vm0, %v1377_v6  ;;  %v94_v15 = vld [vmem:[%s5369_s1 + $0x30] sm:$0xff]  ;;  %v95_v17 = vld [vmem:[%s5369_s1 + $0x38] sm:$0xff]  ;;  %v96_v19 = vld [vmem:[%s5369_s1 + $0x40] sm:$0xff] }
   0x7   :  { %3430 = vmatpush3.msra.mxu1 %v87_v1  ;;  %3332 = vmatpush3.msk.msra.mxu0 %vm346_vm0, %v1377_v6  ;;  %v29_v16 = vld [vmem:[%s5370_s0 + $0x30] sm:$0xff]  ;;  %v30_v18 = vld [vmem:[%s5370_s0 + $0x38] sm:$0xff]  ;;  %v31_v20 = vld [vmem:[%s5370_s0 + $0x40] sm:$0xff] }
   0x8   :  { %3140 = vmatprep.mubr.msk.f32.mxu1 %vm153_vm1, %v90_v7  ;;  %3238 = vmatprep.mubr.msk.f32.mxu0 %vm735_vm2, %v25_v8  ;;  %v97_v21 = vld [vmem:[%s5369_s1 + $0x48] sm:$0xff]  ;;  %v98_v23 = vld [vmem:[%s5369_s1 + $0x50] sm:$0xff]  ;;  %v99_v25 = vld [vmem:[%s5369_s1 + $0x58] sm:$0xff] }
   0x9   :  { %3141 = vmatmul.mubr.msk.f32.gmra.mrb[2].mxu1 %vm153_vm1, %v91_v9  ;;  %v32_v22 = vld [vmem:[%s5370_s0 + $0x48] sm:$0xff]  ;;  %v33_v24 = vld [vmem:[%s5370_s0 + $0x50] sm:$0xff]  ;;  %v34_v26 = vld [vmem:[%s5370_s0 + $0x58] sm:$0xff] }
   0xa   :  { %3239 = vmatmul.mubr.msk.f32.gmra.mrb[2].mxu0 %vm735_vm2, %v26_v10  ;;  %3143 = vmatprep.mubr.msk.f32.mxu1 %vm153_vm1, %v92_v11  ;;  %v100_v27 = vld [vmem:[%s5369_s1 + $0x60] sm:$0xff]  ;;  %v101_v29 = vld [vmem:[%s5369_s1 + $0x68] sm:$0xff]  ;;  %v102_v31 = vld [vmem:[%s5369_s1 + $0x70] sm:$0xff] }
   0xb   :  { %3241 = vmatprep.mubr.msk.f32.mxu0 %vm735_vm2, %v27_v12  ;;  %v35_v28 = vld [vmem:[%s5370_s0 + $0x60] sm:$0xff]  ;;  %v36_v30 = vld [vmem:[%s5370_s0 + $0x68] sm:$0xff]  ;;  %v37_v32 = vld [vmem:[%s5370_s0 + $0x70] sm:$0xff] }
   0xc   :  { %v103_v33 = vld [vmem:[%s5369_s1 + $0x78] sm:$0xff]  ;;  %v104_v35 = vld [vmem:[%s5369_s1 + $0x80] sm:$0xff]  ;;  %v105_v37 = vld [vmem:[%s5369_s1 + $0x88] sm:$0xff] }
   0xd   :  { %3144 = vmatmul.mubr.msk.f32.gmra.mrb[4].mxu1 %vm153_vm1, %v93_v13  ;;  %v38_v34 = vld [vmem:[%s5370_s0 + $0x78] sm:$0xff]  ;;  %v39_v36 = vld [vmem:[%s5370_s0 + $0x80] sm:$0xff]  ;;  %v40_v38 = vld [vmem:[%s5370_s0 + $0x88] sm:$0xff] }
   0xe   :  { %3242 = vmatmul.mubr.msk.f32.gmra.mrb[4].mxu0 %vm735_vm2, %v28_v14  ;;  %3146 = vmatprep.mubr.msk.f32.mxu1 %vm153_vm1, %v94_v15  ;;  %v106_v39 = vld [vmem:[%s5369_s1 + $0x90] sm:$0xff]  ;;  %v107_v41 = vld [vmem:[%s5369_s1 + $0x98] sm:$0xff]  ;;  %v108_v43 = vld [vmem:[%s5369_s1 + $0xa0] sm:$0xff] }
   0xf   :  { %3244 = vmatprep.mubr.msk.f32.mxu0 %vm735_vm2, %v29_v16  ;;  %v41_v40 = vld [vmem:[%s5370_s0 + $0x90] sm:$0xff]  ;;  %v42_v42 = vld [vmem:[%s5370_s0 + $0x98] sm:$0xff]  ;;  %v43_v44 = vld [vmem:[%s5370_s0 + $0xa0] sm:$0xff] }
  0x10   :  { %v109_v45 = vld [vmem:[%s5369_s1 + $0xa8] sm:$0xff]  ;;  %v110_v47 = vld [vmem:[%s5369_s1 + $0xb0] sm:$0xff]  ;;  %v111_v49 = vld [vmem:[%s5369_s1 + $0xb8] sm:$0xff] }
  0x11   :  { %3147 = vmatmul.mubr.msk.f32.gmra.mrb[6].mxu1 %vm153_vm1, %v95_v17  ;;  %v44_v46 = vld [vmem:[%s5370_s0 + $0xa8] sm:$0xff]  ;;  %v45_v48 = vld [vmem:[%s5370_s0 + $0xb0] sm:$0xff]  ;;  %v46_v50 = vld [vmem:[%s5370_s0 + $0xb8] sm:$0xff] }
  0x12   :  { %3245 = vmatmul.mubr.msk.f32.gmra.mrb[6].mxu0 %vm735_vm2, %v30_v18  ;;  %3149 = vmatprep.mubr.msk.f32.mxu1 %vm153_vm1, %v96_v19  ;;  %v112_v51 = vld [vmem:[%s5369_s1 + $0xc0] sm:$0xff]  ;;  %v113_v53 = vld [vmem:[%s5369_s1 + $0xc8] sm:$0xff]  ;;  %v114_v55 = vld [vmem:[%s5369_s1 + $0xd0] sm:$0xff] }
  0x13   :  { %3247 = vmatprep.mubr.msk.f32.mxu0 %vm735_vm2, %v31_v20  ;;  %v47_v52 = vld [vmem:[%s5370_s0 + $0xc0] sm:$0xff]  ;;  %v48_v54 = vld [vmem:[%s5370_s0 + $0xc8] sm:$0xff]  ;;  %v49_v56 = vld [vmem:[%s5370_s0 + $0xd0] sm:$0xff] }
  0x14   :  { %v115_v57 = vld [vmem:[%s5369_s1 + $0xd8] sm:$0xff]  ;;  %v116_v59 = vld [vmem:[%s5369_s1 + $0xe0] sm:$0xff]  ;;  %v117_v61 = vld [vmem:[%s5369_s1 + $0xe8] sm:$0xff] }
  0x15   :  { %3150 = vmatmul.mubr.msk.f32.gmra.mrb[8].mxu1 %vm153_vm1, %v97_v21  ;;  %v50_v58 = vld [vmem:[%s5370_s0 + $0xd8] sm:$0xff]  ;;  %v51_v60 = vld [vmem:[%s5370_s0 + $0xe0] sm:$0xff]  ;;  %v52_v62 = vld [vmem:[%s5370_s0 + $0xe8] sm:$0xff] }
  0x16   :  { %3248 = vmatmul.mubr.msk.f32.gmra.mrb[8].mxu0 %vm735_vm2, %v32_v22  ;;  %3152 = vmatprep.mubr.msk.f32.mxu1 %vm153_vm1, %v98_v23  ;;  %v118_v63 = vld [vmem:[%s5369_s1 + $0xf0] sm:$0xff]  ;;  %v119_v1 = vld [vmem:[%s5369_s1 + $0xf8] sm:$0xff]  ;;  %v120_v3 = vld [vmem:[%s5369_s1 + $0x100] sm:$0xff] }
  0x17   :  { %3250 = vmatprep.mubr.msk.f32.mxu0 %vm735_vm2, %v33_v24  ;;  %v53_v0 = vld [vmem:[%s5370_s0 + $0xf0] sm:$0xff]  ;;  %v54_v2 = vld [vmem:[%s5370_s0 + $0xf8] sm:$0xff]  ;;  %v1313_v4 = vld [vmem:[%s5371_s2] sm:$0xff] }
  0x18   :  { %v121_v5 = vld [vmem:[%s5369_s1 + $0x108] sm:$0xff]  ;;  %v122_v7 = vld [vmem:[%s5369_s1 + $0x110] sm:$0xff]  ;;  %v123_v9 = vld [vmem:[%s5369_s1 + $0x118] sm:$0xff] }
  0x19   :  { %3153 = vmatmul.mubr.msk.f32.gmra.mrb[10].mxu1 %vm153_vm1, %v99_v25  ;;  %v1314_v6 = vld [vmem:[%s5371_s2 + $0x8] sm:$0xff]  ;;  %v1315_v8 = vld [vmem:[%s5371_s2 + $0x10] sm:$0xff]  ;;  %v1316_v10 = vld [vmem:[%s5371_s2 + $0x18] sm:$0xff] }
  0x1a   :  { %3251 = vmatmul.mubr.msk.f32.gmra.mrb[10].mxu0 %vm735_vm2, %v34_v26  ;;  %3155 = vmatprep.mubr.msk.f32.mxu1 %vm153_vm1, %v100_v27  ;;  %v124_v11 = vld [vmem:[%s5369_s1 + $0x120] sm:$0xff]  ;;  %v125_v13 = vld [vmem:[%s5369_s1 + $0x128] sm:$0xff]  ;;  %v126_v15 = vld [vmem:[%s5369_s1 + $0x130] sm:$0xff] }
  0x1b   :  { %3253 = vmatprep.mubr.msk.f32.mxu0 %vm735_vm2, %v35_v28  ;;  %v1317_v12 = vld [vmem:[%s5371_s2 + $0x20] sm:$0xff]  ;;  %v1318_v14 = vld [vmem:[%s5371_s2 + $0x28] sm:$0xff]  ;;  %v1319_v16 = vld [vmem:[%s5371_s2 + $0x30] sm:$0xff] }
  0x1c   :  { %v127_v17 = vld [vmem:[%s5369_s1 + $0x138] sm:$0xff]  ;;  %v128_v19 = vld [vmem:[%s5369_s1 + $0x140] sm:$0xff]  ;;  %v129_v21 = vld [vmem:[%s5369_s1 + $0x148] sm:$0xff] }
  0x1d   :  { %3156 = vmatmul.mubr.msk.f32.gmra.mrb[12].mxu1 %vm153_vm1, %v101_v29  ;;  %v1320_v18 = vld [vmem:[%s5371_s2 + $0x38] sm:$0xff]  ;;  %v1321_v20 = vld [vmem:[%s5371_s2 + $0x40] sm:$0xff]  ;;  %v1322_v22 = vld [vmem:[%s5371_s2 + $0x48] sm:$0xff] }
  0x1e   :  { %3254 = vmatmul.mubr.msk.f32.gmra.mrb[12].mxu0 %vm735_vm2, %v36_v30  ;;  %3158 = vmatprep.mubr.msk.f32.mxu1 %vm153_vm1, %v102_v31  ;;  %v130_v23 = vld [vmem:[%s5369_s1 + $0x150] sm:$0xff]  ;;  %v131_v25 = vld [vmem:[%s5369_s1 + $0x158] sm:$0xff]  ;;  %v132_v27 = vld [vmem:[%s5369_s1 + $0x160] sm:$0xff] }
  0x1f   :  { %3256 = vmatprep.mubr.msk.f32.mxu0 %vm735_vm2, %v37_v32  ;;  %v1323_v24 = vld [vmem:[%s5371_s2 + $0x50] sm:$0xff]  ;;  %v1324_v26 = vld [vmem:[%s5371_s2 + $0x58] sm:$0xff]  ;;  %v1325_v28 = vld [vmem:[%s5371_s2 + $0x60] sm:$0xff] }
  0x20   :  { %v133_v29 = vld [vmem:[%s5369_s1 + $0x168] sm:$0xff]  ;;  %v134_v31 = vld [vmem:[%s5369_s1 + $0x170] sm:$0xff] }
  0x21   :  { %3159 = vmatmul.mubr.msk.f32.gmra.mrb[14].mxu1 %vm153_vm1, %v103_v33  ;;  %v1326_v30 = vld [vmem:[%s5371_s2 + $0x68] sm:$0xff]  ;;  %v1327_v32 = vld [vmem:[%s5371_s2 + $0x70] sm:$0xff]  ;;  %v135_v33 = vld [vmem:[%s5369_s1 + $0x178] sm:$0xff] }
  0x22   :  { %3257 = vmatmul.mubr.msk.f32.gmra.mrb[14].mxu0 %vm735_vm2, %v38_v34  ;;  %3161 = vmatprep.mubr.msk.f32.mxu1 %vm153_vm1, %v104_v35  ;;  %v1328_v34 = vld [vmem:[%s5371_s2 + $0x78] sm:$0xff]  ;;  %v136_v35 = vld [vmem:[%s5369_s1 + $0x180] sm:$0xff] }
  0x23   :  { %3259 = vmatprep.mubr.msk.f32.mxu0 %vm735_vm2, %v39_v36  ;;  %v1329_v36 = vld [vmem:[%s5371_s2 + $0x80] sm:$0xff] }
  0x25   :  { %3162 = vmatmul.mubr.msk.f32.gmra.mrb[16].mxu1 %vm153_vm1, %v105_v37  ;;  %v137_v37 = vld [vmem:[%s5369_s1 + $0x188] sm:$0xff] }
  0x26   :  { %3260 = vmatmul.mubr.msk.f32.gmra.mrb[16].mxu0 %vm735_vm2, %v40_v38  ;;  %3164 = vmatprep.mubr.msk.f32.mxu1 %vm153_vm1, %v106_v39  ;;  %v1330_v38 = vld [vmem:[%s5371_s2 + $0x88] sm:$0xff]  ;;  %v138_v39 = vld [vmem:[%s5369_s1 + $0x190] sm:$0xff] }
  0x27   :  { %3262 = vmatprep.mubr.msk.f32.mxu0 %vm735_vm2, %v41_v40  ;;  %v1331_v40 = vld [vmem:[%s5371_s2 + $0x90] sm:$0xff] }
  0x29   :  { %3165 = vmatmul.mubr.msk.f32.gmra.mrb[18].mxu1 %vm153_vm1, %v107_v41  ;;  %v139_v41 = vld [vmem:[%s5369_s1 + $0x198] sm:$0xff] }
  0x2a   :  { %3263 = vmatmul.mubr.msk.f32.gmra.mrb[18].mxu0 %vm735_vm2, %v42_v42  ;;  %3167 = vmatprep.mubr.msk.f32.mxu1 %vm153_vm1, %v108_v43  ;;  %v1332_v42 = vld [vmem:[%s5371_s2 + $0x98] sm:$0xff]  ;;  %v140_v43 = vld [vmem:[%s5369_s1 + $0x1a0] sm:$0xff] }
  0x2b   :  { %3265 = vmatprep.mubr.msk.f32.mxu0 %vm735_vm2, %v43_v44  ;;  %v1333_v44 = vld [vmem:[%s5371_s2 + $0xa0] sm:$0xff] }
  0x2d   :  { %3168 = vmatmul.mubr.msk.f32.gmra.mrb[20].mxu1 %vm153_vm1, %v109_v45  ;;  %v141_v45 = vld [vmem:[%s5369_s1 + $0x1a8] sm:$0xff] }
  0x2e   :  { %3266 = vmatmul.mubr.msk.f32.gmra.mrb[20].mxu0 %vm735_vm2, %v44_v46  ;;  %3170 = vmatprep.mubr.msk.f32.mxu1 %vm153_vm1, %v110_v47  ;;  %v1334_v46 = vld [vmem:[%s5371_s2 + $0xa8] sm:$0xff]  ;;  %v142_v47 = vld [vmem:[%s5369_s1 + $0x1b0] sm:$0xff] }
  0x2f   :  { %3268 = vmatprep.mubr.msk.f32.mxu0 %vm735_vm2, %v45_v48  ;;  %v1335_v48 = vld [vmem:[%s5371_s2 + $0xb0] sm:$0xff] }
  0x31   :  { %3171 = vmatmul.mubr.msk.f32.gmra.mrb[22].mxu1 %vm153_vm1, %v111_v49  ;;  %v143_v49 = vld [vmem:[%s5369_s1 + $0x1b8] sm:$0xff] }
  0x32   :  { %3269 = vmatmul.mubr.msk.f32.gmra.mrb[22].mxu0 %vm735_vm2, %v46_v50  ;;  %3173 = vmatprep.mubr.msk.f32.mxu1 %vm153_vm1, %v112_v51  ;;  %v1336_v50 = vld [vmem:[%s5371_s2 + $0xb8] sm:$0xff]  ;;  %v144_v51 = vld [vmem:[%s5369_s1 + $0x1c0] sm:$0xff] }
  0x33   :  { %3271 = vmatprep.mubr.msk.f32.mxu0 %vm735_vm2, %v47_v52  ;;  %v1337_v52 = vld [vmem:[%s5371_s2 + $0xc0] sm:$0xff] }
  0x35   :  { %3174 = vmatmul.mubr.msk.f32.gmra.mrb[24].mxu1 %vm153_vm1, %v113_v53  ;;  %v145_v53 = vld [vmem:[%s5369_s1 + $0x1c8] sm:$0xff] }
  0x36   :  { %3272 = vmatmul.mubr.msk.f32.gmra.mrb[24].mxu0 %vm735_vm2, %v48_v54  ;;  %3176 = vmatprep.mubr.msk.f32.mxu1 %vm153_vm1, %v114_v55  ;;  %v1338_v54 = vld [vmem:[%s5371_s2 + $0xc8] sm:$0xff]  ;;  %v146_v55 = vld [vmem:[%s5369_s1 + $0x1d0] sm:$0xff] }
  0x37   :  { %3274 = vmatprep.mubr.msk.f32.mxu0 %vm735_vm2, %v49_v56  ;;  %v1339_v56 = vld [vmem:[%s5371_s2 + $0xd0] sm:$0xff] }
  0x39   :  { %3177 = vmatmul.mubr.msk.f32.gmra.mrb[26].mxu1 %vm153_vm1, %v115_v57  ;;  %v147_v57 = vld [vmem:[%s5369_s1 + $0x1d8] sm:$0xff] }
  0x3a   :  { %3275 = vmatmul.mubr.msk.f32.gmra.mrb[26].mxu0 %vm735_vm2, %v50_v58  ;;  %3179 = vmatprep.mubr.msk.f32.mxu1 %vm153_vm1, %v116_v59  ;;  %v1340_v58 = vld [vmem:[%s5371_s2 + $0xd8] sm:$0xff]  ;;  %v148_v59 = vld [vmem:[%s5369_s1 + $0x1e0] sm:$0xff] }
  0x3b   :  { %3277 = vmatprep.mubr.msk.f32.mxu0 %vm735_vm2, %v51_v60  ;;  %v1341_v60 = vld [vmem:[%s5371_s2 + $0xe0] sm:$0xff] }
  0x3d   :  { %3180 = vmatmul.mubr.msk.f32.gmra.mrb[28].mxu1 %vm153_vm1, %v117_v61  ;;  %v149_v61 = vld [vmem:[%s5369_s1 + $0x1e8] sm:$0xff] }
  0x3e   :  { %3278 = vmatmul.mubr.msk.f32.gmra.mrb[28].mxu0 %vm735_vm2, %v52_v62  ;;  %3182 = vmatprep.mubr.msk.f32.mxu1 %vm153_vm1, %v118_v63  ;;  %v1342_v62 = vld [vmem:[%s5371_s2 + $0xe8] sm:$0xff]  ;;  %v150_v63 = vld [vmem:[%s5369_s1 + $0x1f0] sm:$0xff] }
  0x3f   :  { %3280 = vmatprep.mubr.msk.f32.mxu0 %vm735_vm2, %v53_v0  ;;  %v1343_v0 = vld [vmem:[%s5371_s2 + $0xf0] sm:$0xff] }
  0x41   :  { %3183 = vmatmul.mubr.msk.f32.gmra.mrb[30].mxu1 %vm153_vm1, %v119_v1  ;;  %v151_v1 = vld [vmem:[%s5369_s1 + $0x1f8] sm:$0xff] }
  0x42   :  { %3281 = vmatmul.mubr.msk.f32.gmra.mrb[30].mxu0 %vm735_vm2, %v54_v2  ;;  %3185 = vmatprep.mubr.msk.f32.mxu1 %vm153_vm1, %v120_v3  ;;  %v1344_v2 = vld [vmem:[%s5371_s2 + $0xf8] sm:$0xff]  ;;  %v55_v3 = vld [vmem:[%s5370_s0 + $0x100] sm:$0xff] }
  0x43   :  { %3333 = vmatprep.mubr.msk.f32.mxu0 %vm153_vm1, %v1313_v4  ;;  %v1345_v4 = vld [vmem:[%s5371_s2 + $0x100] sm:$0xff] }
  0x45   :  { %3186 = vmatmul.mubr.msk.f32.gmra.mrb[32].mxu1 %vm153_vm1, %v121_v5  ;;  %v56_v5 = vld [vmem:[%s5370_s0 + $0x108] sm:$0xff] }
  0x46   :  { %3334 = vmatmul.mubr.msk.f32.vlgmr.msra.gmra.mrb[0].mxu0 %vm153_vm1, %v1314_v6  ;;  %3188 = vmatprep.mubr.msk.f32.mxu1 %vm153_vm1, %v122_v7  ;;  %v1346_v6 = vld [vmem:[%s5371_s2 + $0x108] sm:$0xff]  ;;  %v57_v7 = vld [vmem:[%s5370_s0 + $0x110] sm:$0xff] }
  0x47   :  { %3336 = vmatprep.mubr.msk.f32.mxu0 %vm153_vm1, %v1315_v8  ;;  %v1347_v8 = vld [vmem:[%s5371_s2 + $0x110] sm:$0xff] }
  0x49   :  { %3189 = vmatmul.mubr.msk.f32.gmra.mrb[34].mxu1 %vm153_vm1, %v123_v9  ;;  %v58_v9 = vld [vmem:[%s5370_s0 + $0x118] sm:$0xff] }
  0x4a   :  { %3337 = vmatmul.mubr.msk.f32.gmra.mrb[2].mxu0 %vm153_vm1, %v1316_v10  ;;  %3191 = vmatprep.mubr.msk.f32.mxu1 %vm153_vm1, %v124_v11  ;;  %v1348_v10 = vld [vmem:[%s5371_s2 + $0x118] sm:$0xff]  ;;  %v59_v11 = vld [vmem:[%s5370_s0 + $0x120] sm:$0xff] }
  0x4b   :  { %3339 = vmatprep.mubr.msk.f32.mxu0 %vm153_vm1, %v1317_v12  ;;  %v1349_v12 = vld [vmem:[%s5371_s2 + $0x120] sm:$0xff] }
  0x4d   :  { %3192 = vmatmul.mubr.msk.f32.gmra.mrb[36].mxu1 %vm153_vm1, %v125_v13  ;;  %v60_v13 = vld [vmem:[%s5370_s0 + $0x128] sm:$0xff] }
  0x4e   :  { %3340 = vmatmul.mubr.msk.f32.gmra.mrb[4].mxu0 %vm153_vm1, %v1318_v14  ;;  %3194 = vmatprep.mubr.msk.f32.mxu1 %vm153_vm1, %v126_v15  ;;  %v1350_v14 = vld [vmem:[%s5371_s2 + $0x128] sm:$0xff]  ;;  %v61_v15 = vld [vmem:[%s5370_s0 + $0x130] sm:$0xff] }
  0x4f   :  { %3342 = vmatprep.mubr.msk.f32.mxu0 %vm153_vm1, %v1319_v16  ;;  %v1351_v16 = vld [vmem:[%s5371_s2 + $0x130] sm:$0xff] }
  0x51   :  { %3195 = vmatmul.mubr.msk.f32.gmra.mrb[38].mxu1 %vm153_vm1, %v127_v17  ;;  %v62_v17 = vld [vmem:[%s5370_s0 + $0x138] sm:$0xff] }
  0x52   :  { %3343 = vmatmul.mubr.msk.f32.gmra.mrb[6].mxu0 %vm153_vm1, %v1320_v18  ;;  %3197 = vmatprep.mubr.msk.f32.mxu1 %vm153_vm1, %v128_v19  ;;  %v1352_v18 = vld [vmem:[%s5371_s2 + $0x138] sm:$0xff]  ;;  %v63_v19 = vld [vmem:[%s5370_s0 + $0x140] sm:$0xff] }
  0x53   :  { %3345 = vmatprep.mubr.msk.f32.mxu0 %vm153_vm1, %v1321_v20  ;;  %v1353_v20 = vld [vmem:[%s5371_s2 + $0x140] sm:$0xff] }
  0x55   :  { %3198 = vmatmul.mubr.msk.f32.gmra.mrb[40].mxu1 %vm153_vm1, %v129_v21  ;;  %v64_v21 = vld [vmem:[%s5370_s0 + $0x148] sm:$0xff] }
  0x56   :  { %3346 = vmatmul.mubr.msk.f32.gmra.mrb[8].mxu0 %vm153_vm1, %v1322_v22  ;;  %3200 = vmatprep.mubr.msk.f32.mxu1 %vm153_vm1, %v130_v23  ;;  %v1354_v22 = vld [vmem:[%s5371_s2 + $0x148] sm:$0xff]  ;;  %v65_v23 = vld [vmem:[%s5370_s0 + $0x150] sm:$0xff] }
  0x57   :  { %3348 = vmatprep.mubr.msk.f32.mxu0 %vm153_vm1, %v1323_v24  ;;  %v1355_v24 = vld [vmem:[%s5371_s2 + $0x150] sm:$0xff] }
  0x59   :  { %3201 = vmatmul.mubr.msk.f32.gmra.mrb[42].mxu1 %vm153_vm1, %v131_v25  ;;  %v66_v25 = vld [vmem:[%s5370_s0 + $0x158] sm:$0xff] }
  0x5a   :  { %3349 = vmatmul.mubr.msk.f32.gmra.mrb[10].mxu0 %vm153_vm1, %v1324_v26  ;;  %3203 = vmatprep.mubr.msk.f32.mxu1 %vm153_vm1, %v132_v27  ;;  %v1356_v26 = vld [vmem:[%s5371_s2 + $0x158] sm:$0xff]  ;;  %v67_v27 = vld [vmem:[%s5370_s0 + $0x160] sm:$0xff] }
  0x5b   :  { %3351 = vmatprep.mubr.msk.f32.mxu0 %vm153_vm1, %v1325_v28  ;;  %v1357_v28 = vld [vmem:[%s5371_s2 + $0x160] sm:$0xff] }
  0x5d   :  { %3204 = vmatmul.mubr.msk.f32.gmra.mrb[44].mxu1 %vm153_vm1, %v133_v29  ;;  %v68_v29 = vld [vmem:[%s5370_s0 + $0x168] sm:$0xff] }
  0x5e   :  { %3352 = vmatmul.mubr.msk.f32.gmra.mrb[12].mxu0 %vm153_vm1, %v1326_v30  ;;  %3206 = vmatprep.mubr.msk.f32.mxu1 %vm153_vm1, %v134_v31  ;;  %v1358_v30 = vld [vmem:[%s5371_s2 + $0x168] sm:$0xff]  ;;  %v69_v31 = vld [vmem:[%s5370_s0 + $0x170] sm:$0xff] }
  0x5f   :  { %3354 = vmatprep.mubr.msk.f32.mxu0 %vm153_vm1, %v1327_v32  ;;  %v1359_v32 = vld [vmem:[%s5371_s2 + $0x170] sm:$0xff] }
  0x61   :  { %3207 = vmatmul.mubr.msk.f32.gmra.mrb[46].mxu1 %vm153_vm1, %v135_v33  ;;  %v70_v33 = vld [vmem:[%s5370_s0 + $0x178] sm:$0xff] }
  0x62   :  { %3355 = vmatmul.mubr.msk.f32.gmra.mrb[14].mxu0 %vm153_vm1, %v1328_v34  ;;  %3209 = vmatprep.mubr.msk.f32.mxu1 %vm153_vm1, %v136_v35  ;;  %v1360_v34 = vld [vmem:[%s5371_s2 + $0x178] sm:$0xff]  ;;  %v71_v35 = vld [vmem:[%s5370_s0 + $0x180] sm:$0xff] }
  0x63   :  { %3357 = vmatprep.mubr.msk.f32.mxu0 %vm153_vm1, %v1329_v36  ;;  %v1361_v36 = vld [vmem:[%s5371_s2 + $0x180] sm:$0xff] }
  0x65   :  { %3210 = vmatmul.mubr.msk.f32.gmra.mrb[48].mxu1 %vm153_vm1, %v137_v37  ;;  %v72_v37 = vld [vmem:[%s5370_s0 + $0x188] sm:$0xff] }
  0x66   :  { %3358 = vmatmul.mubr.msk.f32.gmra.mrb[16].mxu0 %vm153_vm1, %v1330_v38  ;;  %3212 = vmatprep.mubr.msk.f32.mxu1 %vm153_vm1, %v138_v39  ;;  %v1362_v38 = vld [vmem:[%s5371_s2 + $0x188] sm:$0xff]  ;;  %v73_v39 = vld [vmem:[%s5370_s0 + $0x190] sm:$0xff] }
  0x67   :  { %3360 = vmatprep.mubr.msk.f32.mxu0 %vm153_vm1, %v1331_v40  ;;  %v1363_v40 = vld [vmem:[%s5371_s2 + $0x190] sm:$0xff] }
  0x69   :  { %3213 = vmatmul.mubr.msk.f32.gmra.mrb[50].mxu1 %vm153_vm1, %v139_v41  ;;  %v74_v41 = vld [vmem:[%s5370_s0 + $0x198] sm:$0xff] }
  0x6a   :  { %3361 = vmatmul.mubr.msk.f32.gmra.mrb[18].mxu0 %vm153_vm1, %v1332_v42  ;;  %3215 = vmatprep.mubr.msk.f32.mxu1 %vm153_vm1, %v140_v43  ;;  %v1364_v42 = vld [vmem:[%s5371_s2 + $0x198] sm:$0xff]  ;;  %v75_v43 = vld [vmem:[%s5370_s0 + $0x1a0] sm:$0xff] }
  0x6b   :  { %3363 = vmatprep.mubr.msk.f32.mxu0 %vm153_vm1, %v1333_v44  ;;  %v1365_v44 = vld [vmem:[%s5371_s2 + $0x1a0] sm:$0xff] }
  0x6d   :  { %3216 = vmatmul.mubr.msk.f32.gmra.mrb[52].mxu1 %vm153_vm1, %v141_v45  ;;  %v76_v45 = vld [vmem:[%s5370_s0 + $0x1a8] sm:$0xff] }
  0x6e   :  { %3364 = vmatmul.mubr.msk.f32.gmra.mrb[20].mxu0 %vm153_vm1, %v1334_v46  ;;  %3218 = vmatprep.mubr.msk.f32.mxu1 %vm153_vm1, %v142_v47  ;;  %v1366_v46 = vld [vmem:[%s5371_s2 + $0x1a8] sm:$0xff]  ;;  %v77_v47 = vld [vmem:[%s5370_s0 + $0x1b0] sm:$0xff] }
  0x6f   :  { %3366 = vmatprep.mubr.msk.f32.mxu0 %vm153_vm1, %v1335_v48  ;;  %v1367_v48 = vld [vmem:[%s5371_s2 + $0x1b0] sm:$0xff] }
  0x71   :  { %3219 = vmatmul.mubr.msk.f32.gmra.mrb[54].mxu1 %vm153_vm1, %v143_v49  ;;  %v78_v49 = vld [vmem:[%s5370_s0 + $0x1b8] sm:$0xff] }
  0x72   :  { %3367 = vmatmul.mubr.msk.f32.gmra.mrb[22].mxu0 %vm153_vm1, %v1336_v50  ;;  %3221 = vmatprep.mubr.msk.f32.mxu1 %vm153_vm1, %v144_v51  ;;  %v1368_v50 = vld [vmem:[%s5371_s2 + $0x1b8] sm:$0xff]  ;;  %v79_v51 = vld [vmem:[%s5370_s0 + $0x1c0] sm:$0xff] }
  0x73   :  { %3369 = vmatprep.mubr.msk.f32.mxu0 %vm153_vm1, %v1337_v52  ;;  %v1369_v52 = vld [vmem:[%s5371_s2 + $0x1c0] sm:$0xff] }
  0x75   :  { %3222 = vmatmul.mubr.msk.f32.gmra.mrb[56].mxu1 %vm153_vm1, %v145_v53  ;;  %v80_v53 = vld [vmem:[%s5370_s0 + $0x1c8] sm:$0xff] }
  0x76   :  { %3370 = vmatmul.mubr.msk.f32.gmra.mrb[24].mxu0 %vm153_vm1, %v1338_v54  ;;  %3224 = vmatprep.mubr.msk.f32.mxu1 %vm153_vm1, %v146_v55  ;;  %v1370_v54 = vld [vmem:[%s5371_s2 + $0x1c8] sm:$0xff]  ;;  %v81_v55 = vld [vmem:[%s5370_s0 + $0x1d0] sm:$0xff] }
  0x77   :  { %3372 = vmatprep.mubr.msk.f32.mxu0 %vm153_vm1, %v1339_v56  ;;  %v1371_v56 = vld [vmem:[%s5371_s2 + $0x1d0] sm:$0xff] }
  0x79   :  { %3225 = vmatmul.mubr.msk.f32.gmra.mrb[58].mxu1 %vm153_vm1, %v147_v57  ;;  %v82_v57 = vld [vmem:[%s5370_s0 + $0x1d8] sm:$0xff] }
  0x7a   :  { %3373 = vmatmul.mubr.msk.f32.gmra.mrb[26].mxu0 %vm153_vm1, %v1340_v58  ;;  %3227 = vmatprep.mubr.msk.f32.mxu1 %vm153_vm1, %v148_v59  ;;  %v1372_v58 = vld [vmem:[%s5371_s2 + $0x1d8] sm:$0xff]  ;;  %v83_v59 = vld [vmem:[%s5370_s0 + $0x1e0] sm:$0xff] }
  0x7b   :  { %3375 = vmatprep.mubr.msk.f32.mxu0 %vm153_vm1, %v1341_v60  ;;  %v1373_v60 = vld [vmem:[%s5371_s2 + $0x1e0] sm:$0xff] }
  0x7d   :  { %3228 = vmatmul.mubr.msk.f32.gmra.mrb[60].mxu1 %vm153_vm1, %v149_v61  ;;  %v84_v61 = vld [vmem:[%s5370_s0 + $0x1e8] sm:$0xff] }
  0x7e   :  { %3376 = vmatmul.mubr.msk.f32.gmra.mrb[28].mxu0 %vm153_vm1, %v1342_v62  ;;  %3230 = vmatprep.mubr.msk.f32.mxu1 %vm153_vm1, %v150_v63  ;;  %v1374_v62 = vld [vmem:[%s5371_s2 + $0x1e8] sm:$0xff]  ;;  %v85_v63 = vld [vmem:[%s5370_s0 + $0x1f0] sm:$0xff] }
  0x7f   :  { %3378 = vmatprep.mubr.msk.f32.mxu0 %vm153_vm1, %v1343_v0  ;;  %v1375_v0 = vld [vmem:[%s5371_s2 + $0x1f0] sm:$0xff] }
  0x81   :  { %3231 = vmatmul.mubr.msk.f32.gmra.mrb[62].mxu1 %vm153_vm1, %v151_v1  ;;  %v86_v1 = vld [vmem:[%s5370_s0 + $0x1f8] sm:$0xff] }
  0x82   :  { %3379 = vmatmul.mubr.msk.f32.gmra.mrb[30].mxu0 %vm153_vm1, %v1344_v2  ;;  %3283 = vmatprep.mubr.msk.f32.mxu1 %vm735_vm2, %v55_v3  ;;  %v1376_v2 = vld [vmem:[%s5371_s2 + $0x1f8] sm:$0xff] }
  0x83   :  { %3381 = vmatprep.mubr.msk.f32.mxu0 %vm153_vm1, %v1345_v4 }
  0x85   :  { %3284 = vmatmul.mubr.msk.f32.vlgmr.msra.gmra.mrb[32].mxu1 %vm735_vm2, %v56_v5 }
  0x86   :  { %3382 = vmatmul.mubr.msk.f32.gmra.mrb[32].mxu0 %vm153_vm1, %v1346_v6  ;;  %3286 = vmatprep.mubr.msk.f32.mxu1 %vm735_vm2, %v57_v7 }
  0x87   :  { %3384 = vmatprep.mubr.msk.f32.mxu0 %vm153_vm1, %v1347_v8 }
  0x89   :  { %3287 = vmatmul.mubr.msk.f32.gmra.mrb[34].mxu1 %vm735_vm2, %v58_v9 }
  0x8a   :  { %3385 = vmatmul.mubr.msk.f32.gmra.mrb[34].mxu0 %vm153_vm1, %v1348_v10  ;;  %3289 = vmatprep.mubr.msk.f32.mxu1 %vm735_vm2, %v59_v11 }
  0x8b   :  { %3387 = vmatprep.mubr.msk.f32.mxu0 %vm153_vm1, %v1349_v12 }
  0x8d   :  { %3290 = vmatmul.mubr.msk.f32.gmra.mrb[36].mxu1 %vm735_vm2, %v60_v13 }
  0x8e   :  { %3388 = vmatmul.mubr.msk.f32.gmra.mrb[36].mxu0 %vm153_vm1, %v1350_v14  ;;  %3292 = vmatprep.mubr.msk.f32.mxu1 %vm735_vm2, %v61_v15 }
  0x8f   :  { %3390 = vmatprep.mubr.msk.f32.mxu0 %vm153_vm1, %v1351_v16 }
  0x91   :  { %3293 = vmatmul.mubr.msk.f32.gmra.mrb[38].mxu1 %vm735_vm2, %v62_v17 }
  0x92   :  { %3391 = vmatmul.mubr.msk.f32.gmra.mrb[38].mxu0 %vm153_vm1, %v1352_v18  ;;  %3295 = vmatprep.mubr.msk.f32.mxu1 %vm735_vm2, %v63_v19 }
  0x93   :  { %3393 = vmatprep.mubr.msk.f32.mxu0 %vm153_vm1, %v1353_v20 }
  0x95   :  { %3296 = vmatmul.mubr.msk.f32.gmra.mrb[40].mxu1 %vm735_vm2, %v64_v21 }
  0x96   :  { %3394 = vmatmul.mubr.msk.f32.gmra.mrb[40].mxu0 %vm153_vm1, %v1354_v22  ;;  %3298 = vmatprep.mubr.msk.f32.mxu1 %vm735_vm2, %v65_v23 }
  0x97   :  { %3396 = vmatprep.mubr.msk.f32.mxu0 %vm153_vm1, %v1355_v24 }
  0x99   :  { %3299 = vmatmul.mubr.msk.f32.gmra.mrb[42].mxu1 %vm735_vm2, %v66_v25 }
  0x9a   :  { %3397 = vmatmul.mubr.msk.f32.gmra.mrb[42].mxu0 %vm153_vm1, %v1356_v26  ;;  %3301 = vmatprep.mubr.msk.f32.mxu1 %vm735_vm2, %v67_v27 }
  0x9b   :  { %3399 = vmatprep.mubr.msk.f32.mxu0 %vm153_vm1, %v1357_v28 }
  0x9d   :  { %3302 = vmatmul.mubr.msk.f32.gmra.mrb[44].mxu1 %vm735_vm2, %v68_v29 }
  0x9e   :  { %3400 = vmatmul.mubr.msk.f32.gmra.mrb[44].mxu0 %vm153_vm1, %v1358_v30  ;;  %3304 = vmatprep.mubr.msk.f32.mxu1 %vm735_vm2, %v69_v31 }
  0x9f   :  { %3402 = vmatprep.mubr.msk.f32.mxu0 %vm153_vm1, %v1359_v32 }
  0xa1   :  { %3305 = vmatmul.mubr.msk.f32.gmra.mrb[46].mxu1 %vm735_vm2, %v70_v33 }
  0xa2   :  { %3403 = vmatmul.mubr.msk.f32.gmra.mrb[46].mxu0 %vm153_vm1, %v1360_v34  ;;  %3307 = vmatprep.mubr.msk.f32.mxu1 %vm735_vm2, %v71_v35 }
  0xa3   :  { %3405 = vmatprep.mubr.msk.f32.mxu0 %vm153_vm1, %v1361_v36  ;;  %v4686_v36 = vld [vmem:[%s5372_s4] ss:$0 sm:$0xff] }
  0xa5   :  { %3308 = vmatmul.mubr.msk.f32.gmra.mrb[48].mxu1 %vm735_vm2, %v72_v37 }
  0xa6   :  { %3406 = vmatmul.mubr.msk.f32.gmra.mrb[48].mxu0 %vm153_vm1, %v1362_v38  ;;  %3310 = vmatprep.mubr.msk.f32.mxu1 %vm735_vm2, %v73_v39  ;;  %v4691_v39 = vld [vmem:[%s5373_s5] ss:$0 sm:$0xff] }
  0xa7   :  { %3408 = vmatprep.mubr.msk.f32.mxu0 %vm153_vm1, %v1363_v40 }
  0xa9   :  { %3311 = vmatmul.mubr.msk.f32.gmra.mrb[50].mxu1 %vm735_vm2, %v74_v41 }
  0xaa   :  { %3409 = vmatmul.mubr.msk.f32.gmra.mrb[50].mxu0 %vm153_vm1, %v1364_v42  ;;  %3313 = vmatprep.mubr.msk.f32.mxu1 %vm735_vm2, %v75_v43 }
  0xab   :  { %3411 = vmatprep.mubr.msk.f32.mxu0 %vm153_vm1, %v1365_v44 }
  0xad   :  { %3314 = vmatmul.mubr.msk.f32.gmra.mrb[52].mxu1 %vm735_vm2, %v76_v45 }
  0xae   :  { %3412 = vmatmul.mubr.msk.f32.gmra.mrb[52].mxu0 %vm153_vm1, %v1366_v46  ;;  %3316 = vmatprep.mubr.msk.f32.mxu1 %vm735_vm2, %v77_v47 }
  0xaf   :  { %3414 = vmatprep.mubr.msk.f32.mxu0 %vm153_vm1, %v1367_v48 }
  0xb1   :  { %3317 = vmatmul.mubr.msk.f32.gmra.mrb[54].mxu1 %vm735_vm2, %v78_v49 }
  0xb2   :  { %3415 = vmatmul.mubr.msk.f32.gmra.mrb[54].mxu0 %vm153_vm1, %v1368_v50  ;;  %3319 = vmatprep.mubr.msk.f32.mxu1 %vm735_vm2, %v79_v51 }
  0xb3   :  { %3417 = vmatprep.mubr.msk.f32.mxu0 %vm153_vm1, %v1369_v52 }
  0xb5   :  { %3320 = vmatmul.mubr.msk.f32.gmra.mrb[56].mxu1 %vm735_vm2, %v80_v53 }
  0xb6   :  { %3418 = vmatmul.mubr.msk.f32.gmra.mrb[56].mxu0 %vm153_vm1, %v1370_v54  ;;  %3322 = vmatprep.mubr.msk.f32.mxu1 %vm735_vm2, %v81_v55 }
  0xb7   :  { %3420 = vmatprep.mubr.msk.f32.mxu0 %vm153_vm1, %v1371_v56 }
  0xb9   :  { %3323 = vmatmul.mubr.msk.f32.gmra.mrb[58].mxu1 %vm735_vm2, %v82_v57 }
  0xba   :  { %3421 = vmatmul.mubr.msk.f32.gmra.mrb[58].mxu0 %vm153_vm1, %v1372_v58  ;;  %3325 = vmatprep.mubr.msk.f32.mxu1 %vm735_vm2, %v83_v59 }
  0xbb   :  { %3423 = vmatprep.mubr.msk.f32.mxu0 %vm153_vm1, %v1373_v60 }
  0xbd   :  { %3326 = vmatmul.mubr.msk.f32.gmra.mrb[60].mxu1 %vm735_vm2, %v84_v61 }
  0xbe   :  { %3424 = vmatmul.mubr.msk.f32.gmra.mrb[60].mxu0 %vm153_vm1, %v1374_v62  ;;  %3328 = vmatprep.mubr.msk.f32.mxu1 %vm735_vm2, %v85_v63 }
  0xbf   :  { %3426 = vmatprep.mubr.msk.f32.mxu0 %vm153_vm1, %v1375_v0 }
  0xc1   :  { %3329 = vmatmul.mubr.msk.f32.gmra.mrb[62].mxu1 %vm735_vm2, %v86_v1 }
  0xc2   :  { %3427 = vmatmul.mubr.msk.f32.gmra.mrb[62].mxu0 %vm153_vm1, %v1376_v2 }
  0xd8   :  { %v3139_v3 = vpop.f32.mrb[0].mxu1 }
  0xd9   :  { %v416_v4 = vpop.f32.mrb[1].mxu1 }
  0xdc   :  { %v3142_v5 = vpop.f32.mrb[2].mxu1 }
  0xdd   :  { %v426_v6 = vpop.f32.mrb[3].mxu1 }
  0xe0   :  { %v3145_v7 = vpop.f32.mrb[4].mxu1 }
  0xe1   :  { %v436_v8 = vpop.f32.mrb[5].mxu1 }
  0xe4   :  { %v3148_v9 = vpop.f32.mrb[6].mxu1 }
  0xe5   :  { %v4633_v10 = vpop.f32.mrb[7].mxu1 }
  0xe8   :  { %v4635_v11 = vpop.f32.mrb[8].mxu1 }
  0xe9   :  { %v4637_v12 = vpop.f32.mrb[9].mxu1 }
  0xec   :  { %v4639_v13 = vpop.f32.mrb[10].mxu1 }
  0xed   :  { %v4641_v14 = vpop.f32.mrb[11].mxu1 }
  0xf0   :  { %v4643_v15 = vpop.f32.mrb[12].mxu1 }
  0xf1   :  { %v4645_v16 = vpop.f32.mrb[13].mxu1 }
  0xf4   :  { %v4647_v17 = vpop.f32.mrb[14].mxu1 }
  0xf5   :  { %v4649_v18 = vpop.f32.mrb[15].mxu1 }
  0xf8   :  { %v4651_v19 = vpop.f32.mrb[16].mxu1 }
  0xf9   :  { %v4653_v20 = vpop.f32.mrb[17].mxu1 }
  0xfc   :  { %v4655_v21 = vpop.f32.mrb[18].mxu1 }
  0xfd   :  { %v4657_v22 = vpop.f32.mrb[19].mxu1 }
 0x100   :  { %v4659_v23 = vpop.f32.mrb[20].mxu1 }
 0x101   :  { %v4661_v24 = vpop.f32.mrb[21].mxu1 }
 0x104   :  { %v4663_v25 = vpop.f32.mrb[22].mxu1 }
 0x105   :  { %v4665_v26 = vpop.f32.mrb[23].mxu1 }
 0x108   :  { %v4667_v27 = vpop.f32.mrb[24].mxu1 }
 0x109   :  { %v4669_v28 = vpop.f32.mrb[25].mxu1 }
 0x10c   :  { %v4671_v29 = vpop.f32.mrb[26].mxu1 }
 0x10d   :  { %v4673_v30 = vpop.f32.mrb[27].mxu1 }
 0x110   :  { %v4675_v31 = vpop.f32.mrb[28].mxu1 }
 0x111   :  { %v4677_v32 = vpop.f32.mrb[29].mxu1 }
 0x114   :  { %v4679_v33 = vpop.f32.mrb[30].mxu1 }
 0x115   :  { %v4681_v34 = vpop.f32.mrb[31].mxu1 }
 0x119   :  { %v3335_v35 = vpop.f32.mrb[0].mxu0 }
 0x11a   :  { %v3431_v37 = vadd.f32 %v3335_v35, %v3139_v3  ;;  %v1639_v38 = vpop.f32.mrb[1].mxu0 }
 0x11b   :  { %v3432_v40 = vadd.f32 %v1639_v38, %v416_v4 }
 0x11c   :  { %v2030_v41 = vmul.f32 %v3431_v37, %v4686_v36 }
 0x11d   :  { %v2029_v42 = vmul.f32 %v3432_v40, %v4686_v36  ;;  %v3338_v43 = vpop.f32.mrb[2].mxu0 }
 0x11e   :  { %v4696_v44 = vadd.f32 %v4691_v39, %v2030_v41  ;;  %v3433_v45 = vadd.f32 %v3338_v43, %v3142_v5  ;;  %v1649_v46 = vpop.f32.mrb[3].mxu0 }
 0x11f   :  { %v4699_v47 = vadd.f32 %v4691_v39, %v2029_v42  ;;  %v3434_v48 = vadd.f32 %v1649_v46, %v426_v6 }
 0x120   :  { %v2877_v49 = vmul.f32 -1.442695, %v4696_v44  ;;  %v2032_v50 = vmul.f32 %v3433_v45, %v4686_v36 }
 0x121   :  { %v2876_v51 = vmul.f32 -1.442695, %v4699_v47  ;;  %v2031_v52 = vmul.f32 %v3434_v48, %v4686_v36  ;;  %v3341_v53 = vpop.f32.mrb[4].mxu0 }
 0x122   :  { %3559 = vpow2.f32 %v2877_v49  ;;  %v4706_v54 = vadd.f32 %v4691_v39, %v2032_v50  ;;  %v3435_v55 = vadd.f32 %v3341_v53, %v3145_v7  ;;  %v1659_v56 = vpop.f32.mrb[5].mxu0 }
 0x123   :  { %3561 = vpow2.f32 %v2876_v51  ;;  %v4709_v57 = vadd.f32 %v4691_v39, %v2031_v52  ;;  %v3436_v58 = vadd.f32 %v1659_v56, %v436_v8 }
 0x124   :  { %v2879_v59 = vmul.f32 -1.442695, %v4706_v54  ;;  %v2034_v60 = vmul.f32 %v3435_v55, %v4686_v36 }
 0x125   :  { %v2878_v61 = vmul.f32 -1.442695, %v4709_v57  ;;  %v2033_v62 = vmul.f32 %v3436_v58, %v4686_v36  ;;  %v3344_v63 = vpop.f32.mrb[6].mxu0 }
 0x126   :  { %3563 = vpow2.f32 %v2879_v59  ;;  %v4716_v0 = vadd.f32 %v4691_v39, %v2034_v60  ;;  %v3437_v1 = vadd.f32 %v3344_v63, %v3148_v9  ;;  %v1669_v2 = vpop.f32.mrb[7].mxu0 }
 0x127   :  { %3565 = vpow2.f32 %v2878_v61  ;;  %v4719_v3 = vadd.f32 %v4691_v39, %v2033_v62  ;;  %v3438_v4 = vadd.f32 %v1669_v2, %v4633_v10 }
 0x128   :  { %v2881_v5 = vmul.f32 -1.442695, %v4716_v0  ;;  %v2036_v6 = vmul.f32 %v3437_v1, %v4686_v36 }
 0x129   :  { %v2880_v7 = vmul.f32 -1.442695, %v4719_v3  ;;  %v2035_v8 = vmul.f32 %v3438_v4, %v4686_v36  ;;  %v3347_v35 = vpop.f32.mrb[8].mxu0 }
 0x12a   :  { %3567 = vpow2.f32 %v2881_v5  ;;  %v4727_v37 = vadd.f32 %v4691_v39, %v2036_v6  ;;  %v3439_v9 = vadd.f32 %v3347_v35, %v4635_v11  ;;  %v1679_v38 = vpop.f32.mrb[9].mxu0 }
 0x12b   :  { %3569 = vpow2.f32 %v2880_v7  ;;  %v4731_v40 = vadd.f32 %v4691_v39, %v2035_v8  ;;  %v3440_v10 = vadd.f32 %v1679_v38, %v4637_v12 }
 0x12c   :  { %v3560_v41 = vpop.eup %3559  ;;  %v2883_v42 = vmul.f32 -1.442695, %v4727_v37  ;;  %v2038_v43 = vmul.f32 %v3439_v9, %v4686_v36 }
 0x12d   :  { %v3562_v45 = vpop.eup %3561  ;;  %v2357_v46 = vadd.f32 1.0, %v3560_v41  ;;  %v2882_v48 = vmul.f32 -1.442695, %v4731_v40  ;;  %v2037_v49 = vmul.f32 %v3440_v10, %v4686_v36  ;;  %v3350_v50 = vpop.f32.mrb[10].mxu0 }
 0x12e   :  { %v2356_v11 = vadd.f32 1.0, %v3562_v45  ;;  %3571 = vpow2.f32 %v2883_v42  ;;  %v4739_v51 = vadd.f32 %v4691_v39, %v2038_v43  ;;  %v3441_v52 = vadd.f32 %v3350_v50, %v4639_v13  ;;  %v1689_v12 = vpop.f32.mrb[11].mxu0 }
 0x12f   :  { %3573 = vrcp.f32 %v2357_v46  ;;  %v4743_v53 = vadd.f32 %v4691_v39, %v2037_v49  ;;  %v3442_v55 = vadd.f32 %v1689_v12, %v4641_v14 }
 0x130   :  { %v3564_v56 = vpop.eup %3563  ;;  %3575 = vrcp.f32 %v2356_v11  ;;  %v2885_v58 = vmul.f32 -1.442695, %v4739_v51  ;;  %v2040_v59 = vmul.f32 %v3441_v52, %v4686_v36 }
 0x131   :  { %v3566_v60 = vpop.eup %3565  ;;  %v2359_v61 = vadd.f32 1.0, %v3564_v56  ;;  %3577 = vpow2.f32 %v2882_v48  ;;  %v2884_v62 = vmul.f32 -1.442695, %v4743_v53  ;;  %v2039_v13 = vmul.f32 %v3442_v55, %v4686_v36  ;;  %v3353_v63 = vpop.f32.mrb[12].mxu0 }
 0x132   :  { %v2358_v1 = vadd.f32 1.0, %v3566_v60  ;;  %3579 = vpow2.f32 %v2885_v58  ;;  %v4751_v2 = vadd.f32 %v4691_v39, %v2040_v59  ;;  %v3443_v14 = vadd.f32 %v3353_v63, %v4643_v15  ;;  %v1699_v4 = vpop.f32.mrb[13].mxu0 }
 0x133   :  { %3581 = vrcp.f32 %v2359_v61  ;;  %v4755_v5 = vadd.f32 %v4691_v39, %v2039_v13  ;;  %v3444_v6 = vadd.f32 %v1699_v4, %v4645_v16 }
 0x134   :  { %v3568_v7 = vpop.eup %3567  ;;  %3583 = vrcp.f32 %v2358_v1  ;;  %v2887_v8 = vmul.f32 -1.442695, %v4751_v2  ;;  %v2042_v35 = vmul.f32 %v3443_v14, %v4686_v36 }
 0x135   :  { %v3570_v9 = vpop.eup %3569  ;;  %v2361_v38 = vadd.f32 1.0, %v3568_v7  ;;  %3585 = vpow2.f32 %v2884_v62  ;;  %v2886_v10 = vmul.f32 -1.442695, %v4755_v5  ;;  %v2041_v15 = vmul.f32 %v3444_v6, %v4686_v36  ;;  %v3356_v41 = vpop.f32.mrb[14].mxu0 }
 0x136   :  { %v2360_v42 = vadd.f32 1.0, %v3570_v9  ;;  %3587 = vpow2.f32 %v2887_v8  ;;  %v4763_v43 = vadd.f32 %v4691_v39, %v2042_v35  ;;  %v3445_v16 = vadd.f32 %v3356_v41, %v4647_v17  ;;  %v1709_v45 = vpop.f32.mrb[15].mxu0 }
 0x137   :  { %3589 = vrcp.f32 %v2361_v38  ;;  %v4767_v46 = vadd.f32 %v4691_v39, %v2041_v15  ;;  %v3446_v48 = vadd.f32 %v1709_v45, %v4649_v18 }
 0x138   :  { %v3572_v49 = vpop.eup %3571  ;;  %3591 = vrcp.f32 %v2360_v42  ;;  %v2889_v50 = vmul.f32 -1.442695, %v4763_v43  ;;  %v2044_v11 = vmul.f32 %v3445_v16, %v4686_v36 }
 0x139   :  { %v3574_v52 = vpop.eup %3573  ;;  %v2363_v12 = vadd.f32 1.0, %v3572_v49  ;;  %3593 = vpow2.f32 %v2886_v10  ;;  %v2888_v55 = vmul.f32 -1.442695, %v4767_v46  ;;  %v2043_v17 = vmul.f32 %v3446_v48, %v4686_v36  ;;  %v3359_v56 = vpop.f32.mrb[16].mxu0 }
 0x13a   :  { %v3576_v58 = vpop.eup %3575  ;;  %v2549_v59 = vmul.f32 %v3574_v52, %v4696_v44  ;;  %3595 = vpow2.f32 %v2889_v50  ;;  %v4776_v18 = vadd.f32 %v4691_v39, %v2044_v11  ;;  %v3447_v60 = vadd.f32 %v3359_v56, %v4651_v19  ;;  %v1719_v61 = vpop.f32.mrb[17].mxu0 }
 0x13b   :  { %v3578_v62 = vpop.eup %3577  ;;  %v2548_v13 = vmul.f32 %v3576_v58, %v4699_v47  ;;  %3597 = vrcp.f32 %v2363_v12  ;;  %v4781_v63 = vadd.f32 %v4691_v39, %v2043_v17  ;;  %v3448_v1 = vadd.f32 %v1719_v61, %v4653_v20 }
 0x13c   :  { %v3580_v14 = vpop.eup %3579  ;;  %2613 = vst.msk [vmem:[%s5374_s6 + $0x8] sm:$0xff] %vm735_vm2, %v2549_v59  ;;  %v2362_v44 = vadd.f32 1.0, %v3578_v62  ;;  %3599 = vpow2.f32 %v2888_v55  ;;  %v2891_v19 = vmul.f32 -1.442695, %v4776_v18  ;;  %v2046_v4 = vmul.f32 %v3447_v60, %v4686_v36 }
 0x13d   :  { %v3582_v6 = vpop.eup %3581  ;;  %2612 = vst.msk [vmem:[%s5374_s6] sm:$0xff] %vm735_vm2, %v2548_v13  ;;  %v2365_v47 = vadd.f32 1.0, %v3580_v14  ;;  %v2890_v20 = vmul.f32 -1.442695, %v4781_v63  ;;  %v2045_v7 = vmul.f32 %v3448_v1, %v4686_v36  ;;  %v3362_v8 = vpop.f32.mrb[18].mxu0 }
 0x13e   :  { %v3584_v35 = vpop.eup %3583  ;;  %v2551_v9 = vmul.f32 %v3582_v6, %v4706_v54  ;;  %3601 = vrcp.f32 %v2362_v44  ;;  %v4798_v38 = vadd.f32 %v4691_v39, %v2046_v4  ;;  %v3449_v10 = vadd.f32 %v3362_v8, %v4655_v21  ;;  %v1729_v15 = vpop.f32.mrb[19].mxu0 }
 0x13f   :  { %v3586_v41 = vpop.eup %3585  ;;  %v2550_v42 = vmul.f32 %v3584_v35, %v4709_v57  ;;  %3603 = vrcp.f32 %v2365_v47  ;;  %v4803_v16 = vadd.f32 %v4691_v39, %v2045_v7  ;;  %v3450_v45 = vadd.f32 %v1729_v15, %v4657_v22 }
 0x140   :  { %v3588_v48 = vpop.eup %3587  ;;  %2615 = vst.msk [vmem:[%s5374_s6 + $0x18] sm:$0xff] %vm735_vm2, %v2551_v9  ;;  %v2364_v54 = vadd.f32 1.0, %v3586_v41  ;;  %3605 = vpow2.f32 %v2891_v19  ;;  %v2893_v21 = vmul.f32 -1.442695, %v4798_v38  ;;  %v2048_v49 = vmul.f32 %v3449_v10, %v4686_v36 }
 0x141   :  { %v3590_v50 = vpop.eup %3589  ;;  %2614 = vst.msk [vmem:[%s5374_s6 + $0x10] sm:$0xff] %vm735_vm2, %v2550_v42  ;;  %v2367_v57 = vadd.f32 1.0, %v3588_v48  ;;  %3607 = vpow2.f32 %v2890_v20  ;;  %v2892_v22 = vmul.f32 -1.442695, %v4803_v16  ;;  %v2047_v11 = vmul.f32 %v3450_v45, %v4686_v36  ;;  %v3365_v52 = vpop.f32.mrb[20].mxu0 }
 0x142   :  { %v3592_v12 = vpop.eup %3591  ;;  %v2553_v55 = vmul.f32 %v3590_v50, %v4716_v0  ;;  %3609 = vrcp.f32 %v2364_v54  ;;  %v4820_v17 = vadd.f32 %v4691_v39, %v2048_v49  ;;  %v3451_v56 = vadd.f32 %v3365_v52, %v4659_v23  ;;  %v1739_v58 = vpop.f32.mrb[21].mxu0 }
 0x143   :  { %v3594_v59 = vpop.eup %3593  ;;  %v2552_v60 = vmul.f32 %v3592_v12, %v4719_v3  ;;  %3611 = vrcp.f32 %v2367_v57  ;;  %v4825_v61 = vadd.f32 %v4691_v39, %v2047_v11  ;;  %v3452_v62 = vadd.f32 %v1739_v58, %v4661_v24 }
 0x144   :  { %v3596_v13 = vpop.eup %3595  ;;  %2617 = vst.msk [vmem:[%s5374_s6 + $0x28] sm:$0xff] %vm735_vm2, %v2553_v55  ;;  %v2366_v0 = vadd.f32 1.0, %v3594_v59  ;;  %3613 = vpow2.f32 %v2893_v21  ;;  %v2895_v23 = vmul.f32 -1.442695, %v4820_v17  ;;  %v2050_v1 = vmul.f32 %v3451_v56, %v4686_v36 }
 0x145   :  { %v3598_v14 = vpop.eup %3597  ;;  %2616 = vst.msk [vmem:[%s5374_s6 + $0x20] sm:$0xff] %vm735_vm2, %v2552_v60  ;;  %v2369_v3 = vadd.f32 1.0, %v3596_v13  ;;  %3615 = vpow2.f32 %v2892_v22  ;;  %v2894_v24 = vmul.f32 -1.442695, %v4825_v61  ;;  %v2049_v44 = vmul.f32 %v3452_v62, %v4686_v36  ;;  %v3368_v19 = vpop.f32.mrb[22].mxu0 }
 0x146   :  { %v3600_v4 = vpop.eup %3599  ;;  %v2555_v6 = vmul.f32 %v3598_v14, %v4727_v37  ;;  %3617 = vrcp.f32 %v2366_v0  ;;  %v4842_v47 = vadd.f32 %v4691_v39, %v2050_v1  ;;  %v3453_v20 = vadd.f32 %v3368_v19, %v4663_v25  ;;  %v1749_v7 = vpop.f32.mrb[23].mxu0 }
 0x147   :  { %3619 = vrcp.f32 %v2369_v3  ;;  %v2368_v8 = vadd.f32 1.0, %v3600_v4  ;;  %v4846_v35 = vadd.f32 %v4691_v39, %v2049_v44  ;;  %v3454_v9 = vadd.f32 %v1749_v7, %v4665_v26 }
 0x148   :  { %v3602_v10 = vpop.eup %3601  ;;  %2619 = vst.msk [vmem:[%s5374_s6 + $0x38] sm:$0xff] %vm735_vm2, %v2555_v6  ;;  %3621 = vpow2.f32 %v2895_v23  ;;  %v2897_v37 = vmul.f32 -1.442695, %v4842_v47  ;;  %v2052_v15 = vmul.f32 %v3453_v20, %v4686_v36 }
 0x149   :  { %v3604_v25 = vpop.eup %3603  ;;  %v2554_v41 = vmul.f32 %v3602_v10, %v4731_v40  ;;  %3623 = vrcp.f32 %v2368_v8  ;;  %v2896_v42 = vmul.f32 -1.442695, %v4846_v35  ;;  %v2051_v45 = vmul.f32 %v3454_v9, %v4686_v36  ;;  %v3371_v26 = vpop.f32.mrb[24].mxu0 }
 0x14a   :  { %v3606_v48 = vpop.eup %3605  ;;  %v2557_v54 = vmul.f32 %v3604_v25, %v4739_v51  ;;  %3625 = vpow2.f32 %v2894_v24  ;;  %v4860_v21 = vadd.f32 %v4691_v39, %v2052_v15  ;;  %v3455_v49 = vadd.f32 %v3371_v26, %v4667_v27  ;;  %v1759_v50 = vpop.f32.mrb[25].mxu0 }
 0x14b   :  { %v3608_v57 = vpop.eup %3607  ;;  %2618 = vst.msk [vmem:[%s5374_s6 + $0x30] sm:$0xff] %vm735_vm2, %v2554_v41  ;;  %v2371_v40 = vadd.f32 1.0, %v3606_v48  ;;  %3627 = vpow2.f32 %v2897_v37  ;;  %v4868_v22 = vadd.f32 %v4691_v39, %v2051_v45  ;;  %v3456_v51 = vadd.f32 %v1759_v50, %v4669_v28 }
 0x14c   :  { %v3610_v11 = vpop.eup %3609  ;;  %2621 = vst.msk [vmem:[%s5374_s6 + $0x48] sm:$0xff] %vm735_vm2, %v2557_v54  ;;  %v2370_v27 = vadd.f32 1.0, %v3608_v57  ;;  %3629 = vpow2.f32 %v2896_v42  ;;  %v2899_v52 = vmul.f32 -1.442695, %v4860_v21  ;;  %v2054_v12 = vmul.f32 %v3455_v49, %v4686_v36 }
 0x14d   :  { %v3612_v55 = vpop.eup %3611  ;;  %v2556_v56 = vmul.f32 %v3610_v11, %v4743_v53  ;;  %3631 = vrcp.f32 %v2371_v40  ;;  %v2898_v58 = vmul.f32 -1.442695, %v4868_v22  ;;  %v2053_v28 = vmul.f32 %v3456_v51, %v4686_v36  ;;  %v3374_v59 = vpop.f32.mrb[26].mxu0 }
 0x14e   :  { %v3614_v60 = vpop.eup %3613  ;;  %v2559_v62 = vmul.f32 %v3612_v55, %v4751_v2  ;;  %3633 = vrcp.f32 %v2370_v27  ;;  %v4882_v13 = vadd.f32 %v4691_v39, %v2054_v12  ;;  %v3457_v0 = vadd.f32 %v3374_v59, %v4671_v29  ;;  %v1769_v23 = vpop.f32.mrb[27].mxu0 }
 0x14f   :  { %v3616_v1 = vpop.eup %3615  ;;  %2620 = vst.msk [vmem:[%s5374_s6 + $0x40] sm:$0xff] %vm735_vm2, %v2556_v56  ;;  %v2373_v53 = vadd.f32 1.0, %v3614_v60  ;;  %3635 = vpow2.f32 %v2899_v52  ;;  %v4890_v14 = vadd.f32 %v4691_v39, %v2053_v28  ;;  %v3458_v2 = vadd.f32 %v1769_v23, %v4673_v30 }
 0x150   :  { %v3618_v3 = vpop.eup %3617  ;;  %2623 = vst.msk [vmem:[%s5374_s6 + $0x58] sm:$0xff] %vm735_vm2, %v2559_v62  ;;  %v2372_v29 = vadd.f32 1.0, %v3616_v1  ;;  %3637 = vpow2.f32 %v2898_v58  ;;  %v2901_v24 = vmul.f32 -1.442695, %v4882_v13  ;;  %v2056_v44 = vmul.f32 %v3457_v0, %v4686_v36 }
 0x151   :  { %v3620_v19 = vpop.eup %3619  ;;  %v2558_v4 = vmul.f32 %v3618_v3, %v4755_v5  ;;  %3639 = vrcp.f32 %v2373_v53  ;;  %v2900_v6 = vmul.f32 -1.442695, %v4890_v14  ;;  %v2055_v30 = vmul.f32 %v3458_v2, %v4686_v36  ;;  %v3377_v20 = vpop.f32.mrb[28].mxu0 }
 0x152   :  { %v3622_v7 = vpop.eup %3621  ;;  %v2561_v8 = vmul.f32 %v3620_v19, %v4763_v43  ;;  %3641 = vrcp.f32 %v2372_v29  ;;  %v4904_v9 = vadd.f32 %v4691_v39, %v2056_v44  ;;  %v3459_v10 = vadd.f32 %v3377_v20, %v4675_v31  ;;  %v1779_v37 = vpop.f32.mrb[29].mxu0 }
 0x153   :  { %v3624_v15 = vpop.eup %3623  ;;  %2622 = vst.msk [vmem:[%s5374_s6 + $0x50] sm:$0xff] %vm735_vm2, %v2558_v4  ;;  %v2375_v5 = vadd.f32 1.0, %v3622_v7  ;;  %3643 = vpow2.f32 %v2901_v24  ;;  %v4912_v25 = vadd.f32 %v4691_v39, %v2055_v30  ;;  %v3460_v43 = vadd.f32 %v1779_v37, %v4677_v32 }
 0x154   :  { %v3626_v41 = vpop.eup %3625  ;;  %2625 = vst.msk [vmem:[%s5374_s6 + $0x68] sm:$0xff] %vm735_vm2, %v2561_v8  ;;  %v2560_v31 = vmul.f32 %v3624_v15, %v4767_v46  ;;  %3645 = vpow2.f32 %v2900_v6  ;;  %v2903_v42 = vmul.f32 -1.442695, %v4904_v9  ;;  %v2058_v45 = vmul.f32 %v3459_v10, %v4686_v36 }
 0x155   :  { %v3628_v26 = vpop.eup %3627  ;;  %3647 = vrcp.f32 %v2375_v5  ;;  %v2374_v48 = vadd.f32 1.0, %v3626_v41  ;;  %v2902_v54 = vmul.f32 -1.442695, %v4912_v25  ;;  %v2057_v32 = vmul.f32 %v3460_v43, %v4686_v36  ;;  %v3380_v49 = vpop.f32.mrb[30].mxu0 }
 0x156   :  { %v3630_v50 = vpop.eup %3629  ;;  %2624 = vst.msk [vmem:[%s5374_s6 + $0x60] sm:$0xff] %vm735_vm2, %v2560_v31  ;;  %v2377_v46 = vadd.f32 1.0, %v3628_v26  ;;  %3649 = vpow2.f32 %v2903_v42  ;;  %v4929_v57 = vadd.f32 %v4691_v39, %v2058_v45  ;;  %v3461_v40 = vadd.f32 %v3380_v49, %v4679_v33  ;;  %v1789_v51 = vpop.f32.mrb[31].mxu0 }
 0x157   :  { %v3632_v11 = vpop.eup %3631  ;;  %3651 = vrcp.f32 %v2374_v48  ;;  %v2376_v27 = vadd.f32 1.0, %v3630_v50  ;;  %v4933_v52 = vadd.f32 %v4691_v39, %v2057_v32  ;;  %v3462_v12 = vadd.f32 %v1789_v51, %v4681_v34 }
 0x158   :  { %v3634_v55 = vpop.eup %3633  ;;  %v2563_v56 = vmul.f32 %v3632_v11, %v4776_v18  ;;  %3653 = vrcp.f32 %v2377_v46  ;;  %v2905_v58 = vmul.f32 -1.442695, %v4929_v57  ;;  %v2060_v28 = vmul.f32 %v3461_v40, %v4686_v36  ;;  %v3285_v59 = vpop.f32.mrb[32].mxu1 }
 0x159   :  { %v3636_v60 = vpop.eup %3635  ;;  %v2562_v33 = vmul.f32 %v3634_v55, %v4781_v63  ;;  %3655 = vrcp.f32 %v2376_v27  ;;  %v2904_v62 = vmul.f32 -1.442695, %v4933_v52  ;;  %v2059_v0 = vmul.f32 %v3462_v12, %v4686_v36  ;;  %v3383_v23 = vpop.f32.mrb[32].mxu0 }
 0x15a   :  { %v1154_v1 = vpop.f32.mrb[33].mxu1  ;;  %v3638_v34 = vpop.eup %3637  ;;  %2627 = vst.msk [vmem:[%s5374_s6 + $0x78] sm:$0xff] %vm735_vm2, %v2563_v56  ;;  %v2379_v18 = vadd.f32 1.0, %v3636_v60  ;;  %3657 = vpow2.f32 %v2902_v54  ;;  %v4947_v53 = vadd.f32 %v4691_v39, %v2060_v28  ;;  %v3463_v2 = vadd.f32 %v3383_v23, %v3285_v59 }
 0x15b   :  { %v1799_v63 = vpop.f32.mrb[33].mxu0  ;;  %v3640_v3 = vpop.eup %3639  ;;  %2626 = vst.msk [vmem:[%s5374_s6 + $0x70] sm:$0xff] %vm735_vm2, %v2562_v33  ;;  %v2378_v29 = vadd.f32 1.0, %v3638_v34  ;;  %3659 = vpow2.f32 %v2905_v58  ;;  %v4954_v24 = vadd.f32 %v4691_v39, %v2059_v0 }
 0x15c   :  { %v3464_v44 = vadd.f32 %v1799_v63, %v1154_v1  ;;  %v3642_v19 = vpop.eup %3641  ;;  %v2565_v4 = vmul.f32 %v3640_v3, %v4798_v38  ;;  %3661 = vrcp.f32 %v2379_v18  ;;  %v2907_v6 = vmul.f32 -1.442695, %v4947_v53  ;;  %v3288_v20 = vpop.f32.mrb[34].mxu1 }
 0x15d   :  { %v2062_v30 = vmul.f32 %v3463_v2, %v4686_v36  ;;  %v3644_v7 = vpop.eup %3643  ;;  %v2564_v8 = vmul.f32 %v3642_v19, %v4803_v16  ;;  %3663 = vrcp.f32 %v2378_v29  ;;  %v2906_v10 = vmul.f32 -1.442695, %v4954_v24  ;;  %v3386_v15 = vpop.f32.mrb[34].mxu0 }
 0x15e   :  { %v2061_v37 = vmul.f32 %v3464_v44, %v4686_v36  ;;  %v1164_v5 = vpop.f32.mrb[35].mxu1  ;;  %v3646_v43 = vpop.eup %3645  ;;  %2629 = vst.msk [vmem:[%s5374_s6 + $0x88] sm:$0xff] %vm735_vm2, %v2565_v4  ;;  %v2381_v38 = vadd.f32 1.0, %v3644_v7  ;;  %3665 = vpow2.f32 %v2904_v62  ;;  %v3465_v31 = vadd.f32 %v3386_v15, %v3288_v20 }
 0x15f   :  { %v4967_v41 = vadd.f32 %v4691_v39, %v2062_v30  ;;  %v1809_v16 = vpop.f32.mrb[35].mxu0  ;;  %v3648_v42 = vpop.eup %3647  ;;  %2628 = vst.msk [vmem:[%s5374_s6 + $0x80] sm:$0xff] %vm735_vm2, %v2564_v8  ;;  %v2380_v45 = vadd.f32 1.0, %v3646_v43  ;;  %3667 = vpow2.f32 %v2907_v6 }
 0x160   :  { %v4974_v26 = vadd.f32 %v4691_v39, %v2061_v37  ;;  %v3466_v48 = vadd.f32 %v1809_v16, %v1164_v5  ;;  %v3650_v54 = vpop.eup %3649  ;;  %v2567_v32 = vmul.f32 %v3648_v42, %v4820_v17  ;;  %3669 = vrcp.f32 %v2381_v38  ;;  %v3291_v46 = vpop.f32.mrb[36].mxu1 }
 0x161   :  { %v2909_v49 = vmul.f32 -1.442695, %v4967_v41  ;;  %v2064_v50 = vmul.f32 %v3465_v31, %v4686_v36  ;;  %v3652_v40 = vpop.eup %3651  ;;  %3671 = vrcp.f32 %v2380_v45  ;;  %v2383_v51 = vadd.f32 1.0, %v3650_v54  ;;  %v3389_v12 = vpop.f32.mrb[36].mxu0 }
 0x162   :  { %v2908_v11 = vmul.f32 -1.442695, %v4974_v26  ;;  %v2063_v27 = vmul.f32 %v3466_v48, %v4686_v36  ;;  %v1174_v55 = vpop.f32.mrb[37].mxu1  ;;  %v3654_v56 = vpop.eup %3653  ;;  %2631 = vst.msk [vmem:[%s5374_s6 + $0x98] sm:$0xff] %vm735_vm2, %v2567_v32  ;;  %v2566_v17 = vmul.f32 %v3652_v40, %v4825_v61  ;;  %3673 = vpow2.f32 %v2906_v10 }
 0x163   :  { %v4987_v58 = vadd.f32 %v4691_v39, %v2064_v50  ;;  %v3467_v28 = vadd.f32 %v3389_v12, %v3291_v46  ;;  %v1819_v59 = vpop.f32.mrb[37].mxu0  ;;  %v3656_v60 = vpop.eup %3655  ;;  %v2569_v33 = vmul.f32 %v3654_v56, %v4842_v47  ;;  %3675 = vrcp.f32 %v2383_v51 }
 0x164   :  { %v4991_v62 = vadd.f32 %v4691_v39, %v2063_v27  ;;  %v3468_v0 = vadd.f32 %v1819_v59, %v1174_v55  ;;  %v3658_v23 = vpop.eup %3657  ;;  %2630 = vst.msk [vmem:[%s5374_s6 + $0x90] sm:$0xff] %vm735_vm2, %v2566_v17  ;;  %v2568_v61 = vmul.f32 %v3656_v60, %v4846_v35  ;;  %3677 = vpow2.f32 %v2909_v49  ;;  %v3294_v18 = vpop.f32.mrb[38].mxu1 }
 0x165   :  { %v2911_v1 = vmul.f32 -1.442695, %v4987_v58  ;;  %v2066_v34 = vmul.f32 %v3467_v28, %v4686_v36  ;;  %v3660_v47 = vpop.eup %3659  ;;  %2633 = vst.msk [vmem:[%s5374_s6 + $0xa8] sm:$0xff] %vm735_vm2, %v2569_v33  ;;  %v2382_v2 = vadd.f32 1.0, %v3658_v23  ;;  %3679 = vpow2.f32 %v2908_v11  ;;  %v3392_v29 = vpop.f32.mrb[38].mxu0 }
 0x166   :  { %v2910_v63 = vmul.f32 -1.442695, %v4991_v62  ;;  %v2065_v3 = vmul.f32 %v3468_v0, %v4686_v36  ;;  %v1184_v35 = vpop.f32.mrb[39].mxu1  ;;  %v3662_v44 = vpop.eup %3661  ;;  %2632 = vst.msk [vmem:[%s5374_s6 + $0xa0] sm:$0xff] %vm735_vm2, %v2568_v61  ;;  %v2385_v19 = vadd.f32 1.0, %v3660_v47  ;;  %v3469_v6 = vadd.f32 %v3392_v29, %v3294_v18 }
 0x167   :  { %3681 = vpow2.f32 %v2911_v1  ;;  %v5011_v4 = vadd.f32 %v4691_v39, %v2066_v34  ;;  %v1829_v30 = vpop.f32.mrb[39].mxu0  ;;  %v3664_v20 = vpop.eup %3663  ;;  %v2571_v7 = vmul.f32 %v3662_v44, %v4860_v21 }
 0x168   :  { %3683 = vrcp.f32 %v2382_v2  ;;  %v5015_v8 = vadd.f32 %v4691_v39, %v2065_v3  ;;  %v3470_v10 = vadd.f32 %v1829_v30, %v1184_v35  ;;  %v3666_v37 = vpop.eup %3665  ;;  %v2570_v15 = vmul.f32 %v3664_v20, %v4868_v22  ;;  %v3297_v38 = vpop.f32.mrb[40].mxu1 }
 0x169   :  { %3685 = vrcp.f32 %v2385_v19  ;;  %v2913_v5 = vmul.f32 -1.442695, %v5011_v4  ;;  %v2068_v43 = vmul.f32 %v3469_v6, %v4686_v36  ;;  %v3668_v31 = vpop.eup %3667  ;;  %2635 = vst.msk [vmem:[%s5374_s6 + $0xb8] sm:$0xff] %vm735_vm2, %v2571_v7  ;;  %v2384_v21 = vadd.f32 1.0, %v3666_v37  ;;  %v3395_v45 = vpop.f32.mrb[40].mxu0 }
 0x16a   :  { %3687 = vpow2.f32 %v2910_v63  ;;  %v2912_v16 = vmul.f32 -1.442695, %v5015_v8  ;;  %v2067_v42 = vmul.f32 %v3470_v10, %v4686_v36  ;;  %v1194_v22 = vpop.f32.mrb[41].mxu1  ;;  %v3670_v48 = vpop.eup %3669  ;;  %2634 = vst.msk [vmem:[%s5374_s6 + $0xb0] sm:$0xff] %vm735_vm2, %v2570_v15  ;;  %v2387_v54 = vadd.f32 1.0, %v3668_v31 }
 0x16b   :  { %3689 = vpow2.f32 %v2913_v5  ;;  %v5031_v32 = vadd.f32 %v4691_v39, %v2068_v43  ;;  %v3471_v49 = vadd.f32 %v3395_v45, %v3297_v38  ;;  %v1839_v50 = vpop.f32.mrb[41].mxu0  ;;  %v3672_v46 = vpop.eup %3671  ;;  %v2573_v40 = vmul.f32 %v3670_v48, %v4882_v13 }
 0x16c   :  { %3691 = vrcp.f32 %v2384_v21  ;;  %v5035_v51 = vadd.f32 %v4691_v39, %v2067_v42  ;;  %v3472_v11 = vadd.f32 %v1839_v50, %v1194_v22  ;;  %v3674_v27 = vpop.eup %3673  ;;  %v2572_v12 = vmul.f32 %v3672_v46, %v4890_v14  ;;  %v3300_v17 = vpop.f32.mrb[42].mxu1 }
 0x16d   :  { %3693 = vrcp.f32 %v2387_v54  ;;  %v2915_v55 = vmul.f32 -1.442695, %v5031_v32  ;;  %v2070_v56 = vmul.f32 %v3471_v49, %v4686_v36  ;;  %v3676_v28 = vpop.eup %3675  ;;  %2637 = vst.msk [vmem:[%s5374_s6 + $0xc8] sm:$0xff] %vm735_vm2, %v2573_v40  ;;  %v2386_v13 = vadd.f32 1.0, %v3674_v27  ;;  %v3398_v33 = vpop.f32.mrb[42].mxu0 }
 0x16e   :  { %3695 = vpow2.f32 %v2912_v16  ;;  %v2914_v59 = vmul.f32 -1.442695, %v5035_v51  ;;  %v2069_v60 = vmul.f32 %v3472_v11, %v4686_v36  ;;  %v1204_v14 = vpop.f32.mrb[43].mxu1  ;;  %v3678_v0 = vpop.eup %3677  ;;  %2636 = vst.msk [vmem:[%s5374_s6 + $0xc0] sm:$0xff] %vm735_vm2, %v2572_v12  ;;  %v2575_v23 = vmul.f32 %v3676_v28, %v4904_v9 }
 0x16f   :  { %3697 = vpow2.f32 %v2915_v55  ;;  %v5052_v61 = vadd.f32 %v4691_v39, %v2070_v56  ;;  %v3473_v1 = vadd.f32 %v3398_v33, %v3300_v17  ;;  %v1849_v34 = vpop.f32.mrb[43].mxu0  ;;  %v3680_v18 = vpop.eup %3679  ;;  %v2389_v47 = vadd.f32 1.0, %v3678_v0 }
 0x170   :  { %3699 = vrcp.f32 %v2386_v13  ;;  %v5055_v2 = vadd.f32 %v4691_v39, %v2069_v60  ;;  %v3474_v63 = vadd.f32 %v1849_v34, %v1204_v14  ;;  %2639 = vst.msk [vmem:[%s5374_s6 + $0xd8] sm:$0xff] %vm735_vm2, %v2575_v23  ;;  %v2388_v9 = vadd.f32 1.0, %v3680_v18  ;;  %v3303_v44 = vpop.f32.mrb[44].mxu1 }
 0x171   :  { %v3682_v3 = vpop.eup %3681  ;;  %3701 = vpow2.f32 %v2914_v59  ;;  %v2917_v29 = vmul.f32 -1.442695, %v5052_v61  ;;  %v2072_v35 = vmul.f32 %v3473_v1, %v4686_v36  ;;  %v3401_v7 = vpop.f32.mrb[44].mxu0 }
 0x172   :  { %v3684_v19 = vpop.eup %3683  ;;  %3703 = vrcp.f32 %v2389_v47  ;;  %v2391_v6 = vadd.f32 1.0, %v3682_v3  ;;  %v2916_v30 = vmul.f32 -1.442695, %v5055_v2  ;;  %v2071_v20 = vmul.f32 %v3474_v63, %v4686_v36  ;;  %v1214_v10 = vpop.f32.mrb[45].mxu1 }
 0x173   :  { %v3686_v37 = vpop.eup %3685  ;;  %v2574_v15 = vmul.f32 %v3684_v19, %v4912_v25  ;;  %3705 = vrcp.f32 %v2388_v9  ;;  %v5067_v5 = vadd.f32 %v4691_v39, %v2072_v35  ;;  %v3475_v43 = vadd.f32 %v3401_v7, %v3303_v44  ;;  %v1859_v38 = vpop.f32.mrb[45].mxu0 }
 0x174   :  { %v3688_v31 = vpop.eup %3687  ;;  %v2577_v21 = vmul.f32 %v3686_v37, %v4929_v57  ;;  %3707 = vrcp.f32 %v2391_v6  ;;  %v5071_v16 = vadd.f32 %v4691_v39, %v2071_v20  ;;  %v3476_v42 = vadd.f32 %v1859_v38, %v1214_v10  ;;  %v3306_v54 = vpop.f32.mrb[46].mxu1  ;;  %v5126_v10 = vld [vmem:[%s5372_s4] ss:$0 sm:$0xff] }
 0x175   :  { %v3690_v45 = vpop.eup %3689  ;;  %2638 = vst.msk [vmem:[%s5374_s6 + $0xd0] sm:$0xff] %vm735_vm2, %v2574_v15  ;;  %v2390_v25 = vadd.f32 1.0, %v3688_v31  ;;  %3709 = vpow2.f32 %v2917_v29  ;;  %v2919_v22 = vmul.f32 -1.442695, %v5067_v5  ;;  %v2074_v48 = vmul.f32 %v3475_v43, %v4686_v36  ;;  %v3404_v40 = vpop.f32.mrb[46].mxu0 }
 0x176   :  { %v3692_v49 = vpop.eup %3691  ;;  %2641 = vst.msk [vmem:[%s5374_s6 + $0xe8] sm:$0xff] %vm735_vm2, %v2577_v21  ;;  %v2393_v57 = vadd.f32 1.0, %v3690_v45  ;;  %3711 = vpow2.f32 %v2916_v30  ;;  %v2918_v50 = vmul.f32 -1.442695, %v5071_v16  ;;  %v2073_v46 = vmul.f32 %v3476_v42, %v4686_v36  ;;  %v1224_v11 = vpop.f32.mrb[47].mxu1 }
 0x177   :  { %v3694_v27 = vpop.eup %3693  ;;  %v2576_v12 = vmul.f32 %v3692_v49, %v4933_v52  ;;  %3713 = vrcp.f32 %v2390_v25  ;;  %v5087_v55 = vadd.f32 %v4691_v39, %v2074_v48  ;;  %v3477_v56 = vadd.f32 %v3404_v40, %v3306_v54  ;;  %v1869_v17 = vpop.f32.mrb[47].mxu0  ;;  %v5112_v30 = vld [vmem:[%s5373_s5] ss:$0 sm:$0xff] }
 0x178   :  { %v3696_v28 = vpop.eup %3695  ;;  %v2579_v13 = vmul.f32 %v3694_v27, %v4947_v53  ;;  %3715 = vrcp.f32 %v2393_v57  ;;  %v5091_v59 = vadd.f32 %v4691_v39, %v2073_v46  ;;  %v3478_v60 = vadd.f32 %v1869_v17, %v1224_v11  ;;  %v3309_v23 = vpop.f32.mrb[48].mxu1 }
 0x179   :  { %v3698_v33 = vpop.eup %3697  ;;  %2640 = vst.msk [vmem:[%s5374_s6 + $0xe0] sm:$0xff] %vm735_vm2, %v2576_v12  ;;  %v2392_v52 = vadd.f32 1.0, %v3696_v28  ;;  %3717 = vpow2.f32 %v2919_v22  ;;  %v2921_v14 = vmul.f32 -1.442695, %v5087_v55  ;;  %v2076_v0 = vmul.f32 %v3477_v56, %v4686_v36  ;;  %v3407_v47 = vpop.f32.mrb[48].mxu0 }
 0x17a   :  { %v3700_v1 = vpop.eup %3699  ;;  %2643 = vst.msk [vmem:[%s5374_s6 + $0xf8] sm:$0xff] %vm735_vm2, %v2579_v13  ;;  %v2395_v53 = vadd.f32 1.0, %v3698_v33  ;;  %3719 = vpow2.f32 %v2918_v50  ;;  %v2920_v34 = vmul.f32 -1.442695, %v5091_v59  ;;  %v2075_v18 = vmul.f32 %v3478_v60, %v4686_v36  ;;  %v1234_v63 = vpop.f32.mrb[49].mxu1 }
 0x17b   :  { %v3702_v3 = vpop.eup %3701  ;;  %v2578_v9 = vmul.f32 %v3700_v1, %v4954_v24  ;;  %3721 = vrcp.f32 %v2392_v52  ;;  %v5107_v29 = vadd.f32 %v4691_v39, %v2076_v0  ;;  %v3479_v35 = vadd.f32 %v3407_v47, %v3309_v23  ;;  %v1879_v44 = vpop.f32.mrb[49].mxu0 }
 0x17c   :  { %v3704_v19 = vpop.eup %3703  ;;  %3723 = vrcp.f32 %v2395_v53  ;;  %v2394_v6 = vadd.f32 1.0, %v3702_v3  ;;  %v5115_v36 = vadd.f32 %v5112_v30, %v2075_v18  ;;  %v3480_v20 = vadd.f32 %v1879_v44, %v1234_v63  ;;  %v3312_v15 = vpop.f32.mrb[50].mxu1 }
 0x17d   :  { %v3706_v7 = vpop.eup %3705  ;;  %2642 = vst.msk [vmem:[%s5374_s6 + $0xf0] sm:$0xff] %vm735_vm2, %v2578_v9  ;;  %v2581_v39 = vmul.f32 %v3704_v19, %v4967_v41  ;;  %3725 = vpow2.f32 %v2921_v14  ;;  %v2923_v24 = vmul.f32 -1.442695, %v5107_v29  ;;  %v2078_v37 = vmul.f32 %v5126_v10, %v3479_v35  ;;  %v3410_v41 = vpop.f32.mrb[50].mxu0 }
 0x17e   :  { %v3708_v43 = vpop.eup %3707  ;;  %v2580_v38 = vmul.f32 %v3706_v7, %v4974_v26  ;;  %3727 = vrcp.f32 %v2394_v6  ;;  %v2922_v31 = vmul.f32 -1.442695, %v5115_v36  ;;  %v2077_v21 = vmul.f32 %v5126_v10, %v3480_v20  ;;  %v1244_v42 = vpop.f32.mrb[51].mxu1 }
 0x17f   :  { %v3710_v45 = vpop.eup %3709  ;;  %2645 = vst.msk [vmem:[%s5374_s6 + $0x108] sm:$0xff] %vm735_vm2, %v2581_v39  ;;  %v2583_v25 = vmul.f32 %v3708_v43, %v4987_v58  ;;  %3729 = vpow2.f32 %v2920_v34  ;;  %v5138_v22 = vadd.f32 %v5112_v30, %v2078_v37  ;;  %v3481_v26 = vadd.f32 %v3410_v41, %v3312_v15  ;;  %v1889_v48 = vpop.f32.mrb[51].mxu0 }
 0x180   :  { %v3712_v54 = vpop.eup %3711  ;;  %2644 = vst.msk [vmem:[%s5374_s6 + $0x100] sm:$0xff] %vm735_vm2, %v2580_v38  ;;  %v2397_v49 = vadd.f32 1.0, %v3710_v45  ;;  %3731 = vpow2.f32 %v2923_v24  ;;  %v5145_v57 = vadd.f32 %v5112_v30, %v2077_v21  ;;  %v3482_v50 = vadd.f32 %v1889_v48, %v1244_v42  ;;  %v3315_v27 = vpop.f32.mrb[52].mxu1 }
 0x181   :  { %v3714_v46 = vpop.eup %3713  ;;  %2647 = vst.msk [vmem:[%s5374_s6 + $0x118] sm:$0xff] %vm735_vm2, %v2583_v25  ;;  %v2396_v58 = vadd.f32 1.0, %v3712_v54  ;;  %3733 = vpow2.f32 %v2922_v31  ;;  %v2925_v40 = vmul.f32 -1.442695, %v5138_v22  ;;  %v2080_v11 = vmul.f32 %v5126_v10, %v3481_v26  ;;  %v3413_v13 = vpop.f32.mrb[52].mxu0 }
 0x182   :  { %v3716_v12 = vpop.eup %3715  ;;  %v2582_v56 = vmul.f32 %v3714_v46, %v4991_v62  ;;  %3735 = vrcp.f32 %v2397_v49  ;;  %v2924_v17 = vmul.f32 -1.442695, %v5145_v57  ;;  %v2079_v28 = vmul.f32 %v5126_v10, %v3482_v50  ;;  %v1254_v60 = vpop.f32.mrb[53].mxu1 }
 0x183   :  { %v3718_v33 = vpop.eup %3717  ;;  %v2585_v52 = vmul.f32 %v3716_v12, %v5011_v4  ;;  %3737 = vrcp.f32 %v2396_v58  ;;  %v5158_v14 = vadd.f32 %v5112_v30, %v2080_v11  ;;  %v3483_v0 = vadd.f32 %v3413_v13, %v3315_v27  ;;  %v1899_v23 = vpop.f32.mrb[53].mxu0 }
 0x184   :  { %v3720_v1 = vpop.eup %3719  ;;  %2646 = vst.msk [vmem:[%s5374_s6 + $0x110] sm:$0xff] %vm735_vm2, %v2582_v56  ;;  %v2399_v62 = vadd.f32 1.0, %v3718_v33  ;;  %3739 = vpow2.f32 %v2925_v40  ;;  %v5165_v53 = vadd.f32 %v5112_v30, %v2079_v28  ;;  %v3484_v34 = vadd.f32 %v1899_v23, %v1254_v60  ;;  %v3318_v3 = vpop.f32.mrb[54].mxu1 }
 0x185   :  { %v3722_v18 = vpop.eup %3721  ;;  %2649 = vst.msk [vmem:[%s5374_s6 + $0x128] sm:$0xff] %vm735_vm2, %v2585_v52  ;;  %v2398_v4 = vadd.f32 1.0, %v3720_v1  ;;  %3741 = vpow2.f32 %v2924_v17  ;;  %v2927_v47 = vmul.f32 -1.442695, %v5158_v14  ;;  %v2082_v63 = vmul.f32 %v5126_v10, %v3483_v0  ;;  %v3416_v6 = vpop.f32.mrb[54].mxu0 }
 0x186   :  { %v3724_v9 = vpop.eup %3723  ;;  %v2584_v35 = vmul.f32 %v3722_v18, %v5015_v8  ;;  %3743 = vrcp.f32 %v2399_v62  ;;  %v2926_v44 = vmul.f32 -1.442695, %v5165_v53  ;;  %v2081_v19 = vmul.f32 %v5126_v10, %v3484_v34  ;;  %v1264_v20 = vpop.f32.mrb[55].mxu1 }
 0x187   :  { %v3726_v7 = vpop.eup %3725  ;;  %v2587_v39 = vmul.f32 %v3724_v9, %v5031_v32  ;;  %3745 = vrcp.f32 %v2398_v4  ;;  %v5178_v24 = vadd.f32 %v5112_v30, %v2082_v63  ;;  %v3485_v37 = vadd.f32 %v3416_v6, %v3318_v3  ;;  %v1909_v15 = vpop.f32.mrb[55].mxu0 }
 0x188   :  { %v3728_v43 = vpop.eup %3727  ;;  %2648 = vst.msk [vmem:[%s5374_s6 + $0x120] sm:$0xff] %vm735_vm2, %v2584_v35  ;;  %v2401_v8 = vadd.f32 1.0, %v3726_v7  ;;  %3747 = vpow2.f32 %v2927_v47  ;;  %v5185_v38 = vadd.f32 %v5112_v30, %v2081_v19  ;;  %v3486_v31 = vadd.f32 %v1909_v15, %v1264_v20  ;;  %v3321_v45 = vpop.f32.mrb[56].mxu1 }
 0x189   :  { %v3730_v21 = vpop.eup %3729  ;;  %2651 = vst.msk [vmem:[%s5374_s6 + $0x138] sm:$0xff] %vm735_vm2, %v2587_v39  ;;  %v2586_v32 = vmul.f32 %v3728_v43, %v5035_v51  ;;  %3749 = vpow2.f32 %v2926_v44  ;;  %v2929_v41 = vmul.f32 -1.442695, %v5178_v24  ;;  %v2084_v42 = vmul.f32 %v5126_v10, %v3485_v37  ;;  %v3419_v49 = vpop.f32.mrb[56].mxu0 }
 0x18a   :  { %v3732_v25 = vpop.eup %3731  ;;  %3751 = vrcp.f32 %v2401_v8  ;;  %v2400_v26 = vadd.f32 1.0, %v3730_v21  ;;  %v2928_v48 = vmul.f32 -1.442695, %v5185_v38  ;;  %v2083_v54 = vmul.f32 %v5126_v10, %v3486_v31  ;;  %v1274_v50 = vpop.f32.mrb[57].mxu1 }
 0x18b   :  { %v3734_v46 = vpop.eup %3733  ;;  %2650 = vst.msk [vmem:[%s5374_s6 + $0x130] sm:$0xff] %vm735_vm2, %v2586_v32  ;;  %v2403_v51 = vadd.f32 1.0, %v3732_v25  ;;  %3753 = vpow2.f32 %v2929_v41  ;;  %v5201_v58 = vadd.f32 %v5112_v30, %v2084_v42  ;;  %v3487_v40 = vadd.f32 %v3419_v49, %v3321_v45  ;;  %v1919_v11 = vpop.f32.mrb[57].mxu0 }
 0x18c   :  { %v3736_v27 = vpop.eup %3735  ;;  %3755 = vrcp.f32 %v2400_v26  ;;  %v2402_v12 = vadd.f32 1.0, %v3734_v46  ;;  %v5204_v56 = vadd.f32 %v5112_v30, %v2083_v54  ;;  %v3488_v17 = vadd.f32 %v1919_v11, %v1274_v50  ;;  %v3324_v52 = vpop.f32.mrb[58].mxu1 }
 0x18d   :  { %v3738_v28 = vpop.eup %3737  ;;  %v2589_v13 = vmul.f32 %v3736_v27, %v5052_v61  ;;  %3757 = vrcp.f32 %v2403_v51  ;;  %v2931_v60 = vmul.f32 -1.442695, %v5201_v58  ;;  %v2086_v33 = vmul.f32 %v5126_v10, %v3487_v40  ;;  %v3422_v34 = vpop.f32.mrb[58].mxu0 }
 0x18e   :  { %v3740_v0 = vpop.eup %3739  ;;  %v2588_v23 = vmul.f32 %v3738_v28, %v5055_v2  ;;  %3759 = vrcp.f32 %v2402_v12  ;;  %v2930_v1 = vmul.f32 -1.442695, %v5204_v56  ;;  %v2085_v62 = vmul.f32 %v5126_v10, %v3488_v17  ;;  %v1284_v18 = vpop.f32.mrb[59].mxu1 }
 0x18f   :  { %v3742_v4 = vpop.eup %3741  ;;  %2653 = vst.msk [vmem:[%s5374_s6 + $0x148] sm:$0xff] %vm735_vm2, %v2589_v13  ;;  %v2405_v61 = vadd.f32 1.0, %v3740_v0  ;;  %3761 = vpow2.f32 %v2928_v48  ;;  %v5217_v47 = vadd.f32 %v5112_v30, %v2086_v33  ;;  %v3489_v63 = vadd.f32 %v3422_v34, %v3324_v52  ;;  %v1929_v2 = vpop.f32.mrb[59].mxu0 }
 0x190   :  { %v3744_v3 = vpop.eup %3743  ;;  %2652 = vst.msk [vmem:[%s5374_s6 + $0x140] sm:$0xff] %vm735_vm2, %v2588_v23  ;;  %v2404_v9 = vadd.f32 1.0, %v3742_v4  ;;  %3763 = vpow2.f32 %v2931_v60  ;;  %v5224_v35 = vadd.f32 %v5112_v30, %v2085_v62  ;;  %v3490_v44 = vadd.f32 %v1929_v2, %v1284_v18  ;;  %v3327_v39 = vpop.f32.mrb[60].mxu1 }
 0x191   :  { %v3746_v19 = vpop.eup %3745  ;;  %v2591_v6 = vmul.f32 %v3744_v3, %v5067_v5  ;;  %3765 = vrcp.f32 %v2405_v61  ;;  %v2933_v20 = vmul.f32 -1.442695, %v5217_v47  ;;  %v2088_v7 = vmul.f32 %v5126_v10, %v3489_v63  ;;  %v3425_v31 = vpop.f32.mrb[60].mxu0 }
 0x192   :  { %v3748_v37 = vpop.eup %3747  ;;  %v2590_v15 = vmul.f32 %v3746_v19, %v5071_v16  ;;  %3767 = vrcp.f32 %v2404_v9  ;;  %v2932_v43 = vmul.f32 -1.442695, %v5224_v35  ;;  %v2087_v8 = vmul.f32 %v5126_v10, %v3490_v44  ;;  %v1294_v21 = vpop.f32.mrb[61].mxu1 }
 0x193   :  { %v3750_v32 = vpop.eup %3749  ;;  %2655 = vst.msk [vmem:[%s5374_s6 + $0x158] sm:$0xff] %vm735_vm2, %v2591_v6  ;;  %v2407_v5 = vadd.f32 1.0, %v3748_v37  ;;  %3769 = vpow2.f32 %v2930_v1  ;;  %v5237_v41 = vadd.f32 %v5112_v30, %v2088_v7  ;;  %v3491_v42 = vadd.f32 %v3425_v31, %v3327_v39  ;;  %v1939_v16 = vpop.f32.mrb[61].mxu0 }
 0x194   :  { %v3752_v45 = vpop.eup %3751  ;;  %2654 = vst.msk [vmem:[%s5374_s6 + $0x150] sm:$0xff] %vm735_vm2, %v2590_v15  ;;  %v2406_v25 = vadd.f32 1.0, %v3750_v32  ;;  %3771 = vpow2.f32 %v2933_v20  ;;  %v5244_v26 = vadd.f32 %v5112_v30, %v2087_v8  ;;  %v3492_v48 = vadd.f32 %v1939_v16, %v1294_v21  ;;  %v3330_v51 = vpop.f32.mrb[62].mxu1 }
 0x195   :  { %v3754_v54 = vpop.eup %3753  ;;  %v2593_v49 = vmul.f32 %v3752_v45, %v5087_v55  ;;  %3773 = vrcp.f32 %v2407_v5  ;;  %v2935_v50 = vmul.f32 -1.442695, %v5237_v41  ;;  %v2090_v46 = vmul.f32 %v5126_v10, %v3491_v42  ;;  %v3428_v17 = vpop.f32.mrb[62].mxu0 }
 0x196   :  { %v3756_v40 = vpop.eup %3755  ;;  %3775 = vrcp.f32 %v2406_v25  ;;  %v2409_v11 = vadd.f32 1.0, %v3754_v54  ;;  %v2934_v27 = vmul.f32 -1.442695, %v5244_v26  ;;  %v2089_v12 = vmul.f32 %v5126_v10, %v3492_v48  ;;  %v1304_v28 = vpop.f32.mrb[63].mxu1 }
 0x197   :  { %v3758_v13 = vpop.eup %3757  ;;  %2657 = vst.msk [vmem:[%s5374_s6 + $0x168] sm:$0xff] %vm735_vm2, %v2593_v49  ;;  %v2592_v55 = vmul.f32 %v3756_v40, %v5091_v59  ;;  %3777 = vpow2.f32 %v2932_v43  ;;  %v5257_v60 = vadd.f32 %v5112_v30, %v2090_v46  ;;  %v3493_v33 = vadd.f32 %v3428_v17, %v3330_v51  ;;  %v1949_v52 = vpop.f32.mrb[63].mxu0 }
 0x198   :  { %v3760_v0 = vpop.eup %3759  ;;  %v2595_v23 = vmul.f32 %v3758_v13, %v5107_v29  ;;  %3779 = vrcp.f32 %v2409_v11  ;;  %v5261_v1 = vadd.f32 %v5112_v30, %v2089_v12  ;;  %v3494_v62 = vadd.f32 %v1949_v52, %v1304_v28 }
 0x199   :  { %v3762_v34 = vpop.eup %3761  ;;  %2656 = vst.msk [vmem:[%s5374_s6 + $0x160] sm:$0xff] %vm735_vm2, %v2592_v55  ;;  %v2594_v59 = vmul.f32 %v3760_v0, %v5115_v36  ;;  %3781 = vpow2.f32 %v2935_v50  ;;  %v2937_v18 = vmul.f32 -1.442695, %v5257_v60  ;;  %v2092_v4 = vmul.f32 %v5126_v10, %v3493_v33 }
 0x19a   :  { %v3764_v61 = vpop.eup %3763  ;;  %2659 = vst.msk [vmem:[%s5374_s6 + $0x178] sm:$0xff] %vm735_vm2, %v2595_v23  ;;  %v2408_v29 = vadd.f32 1.0, %v3762_v34  ;;  %3783 = vpow2.f32 %v2934_v27  ;;  %v2936_v63 = vmul.f32 -1.442695, %v5261_v1  ;;  %v2091_v2 = vmul.f32 %v5126_v10, %v3494_v62 }
 0x19b   :  { %v3766_v3 = vpop.eup %3765  ;;  %2658 = vst.msk [vmem:[%s5374_s6 + $0x170] sm:$0xff] %vm735_vm2, %v2594_v59  ;;  %v2411_v36 = vadd.f32 1.0, %v3764_v61  ;;  %3785 = vpow2.f32 %v2937_v18  ;;  %v5281_v9 = vadd.f32 %v5112_v30, %v2092_v4 }
 0x19c   :  { %v3768_v44 = vpop.eup %3767  ;;  %v2597_v19 = vmul.f32 %v3766_v3, %v5138_v22  ;;  %3787 = vrcp.f32 %v2408_v29  ;;  %v5285_v6 = vadd.f32 %v5112_v30, %v2091_v2 }
 0x19d   :  { %v3770_v20 = vpop.eup %3769  ;;  %v2596_v10 = vmul.f32 %v3768_v44, %v5145_v57  ;;  %3789 = vrcp.f32 %v2411_v36  ;;  %v2939_v7 = vmul.f32 -1.442695, %v5281_v9 }
 0x19e   :  { %v3772_v39 = vpop.eup %3771  ;;  %2661 = vst.msk [vmem:[%s5374_s6 + $0x188] sm:$0xff] %vm735_vm2, %v2597_v19  ;;  %v2410_v37 = vadd.f32 1.0, %v3770_v20  ;;  %3791 = vpow2.f32 %v2936_v63  ;;  %v2938_v22 = vmul.f32 -1.442695, %v5285_v6 }
 0x19f   :  { %v3774_v15 = vpop.eup %3773  ;;  %2660 = vst.msk [vmem:[%s5374_s6 + $0x180] sm:$0xff] %vm735_vm2, %v2596_v10  ;;  %v2413_v30 = vadd.f32 1.0, %v3772_v39  ;;  %3793 = vpow2.f32 %v2939_v7 }
 0x1a0   :  { %v3776_v57 = vpop.eup %3775  ;;  %v2599_v43 = vmul.f32 %v3774_v15, %v5158_v14  ;;  %3795 = vrcp.f32 %v2410_v37 }
 0x1a1   :  { %v3778_v8 = vpop.eup %3777  ;;  %v2598_v31 = vmul.f32 %v3776_v57, %v5165_v53  ;;  %3797 = vrcp.f32 %v2413_v30 }
 0x1a2   :  { %v3780_v21 = vpop.eup %3779  ;;  %2663 = vst.msk [vmem:[%s5374_s6 + $0x198] sm:$0xff] %vm735_vm2, %v2599_v43  ;;  %v2412_v32 = vadd.f32 1.0, %v3778_v8  ;;  %3799 = vpow2.f32 %v2938_v22 }
 0x1a3   :  { %v3782_v5 = vpop.eup %3781  ;;  %2662 = vst.msk [vmem:[%s5374_s6 + $0x190] sm:$0xff] %vm735_vm2, %v2598_v31  ;;  %v2601_v14 = vmul.f32 %v3780_v21, %v5178_v24 }
 0x1a4   :  { %v3784_v42 = vpop.eup %3783  ;;  %3801 = vrcp.f32 %v2412_v32  ;;  %v2415_v53 = vadd.f32 1.0, %v3782_v5 }
 0x1a5   :  { %v3786_v16 = vpop.eup %3785  ;;  %2665 = vst.msk [vmem:[%s5374_s6 + $0x1a8] sm:$0xff] %vm735_vm2, %v2601_v14  ;;  %v2414_v45 = vadd.f32 1.0, %v3784_v42 }
 0x1a6   :  { %v3788_v25 = vpop.eup %3787  ;;  %3803 = vrcp.f32 %v2415_v53  ;;  %v2417_v48 = vadd.f32 1.0, %v3786_v16 }
 0x1a7   :  { %v3790_v54 = vpop.eup %3789  ;;  %v2600_v49 = vmul.f32 %v3788_v25, %v5185_v38  ;;  %3805 = vrcp.f32 %v2414_v45 }
 0x1a8   :  { %v3792_v50 = vpop.eup %3791  ;;  %v2603_v24 = vmul.f32 %v3790_v54, %v5201_v58  ;;  %3807 = vrcp.f32 %v2417_v48 }
 0x1a9   :  { %v3794_v46 = vpop.eup %3793  ;;  %2664 = vst.msk [vmem:[%s5374_s6 + $0x1a0] sm:$0xff] %vm735_vm2, %v2600_v49  ;;  %v2416_v51 = vadd.f32 1.0, %v3792_v50 }
 0x1aa   :  { %v3796_v40 = vpop.eup %3795  ;;  %2667 = vst.msk [vmem:[%s5374_s6 + $0x1b8] sm:$0xff] %vm735_vm2, %v2603_v24  ;;  %v2419_v11 = vadd.f32 1.0, %v3794_v46 }
 0x1ab   :  { %v3798_v38 = vpop.eup %3797  ;;  %v2602_v27 = vmul.f32 %v3796_v40, %v5204_v56  ;;  %3809 = vrcp.f32 %v2416_v51 }
 0x1ac   :  { %v3800_v58 = vpop.eup %3799  ;;  %v2605_v12 = vmul.f32 %v3798_v38, %v5217_v47  ;;  %3811 = vrcp.f32 %v2419_v11 }
 0x1ad   :  { %2666 = vst.msk [vmem:[%s5374_s6 + $0x1b0] sm:$0xff] %vm735_vm2, %v2602_v27  ;;  %v2418_v17 = vadd.f32 1.0, %v3800_v58 }
 0x1ae   :  { %v3802_v28 = vpop.eup %3801  ;;  %2669 = vst.msk [vmem:[%s5374_s6 + $0x1c8] sm:$0xff] %vm735_vm2, %v2605_v12 }
 0x1af   :  { %v2604_v13 = vmul.f32 %v3802_v28, %v5224_v35  ;;  %3813 = vrcp.f32 %v2418_v17 }
 0x1b0   :  { %v3804_v56 = vpop.eup %3803 }
 0x1b1   :  { %v3806_v55 = vpop.eup %3805  ;;  %2668 = vst.msk [vmem:[%s5374_s6 + $0x1c0] sm:$0xff] %vm735_vm2, %v2604_v13  ;;  %v2607_v47 = vmul.f32 %v3804_v56, %v5237_v41 }
 0x1b2   :  { %v3808_v33 = vpop.eup %3807  ;;  %v2606_v52 = vmul.f32 %v3806_v55, %v5244_v26 }
 0x1b3   :  { %2671 = vst.msk [vmem:[%s5374_s6 + $0x1d8] sm:$0xff] %vm735_vm2, %v2607_v47  ;;  %v2609_v35 = vmul.f32 %v3808_v33, %v5257_v60 }
 0x1b4   :  { %2670 = vst.msk [vmem:[%s5374_s6 + $0x1d0] sm:$0xff] %vm735_vm2, %v2606_v52 }
 0x1b5   :  { %v3810_v0 = vpop.eup %3809  ;;  %2673 = vst.msk [vmem:[%s5374_s6 + $0x1e8] sm:$0xff] %vm735_vm2, %v2609_v35 }
 0x1b6   :  { %v3812_v41 = vpop.eup %3811  ;;  %v2608_v26 = vmul.f32 %v3810_v0, %v5261_v1 }
 0x1b7   :  { %v2611_v23 = vmul.f32 %v3812_v41, %v5281_v9 }
 0x1b8   :  { %2672 = vst.msk [vmem:[%s5374_s6 + $0x1e0] sm:$0xff] %vm735_vm2, %v2608_v26 }
 0x1b9   :  { %v3814_v60 = vpop.eup %3813  ;;  %2675 = vst.msk [vmem:[%s5374_s6 + $0x1f8] sm:$0xff] %vm735_vm2, %v2611_v23 }
 0x1ba   :  { %v2610_v62 = vmul.f32 %v3814_v60, %v5285_v6 }
 0x1bc   :  { %2674 = vst.msk [vmem:[%s5374_s6 + $0x1f0] sm:$0xff] %vm735_vm2, %v2610_v62 }

// kernel: c2f_forward.5
= control target key start
LH: loop header
LB: loop body
LE: loop exit
PB: predicated region body
PF: predicated region fallthrough
CT: control target
= control target key end

     0   :  { %s7482_s30 = smov 0   ;;  %s7484_s10 = smov 0   ;;  %s8969_s0 = inlined_call_operand.vmem [shape: f32[2,16,16,4], index: 0, kind: input, shape index: {}, may-alias: {0,1,2}]   ;;  %s8970_s1 = inlined_call_operand.vmem [shape: f32[2,16,16,4], index: 1, kind: input, shape index: {}, may-alias: {0,1,2}]   ;;  %s8971_s2 = inlined_call_operand.vmem [shape: f32[2,16,16,4], index: 2, kind: input, shape index: {}, may-alias: {0,1,2}]   ;;  %s8972_s3 = inlined_call_operand.vmem [shape: f32[36,4], index: 3, kind: input, shape index: {}]   ;;  %s8973_s4 = inlined_call_operand.vmem [shape: f32[1,4], index: 4, kind: input, shape index: {}]   ;;  %s8974_s5 = inlined_call_operand.vmem [shape: f32[1,4], index: 5, kind: input, shape index: {}]   ;;  %s8975_s6 = inlined_call_operand.vmem [shape: f32[36,4], index: 6, kind: input, shape index: {}]   ;;  %s8976_s7 = inlined_call_operand.vmem [shape: f32[1,4], index: 7, kind: input, shape index: {}]   ;;  %s8977_s8 = inlined_call_operand.vmem [shape: f32[1,4], index: 8, kind: input, shape index: {}]   ;;  %s8978_s9 = inlined_call_operand.vmem [shape: f32[2,16,16,4], index: 9, kind: output, shape index: {}]  }
   0x1   :  { %s7486_s11 = smov 0   ;;  %s7488_s12 = smov 0  }
   0x2   :  { %s7490_s13 = smov 0  }
   0x3 LB: > { %s28_s14 = sadd.s32 1, %s7417_s11  ;;  %s31_s15 = sadd.s32 1, %s7421_s12  ;;  %s7425_s13 = sphi %s7490_s13, %s19_s13   ;;  %s7421_s12 = sphi %s7488_s12, %s8984_s12   ;;  %s7417_s11 = sphi %s7486_s11, %s8983_s11   ;;  %s7413_s10 = sphi %s7484_s10, %s8982_s10   ;;  %s7409_s30 = sphi %s7482_s30, %s8981_s30  }
   0x4   : > { %p29_p0 = scmp.ge.s32.totalorder %s28_s14, 2  ;;  %p5628_p1 = scmp.ge.s32.totalorder %s7425_s13, 1 }
   0x5   : > { %p377_p2 = scmp.lt.s32.totalorder %s7425_s13, 5 }
   0x6   : > { %s8986_s14 = smov (%p29_p0, %s28_s14), 0  ;;  %s8988_s15 = smov (!%p29_p0, %s31_s15), %s7421_s12 }
   0x7   : > { %p378_p3 = pnand %p5628_p1, %p377_p2  ;;  %p33_p4 = scmp.ge.s32.totalorder %s8988_s15, 2 }
   0x8   : > { %vm511_vm0 = vcmask (!%p378_p3), 24576   ;;  %s5629_s16 = sshll.u32 (!%p378_p3), %s7409_s30, 2  ;;  %p456_p5 = scmp.lt.s32.totalorder (!%p378_p3), %s7413_s10, 1  ;;  %v7427_v0 = vmov (!%p378_p3), 0.0   ;;  %vm553_vm1 = vcmask (!%p378_p3), 31744  }
   0x9   : > { %s8990_s15 = smov (%p33_p4, %s8988_s15), 0  ;;  %381 = sbr.rel (%p378_p3) target bundleno = 1183 (0x49f), region = 56 }
   0xa   : > { %8979 = sst [smem:[#allocation4_spill]] %s8990_s15  ;;  %512 = vst.msk [vmem:[#allocation2] sm:$0x1] (!%p378_p3), %vm511_vm0, %v7427_v0  ;;  %513 = vst.msk [vmem:[#allocation2 + $0x18] sm:$0x1] (!%p378_p3), %vm511_vm0, %v7427_v0  ;;  %s5630_s17 = sadd.s32 (!%p378_p3), 4294967295, %s5629_s16 }
   0xb   : > { %514 = vst.msk [vmem:[#allocation2 + $0x30] sm:$0x1] (!%p378_p3), %vm511_vm0, %v7427_v0  ;;  %515 = vst.msk [vmem:[#allocation2 + $0x48] sm:$0x1] (!%p378_p3), %vm511_vm0, %v7427_v0  ;;  %s5635_s18 = sshll.u32 (!%p378_p3), %s7409_s30, 3  ;;  %p453_p6 = scmp.gt.s32.totalorder (!%p378_p3), %s5630_s17, 0 }
   0xc   : > { %516 = vst.msk [vmem:[#allocation2 + $0x60] sm:$0x1] (!%p378_p3), %vm511_vm0, %v7427_v0  ;;  %517 = vst.msk [vmem:[#allocation2 + $0x78] sm:$0x1] (!%p378_p3), %vm511_vm0, %v7427_v0  ;;  %p473_p7 = scmp.lt.s32.totalorder (!%p378_p3), %s5635_s18, 15  ;;  %s6043_s21 = sadd.s32 (!%p378_p3), 4, %s5629_s16 }
   0xd   : > { %518 = vst.msk [vmem:[#allocation2 + $0x90] sm:$0x1] (!%p378_p3), %vm511_vm0, %v7427_v0  ;;  %519 = vst.msk [vmem:[#allocation2 + $0xa8] sm:$0x1] (!%p378_p3), %vm511_vm0, %v7427_v0  ;;  %p483_p9 = scmp.lt.s32.totalorder (!%p378_p3), %s6043_s21, 7  ;;  %p5648_p11 = scmp.le.s32.totalorder (!%p378_p3), %s7409_s30, 0 }
   0xe   : > { %520 = vst.msk [vmem:[#allocation2 + $0xc0] sm:$0x1] (!%p378_p3), %vm511_vm0, %v7427_v0  ;;  %521 = vst.msk [vmem:[#allocation2 + $0xd8] sm:$0x1] (!%p378_p3), %vm511_vm0, %v7427_v0 }
   0xf   : > { %522 = vst.msk [vmem:[#allocation2 + $0xf0] sm:$0x1] (!%p378_p3), %vm511_vm0, %v7427_v0  ;;  %523 = vst.msk [vmem:[#allocation2 + $0x108] sm:$0x1] (!%p378_p3), %vm511_vm0, %v7427_v0 }
  0x10   : > { %524 = vst.msk [vmem:[#allocation2 + $0x11] sm:$0x1] %vm511_vm0, %v7427_v0  ;;  %525 = vst.msk [vmem:[#allocation2 + $0x29] sm:$0x1] %vm511_vm0, %v7427_v0  ;;  %s8992_s10 = smov (!%p456_p5, %s7413_s10), 1  ;;  %s8994_s17 = smov (!%p453_p6, %s5630_s17), 0 }
  0x11   : > { %526 = vst.msk [vmem:[#allocation2 + $0x41] sm:$0x1] %vm511_vm0, %v7427_v0  ;;  %527 = vst.msk [vmem:[#allocation2 + $0x59] sm:$0x1] %vm511_vm0, %v7427_v0  ;;  %s5631_s19 = sshll.u32 %s8994_s17, 1  ;;  %s7572_s20 = sshll.u32 %s8992_s10, 5 }
  0x12   : > { %528 = vst.msk [vmem:[#allocation2 + $0x71] sm:$0x1] %vm511_vm0, %v7427_v0  ;;  %529 = vst.msk [vmem:[#allocation2 + $0x89] sm:$0x1] %vm511_vm0, %v7427_v0  ;;  %p458_p8 = scmp.lt.s32.totalorder %s5631_s19, 15  ;;  %s8996_s18 = smov (!%p473_p7, %s5635_s18), 15 }
  0x13   : > { %530 = vst.msk [vmem:[#allocation2 + $0xa1] sm:$0x1] %vm511_vm0, %v7427_v0  ;;  %531 = vst.msk [vmem:[#allocation2 + $0xb9] sm:$0x1] %vm511_vm0, %v7427_v0  ;;  %s5636_s22 = sshll.u32 %s8996_s18, 1  ;;  %s9000_s21 = smov (!%p483_p9, %s6043_s21), 7 }
  0x14   : > { %532 = vst.msk [vmem:[#allocation2 + $0xd1] sm:$0x1] %vm511_vm0, %v7427_v0  ;;  %533 = vst.msk [vmem:[#allocation2 + $0xe9] sm:$0x1] %vm511_vm0, %v7427_v0  ;;  %s8998_s19 = smov (!%p458_p8, %s5631_s19), 15  ;;  %s477_s24 = sadd.s32 %s5636_s22, %s7572_s20 }
  0x15   : > { %534 = vst.msk [vmem:[#allocation2 + $0x101] sm:$0x1] %vm511_vm0, %v7427_v0  ;;  %535 = vst.msk [vmem:[#allocation2 + $0x119] sm:$0x1] %vm511_vm0, %v7427_v0  ;;  %s5632_s23 = sshll.u32 %s8998_s19, 1  ;;  %s5638_s26 = sshll.u32 %s477_s24, 3 }
  0x16   : > { %s462_s25 = sadd.s32 %s7572_s20, %s5632_s23  ;;  %s7581_s10 = scalar_lea.vmem %s8970_s1, %s5638_s26 }
  0x17   : > { %s5634_s27 = sshll.u32 %s462_s25, 3  ;;  %s7591_s22 = scalar_lea.vmem %s8978_s9, %s5638_s26  ;;  %v536_v1 = vld [vmem:[%s7581_s10] sm:$0xff]  ;;  %v537_v2 = vld [vmem:[%s7581_s10 + $0x8] sm:$0xff]  ;;  %v538_v3 = vld [vmem:[%s7581_s10 + $0x10] sm:$0xff] }
  0x18   : > { %s7586_s16 = scalar_lea.vmem %s8969_s0, %s5634_s27  ;;  %554 = vst.msk [vmem:[#allocation2 + $0x31] sm:$0xff] %vm553_vm1, %v536_v1  ;;  %555 = vst.msk [vmem:[#allocation2 + $0x39] sm:$0xff] %vm553_vm1, %v537_v2  ;;  %v539_v4 = vld [vmem:[%s7581_s10 + $0x18] sm:$0xff]  ;;  %v540_v5 = vld [vmem:[%s7581_s10 + $0x20] sm:$0xff]  ;;  %s5640_s15 = sshll.u32 %s9000_s21, 1 }
  0x19   : > { %556 = vst.msk [vmem:[#allocation2 + $0x49] sm:$0xff] %vm553_vm1, %v538_v3  ;;  %v541_v6 = vld [vmem:[%s7581_s10 + $0x28] sm:$0xff]  ;;  %557 = vst.msk [vmem:[#allocation2 + $0x51] sm:$0xff] %vm553_vm1, %v539_v4  ;;  %v542_v7 = vld [vmem:[%s7581_s10 + $0x30] sm:$0xff]  ;;  %p488_p10 = scmp.lt.s32.totalorder %s5640_s15, 15  ;;  %573 = sbr.rel (%p5648_p11) target bundleno = 34 (0x22), region = 60 }
  0x1a   : > { %558 = vst.msk [vmem:[#allocation2 + $0x61] sm:$0xff] %vm553_vm1, %v540_v5  ;;  %559 = vst.msk [vmem:[#allocation2 + $0x69] sm:$0xff] %vm553_vm1, %v541_v6  ;;  %v543_v8 = vld [vmem:[%s7581_s10 + $0x38] sm:$0xff]  ;;  %v544_v9 = vld [vmem:[%s7581_s10 + $0x40] sm:$0xff] }
  0x1b   : > { %560 = vst.msk [vmem:[#allocation2 + $0x79] sm:$0xff] %vm553_vm1, %v542_v7  ;;  %561 = vst.msk [vmem:[#allocation2 + $0x81] sm:$0xff] %vm553_vm1, %v543_v8  ;;  %v545_v10 = vld [vmem:[%s7581_s10 + $0x48] sm:$0xff]  ;;  %v546_v11 = vld [vmem:[%s7581_s10 + $0x50] sm:$0xff]  ;;  %s9002_s15 = smov (!%p488_p10, %s5640_s15), 15 }
  0x1c   : > { %562 = vst.msk [vmem:[#allocation2 + $0x91] sm:$0xff] %vm553_vm1, %v544_v9  ;;  %v547_v12 = vld [vmem:[%s7581_s10 + $0x58] sm:$0xff]  ;;  %563 = vst.msk [vmem:[#allocation2 + $0x99] sm:$0xff] %vm553_vm1, %v545_v10  ;;  %v548_v13 = vld [vmem:[%s7581_s10 + $0x60] sm:$0xff]  ;;  %s5641_s21 = sshll.u32 %s9002_s15, 1 }
  0x1d   : > { %564 = vst.msk [vmem:[#allocation2 + $0xa9] sm:$0xff] %vm553_vm1, %v546_v11  ;;  %565 = vst.msk [vmem:[#allocation2 + $0xb1] sm:$0xff] %vm553_vm1, %v547_v12  ;;  %v549_v14 = vld [vmem:[%s7581_s10 + $0x68] sm:$0xff]  ;;  %v550_v15 = vld [vmem:[%s7581_s10 + $0x70] sm:$0xff]  ;;  %s492_s23 = sadd.s32 %s5641_s21, %s7572_s20 }
  0x1e   : > { %566 = vst.msk [vmem:[#allocation2 + $0xc1] sm:$0xff] %vm553_vm1, %v548_v13  ;;  %567 = vst.msk [vmem:[#allocation2 + $0xc9] sm:$0xff] %vm553_vm1, %v549_v14  ;;  %v551_v16 = vld [vmem:[%s7581_s10 + $0x78] sm:$0xff]  ;;  %s5643_s24 = sshll.u32 %s492_s23, 3  ;;  %v574_v17 = vld [vmem:[%s7586_s16] sm:$0xff] (!%p5648_p11) }
  0x1f   : > { %568 = vst.msk [vmem:[#allocation2 + $0xd9] sm:$0xff] %vm553_vm1, %v550_v15  ;;  %569 = vst.msk [vmem:[#allocation2 + $0xe1] sm:$0xff] %vm553_vm1, %v551_v16  ;;  %s494_s27 = scalar_lea.vmem %s8971_s2, %s5643_s24  ;;  %v575_v18 = vld [vmem:[%s7586_s16 + $0x8] sm:$0xff] (!%p5648_p11)  ;;  %v576_v19 = vld [vmem:[%s7586_s16 + $0x10] sm:$0xff] (!%p5648_p11) }
  0x20   : > { %578 = vst.msk [vmem:[#allocation2 + $0x1] sm:$0xff] %vm553_vm1, %v574_v17  ;;  %579 = vst.msk [vmem:[#allocation2 + $0x9] sm:$0xff] %vm553_vm1, %v575_v18  ;;  %v577_v20 = vld [vmem:[%s7586_s16 + $0x18] sm:$0xff] }
  0x21   : > { %580 = vst.msk [vmem:[#allocation2 + $0x19] sm:$0xff] %vm553_vm1, %v576_v19  ;;  %581 = vst.msk [vmem:[#allocation2 + $0x21] sm:$0xff] %vm553_vm1, %v577_v20 }
  0x22 PF: > { %p5649_p12 = scmp.ne.s32.totalorder %s7409_s30, 0 }
  0x23   : > { %v7428_v21 = vmov (!%p5649_p12), 0.0  }
  0x24   : > { %585 = sbr.rel (%p5649_p12) target bundleno = 43 (0x2b), region = 64  ;;  %586 = vst.msk [vmem:[#allocation2 + $0x1] sm:$0xff] (!%p5649_p12), %vm553_vm1, %v7428_v21  ;;  %587 = vst.msk [vmem:[#allocation2 + $0x9] sm:$0xff] (!%p5649_p12), %vm553_vm1, %v7428_v21 }
  0x25   : > { %588 = vst.msk [vmem:[#allocation2 + $0x19] sm:$0xff] (!%p5649_p12), %vm553_vm1, %v7428_v21  ;;  %589 = vst.msk [vmem:[#allocation2 + $0x21] sm:$0xff] (!%p5649_p12), %vm553_vm1, %v7428_v21 }
  0x2b PF: > { %p5650_p13 = scmp.ge.s32.totalorder %s7409_s30, 1 }
  0x2c   : > { %v594_v22 = vld [vmem:[%s494_s27] sm:$0xff] (!%p5650_p13)  ;;  %v595_v23 = vld [vmem:[%s494_s27 + $0x8] sm:$0xff] (!%p5650_p13)  ;;  %v596_v24 = vld [vmem:[%s494_s27 + $0x10] sm:$0xff] (!%p5650_p13) }
  0x2d   : > { %593 = sbr.rel (%p5650_p13) target bundleno = 52 (0x34), region = 68  ;;  %599 = vst.msk [vmem:[#allocation2 + $0xf1] sm:$0xff] (!%p5650_p13), %vm553_vm1, %v594_v22  ;;  %600 = vst.msk [vmem:[#allocation2 + $0xf9] sm:$0xff] (!%p5650_p13), %vm553_vm1, %v595_v23  ;;  %v597_v25 = vld [vmem:[%s494_s27 + $0x18] sm:$0xff] (!%p5650_p13) }
  0x2e   : > { %601 = vst.msk [vmem:[#allocation2 + $0x109] sm:$0xff] (!%p5650_p13), %vm553_vm1, %v596_v24  ;;  %602 = vst.msk [vmem:[#allocation2 + $0x111] sm:$0xff] (!%p5650_p13), %vm553_vm1, %v597_v25 }
  0x34 PF: > { %p5651_p0 = scmp.ne.s32.totalorder %s7409_s30, 1 }
  0x35   : > { %v7429_v26 = vmov (!%p5651_p0), 0.0  }
  0x36   : > { %606 = sbr.rel (%p5651_p0) target bundleno = 61 (0x3d), region = 72  ;;  %608 = vst.msk [vmem:[#allocation2 + $0xf1] sm:$0xff] (!%p5651_p0), %vm553_vm1, %v7429_v26  ;;  %609 = vst.msk [vmem:[#allocation2 + $0xf9] sm:$0xff] (!%p5651_p0), %vm553_vm1, %v7429_v26 }
  0x37   : > { %610 = vst.msk [vmem:[#allocation2 + $0x109] sm:$0xff] (!%p5651_p0), %vm553_vm1, %v7429_v26  ;;  %611 = vst.msk [vmem:[#allocation2 + $0x111] sm:$0xff] (!%p5651_p0), %vm553_vm1, %v7429_v26 }
  0x3d PF: > { %v653_v27 = vld [vmem:[%s8972_s3 + $0x4] sm:$0xf]  ;;  %vm714_vm2 = vcmask 1043456   ;;  %v634_v29 = vld [vmem:[#allocation2 + $0x9] sm:$0xff]  ;;  %3189 = vst.msk [vmem:[#allocation3] sm:$0x1] %vm511_vm0, %v7427_v0 }
  0x3e   : > { %v633_v28 = vld [vmem:[#allocation2 + $0x1] sm:$0xff]  ;;  %3190 = vst.msk [vmem:[#allocation3 + $0x18] sm:$0x1] %vm511_vm0, %v7427_v0  ;;  %3191 = vst.msk [vmem:[#allocation3 + $0x30] sm:$0x1] %vm511_vm0, %v7427_v0  ;;  %6386 = vmatprep.subr.msk.mxu0 %vm714_vm2, %v653_v27  ;;  %6908 = vmatprep.subr.msk.mxu1 %vm714_vm2, %v653_v27  ;;  %v7719_v34 = vld [vmem:[#allocation2 + $0x18] sm:$0xff] }
  0x3f   : > { %3192 = vst.msk [vmem:[#allocation3 + $0x48] sm:$0x1] %vm511_vm0, %v7427_v0  ;;  %3193 = vst.msk [vmem:[#allocation3 + $0x60] sm:$0x1] %vm511_vm0, %v7427_v0  ;;  %6388 = vmatprep.mubr.msk.f32.mxu0 %vm553_vm1, %v633_v28  ;;  %v632_v30 = vld [vmem:[%s8972_s3] sm:$0xf]  ;;  %6387 = vmatpush3.msk.msra.mxu0 %vm714_vm2, %v653_v27 }
  0x40   : > { %3194 = vst.msk [vmem:[#allocation3 + $0x78] sm:$0x1] %vm511_vm0, %v7427_v0  ;;  %3195 = vst.msk [vmem:[#allocation3 + $0x90] sm:$0x1] %vm511_vm0, %v7427_v0  ;;  %v612_v31 = vld [vmem:[#allocation2] sm:$0xff]  ;;  %6389 = vmatmul.mubr.msk.f32.vlgmr.msra.gmra.mrb[0].mxu0 %vm553_vm1, %v634_v29  ;;  %6418 = vmatprep.subr.msk.mxu0 %vm714_vm2, %v632_v30  ;;  %v613_v33 = vld [vmem:[#allocation2 + $0x8] sm:$0xff] }
  0x41   : > { %3196 = vst.msk [vmem:[#allocation3 + $0xa8] sm:$0x1] %vm511_vm0, %v7427_v0  ;;  %3197 = vst.msk [vmem:[#allocation3 + $0xc0] sm:$0x1] %vm511_vm0, %v7427_v0  ;;  %v1131_v32 = vld [vmem:[%s8972_s3 + $0x8] sm:$0xf]  ;;  %6419 = vmatpush3.msk.msra.mxu0 %vm714_vm2, %v632_v30  ;;  %6420 = vmatprep.mubr.msk.f32.mxu0 %vm553_vm1, %v612_v31 }
  0x42   : > { %3198 = vst.msk [vmem:[#allocation3 + $0xd8] sm:$0x1] %vm511_vm0, %v7427_v0  ;;  %3199 = vst.msk [vmem:[#allocation3 + $0x11] sm:$0x1] %vm511_vm0, %v7427_v0  ;;  %6450 = vmatprep.subr.msk.mxu0 %vm714_vm2, %v1131_v32  ;;  %6909 = vmatpush3.msk.msra.mxu1 %vm714_vm2, %v653_v27  ;;  %v7724_v35 = vld [vmem:[%s8972_s3 + $0xc] sm:$0xf] }
  0x43   : > { %3200 = vst.msk [vmem:[#allocation3 + $0x29] sm:$0x1] %vm511_vm0, %v7427_v0  ;;  %3201 = vst.msk [vmem:[#allocation3 + $0x41] sm:$0x1] %vm511_vm0, %v7427_v0  ;;  %v7730_v36 = vld [vmem:[#allocation2 + $0x20] sm:$0xff]  ;;  %v7732_v37 = vld [vmem:[#allocation2 + $0x30] sm:$0xff] }
  0x44   : > { %3202 = vst.msk [vmem:[#allocation3 + $0x59] sm:$0x1] %vm511_vm0, %v7427_v0  ;;  %3203 = vst.msk [vmem:[#allocation3 + $0x71] sm:$0x1] %vm511_vm0, %v7427_v0  ;;  %v7740_v38 = vld [vmem:[#allocation2 + $0x38] sm:$0xff]  ;;  %v7744_v40 = vld [vmem:[#allocation2 + $0x48] sm:$0xff] }
  0x45   : > { %3204 = vst.msk [vmem:[#allocation3 + $0x89] sm:$0x1] %vm511_vm0, %v7427_v0  ;;  %3205 = vst.msk [vmem:[#allocation3 + $0xa1] sm:$0x1] %vm511_vm0, %v7427_v0  ;;  %v7742_v39 = vld [vmem:[#allocation2 + $0x19] sm:$0xff]  ;;  %v7746_v41 = vld [vmem:[#allocation2 + $0x21] sm:$0xff] }
  0x46   : > { %3206 = vst.msk [vmem:[#allocation3 + $0xb9] sm:$0x1] %vm511_vm0, %v7427_v0  ;;  %3207 = vst.msk [vmem:[#allocation3 + $0xd1] sm:$0x1] %vm511_vm0, %v7427_v0  ;;  %6391 = vmatprep.mubr.msk.f32.mxu1 %vm553_vm1, %v7742_v39  ;;  %v7750_v42 = vld [vmem:[#allocation2 + $0x31] sm:$0xff]  ;;  %v7762_v44 = vld [vmem:[#allocation2 + $0x60] sm:$0xff] }
  0x47   : > { %3208 = vst.msk [vmem:[#allocation3 + $0xe9] sm:$0x1] %vm511_vm0, %v7427_v0  ;;  %6392 = vmatmul.mubr.msk.f32.vlgmr.msra.gmra.mrb[0].mxu1 %vm553_vm1, %v7746_v41  ;;  %v7760_v43 = vld [vmem:[#allocation2 + $0x50] sm:$0xff]  ;;  %v7764_v45 = vld [vmem:[#allocation2 + $0x39] sm:$0xff]  ;;  %v7776_v47 = vld [vmem:[#allocation2 + $0x68] sm:$0xff] }
  0x48   : > { %6421 = vmatmul.mubr.msk.f32.vlgmr.msra.gmra.mrb[0].mxu0 %vm553_vm1, %v613_v33  ;;  %6394 = vmatprep.mubr.msk.f32.mxu1 %vm553_vm1, %v7750_v42  ;;  %v7766_v46 = vld [vmem:[#allocation2 + $0x49] sm:$0xff]  ;;  %v7778_v48 = vld [vmem:[#allocation2 + $0x78] sm:$0xff]  ;;  %v7782_v50 = vld [vmem:[#allocation2 + $0x61] sm:$0xff] }
  0x49   : > { %6451 = vmatpush3.msk.msra.mxu0 %vm714_vm2, %v1131_v32  ;;  %6423 = vmatprep.mubr.msk.f32.mxu0 %vm553_vm1, %v7719_v34  ;;  %v7780_v49 = vld [vmem:[#allocation2 + $0x51] sm:$0xff]  ;;  %v7792_v51 = vld [vmem:[#allocation2 + $0x80] sm:$0xff]  ;;  %v7796_v53 = vld [vmem:[#allocation2 + $0x69] sm:$0xff] }
  0x4a   : > { %6482 = vmatprep.subr.msk.mxu0 %vm714_vm2, %v7724_v35  ;;  %v7794_v52 = vld [vmem:[#allocation2 + $0x90] sm:$0xff]  ;;  %v7798_v54 = vld [vmem:[#allocation2 + $0x79] sm:$0xff]  ;;  %v7810_v56 = vld [vmem:[#allocation2 + $0xa8] sm:$0xff] }
  0x4b   : > { %6395 = vmatmul.mubr.msk.f32.gmra.mrb[2].mxu1 %vm553_vm1, %v7764_v45  ;;  %v7808_v55 = vld [vmem:[#allocation2 + $0x98] sm:$0xff]  ;;  %v7812_v57 = vld [vmem:[#allocation2 + $0x81] sm:$0xff]  ;;  %v7824_v59 = vld [vmem:[#allocation2 + $0xb0] sm:$0xff] }
  0x4c   : > { %6424 = vmatmul.mubr.msk.f32.gmra.mrb[2].mxu0 %vm553_vm1, %v7730_v36  ;;  %6397 = vmatprep.mubr.msk.f32.mxu1 %vm553_vm1, %v7766_v46  ;;  %v7814_v58 = vld [vmem:[#allocation2 + $0x91] sm:$0xff]  ;;  %v7826_v60 = vld [vmem:[#allocation2 + $0xc0] sm:$0xff]  ;;  %v7830_v62 = vld [vmem:[#allocation2 + $0xa9] sm:$0xff] }
  0x4d   : > { %6426 = vmatprep.mubr.msk.f32.mxu0 %vm553_vm1, %v7732_v37  ;;  %v7828_v61 = vld [vmem:[#allocation2 + $0x99] sm:$0xff]  ;;  %v7840_v63 = vld [vmem:[#allocation2 + $0xc8] sm:$0xff]  ;;  %v7844_v1 = vld [vmem:[#allocation2 + $0xb1] sm:$0xff] }
  0x4e   : > { %v7842_v0 = vld [vmem:[#allocation2 + $0xd8] sm:$0xff]  ;;  %v7846_v2 = vld [vmem:[#allocation2 + $0xc1] sm:$0xff]  ;;  %v7858_v5 = vld [vmem:[#allocation2 + $0xc9] sm:$0xff] }
  0x4f   : > { %6398 = vmatmul.mubr.msk.f32.gmra.mrb[4].mxu1 %vm553_vm1, %v7780_v49  ;;  %v7856_v3 = vld [vmem:[#allocation2 + $0xe0] sm:$0xff]  ;;  %v1112_v7 = vld [vmem:[#allocation2 + $0xa] sm:$0xff]  ;;  %v7885_v12 = vld [vmem:[#allocation2 + $0x32] sm:$0xff] }
  0x50   : > { %6427 = vmatmul.mubr.msk.f32.gmra.mrb[4].mxu0 %vm553_vm1, %v7740_v38  ;;  %6400 = vmatprep.mubr.msk.f32.mxu1 %vm553_vm1, %v7782_v50  ;;  %v1111_v4 = vld [vmem:[#allocation2 + $0x2] sm:$0xff]  ;;  %v7860_v6 = vld [vmem:[#allocation2 + $0xd9] sm:$0xff]  ;;  %v1670_v10 = vld [vmem:[%s8972_s3 + $0x10] sm:$0xf] }
  0x51   : > { %6429 = vmatprep.mubr.msk.f32.mxu0 %vm553_vm1, %v7744_v40  ;;  %v7869_v8 = vld [vmem:[#allocation2 + $0x1a] sm:$0xff]  ;;  %v7883_v11 = vld [vmem:[#allocation2 + $0x22] sm:$0xff]  ;;  %v7894_v14 = vld [vmem:[#allocation2 + $0x4a] sm:$0xff] }
  0x52   : > { %v7871_v9 = vld [vmem:[#allocation2 + $0xe1] sm:$0xff]  ;;  %v7900_v15 = vld [vmem:[#allocation2 + $0x52] sm:$0xff]  ;;  %v7908_v17 = vld [vmem:[#allocation2 + $0x6a] sm:$0xff] }
  0x53   : > { %6401 = vmatmul.mubr.msk.f32.gmra.mrb[6].mxu1 %vm553_vm1, %v7796_v53  ;;  %v7892_v13 = vld [vmem:[#allocation2 + $0x3a] sm:$0xff]  ;;  %v7902_v16 = vld [vmem:[#allocation2 + $0x62] sm:$0xff]  ;;  %v7918_v20 = vld [vmem:[#allocation2 + $0x92] sm:$0xff] }
  0x54   : > { %6430 = vmatmul.mubr.msk.f32.gmra.mrb[6].mxu0 %vm553_vm1, %v7760_v43  ;;  %6403 = vmatprep.mubr.msk.f32.mxu1 %vm553_vm1, %v7798_v54  ;;  %v7910_v18 = vld [vmem:[#allocation2 + $0x7a] sm:$0xff]  ;;  %v7916_v19 = vld [vmem:[#allocation2 + $0x82] sm:$0xff]  ;;  %v7926_v22 = vld [vmem:[#allocation2 + $0xaa] sm:$0xff] }
  0x55   : > { %6432 = vmatprep.mubr.msk.f32.mxu0 %vm553_vm1, %v7762_v44  ;;  %v7924_v21 = vld [vmem:[#allocation2 + $0x9a] sm:$0xff]  ;;  %v7932_v23 = vld [vmem:[#allocation2 + $0xb2] sm:$0xff]  ;;  %v7934_v24 = vld [vmem:[#allocation2 + $0xc2] sm:$0xff] }
  0x56   : > { %v7940_v25 = vld [vmem:[#allocation2 + $0xca] sm:$0xff]  ;;  %v7942_v26 = vld [vmem:[#allocation2 + $0xda] sm:$0xff]  ;;  %v7948_v27 = vld [vmem:[#allocation2 + $0xe2] sm:$0xff] }
  0x57   : > { %6404 = vmatmul.mubr.msk.f32.gmra.mrb[8].mxu1 %vm553_vm1, %v7812_v57  ;;  %v1939_v28 = vld [vmem:[%s8972_s3 + $0x14] sm:$0xf]  ;;  %v7997_v30 = vld [vmem:[#allocation2 + $0xf8] sm:$0xff] }
  0x58   : > { %6433 = vmatmul.mubr.msk.f32.gmra.mrb[8].mxu0 %vm553_vm1, %v7776_v47  ;;  %6406 = vmatprep.mubr.msk.f32.mxu1 %vm553_vm1, %v7814_v58  ;;  %v7991_v29 = vld [vmem:[#allocation2 + $0xf0] sm:$0xff]  ;;  %v2208_v31 = vld [vmem:[%s8972_s3 + $0x18] sm:$0xf] }
  0x59   : > { %6435 = vmatprep.mubr.msk.f32.mxu0 %vm553_vm1, %v7778_v48  ;;  %v8040_v32 = vld [vmem:[#allocation2 + $0xf1] sm:$0xff]  ;;  %v8046_v33 = vld [vmem:[#allocation2 + $0xf9] sm:$0xff] }
  0x5b   : > { %6407 = vmatmul.mubr.msk.f32.gmra.mrb[10].mxu1 %vm553_vm1, %v7828_v61 }
  0x5c   : > { %6436 = vmatmul.mubr.msk.f32.gmra.mrb[10].mxu0 %vm553_vm1, %v7792_v51  ;;  %6409 = vmatprep.mubr.msk.f32.mxu1 %vm553_vm1, %v7830_v62 }
  0x5d   : > { %6438 = vmatprep.mubr.msk.f32.mxu0 %vm553_vm1, %v7794_v52 }
  0x5f   : > { %6410 = vmatmul.mubr.msk.f32.gmra.mrb[12].mxu1 %vm553_vm1, %v7844_v1 }
  0x60   : > { %6439 = vmatmul.mubr.msk.f32.gmra.mrb[12].mxu0 %vm553_vm1, %v7808_v55  ;;  %6412 = vmatprep.mubr.msk.f32.mxu1 %vm553_vm1, %v7846_v2 }
  0x61   : > { %6441 = vmatprep.mubr.msk.f32.mxu0 %vm553_vm1, %v7810_v56 }
  0x63   : > { %6413 = vmatmul.mubr.msk.f32.gmra.mrb[14].mxu1 %vm553_vm1, %v7858_v5 }
  0x64   : > { %6442 = vmatmul.mubr.msk.f32.gmra.mrb[14].mxu0 %vm553_vm1, %v7824_v59  ;;  %6415 = vmatprep.mubr.msk.f32.mxu1 %vm553_vm1, %v7860_v6 }
  0x65   : > { %6444 = vmatprep.mubr.msk.f32.mxu0 %vm553_vm1, %v7826_v60 }
  0x67   : > { %6416 = vmatmul.mubr.msk.f32.gmra.mrb[16].mxu1 %vm553_vm1, %v7871_v9 }
  0x68   : > { %6445 = vmatmul.mubr.msk.f32.gmra.mrb[16].mxu0 %vm553_vm1, %v7840_v63 }
  0x69   : > { %6447 = vmatprep.mubr.msk.f32.mxu0 %vm553_vm1, %v7842_v0 }
  0x6c   : > { %6448 = vmatmul.mubr.msk.f32.gmra.mrb[18].mxu0 %vm553_vm1, %v7856_v3 }
  0x6d   : > { %6452 = vmatprep.mubr.msk.f32.mxu0 %vm553_vm1, %v1111_v4 }
  0x70   : > { %6453 = vmatmul.mubr.msk.f32.vlgmr.msra.gmra.mrb[0].mxu0 %vm553_vm1, %v1112_v7 }
  0x71   : > { %6483 = vmatpush3.msk.msra.mxu0 %vm714_vm2, %v7724_v35  ;;  %6455 = vmatprep.mubr.msk.f32.mxu0 %vm553_vm1, %v7869_v8  ;;  %v8089_v35 = vld [vmem:[#allocation2 + $0xf2] sm:$0xff] }
  0x72   : > { %6514 = vmatprep.subr.msk.mxu0 %vm714_vm2, %v1670_v10 }
  0x74   : > { %6456 = vmatmul.mubr.msk.f32.gmra.mrb[2].mxu0 %vm553_vm1, %v7883_v11 }
  0x75   : > { %6458 = vmatprep.mubr.msk.f32.mxu0 %vm553_vm1, %v7885_v12 }
  0x78   : > { %6459 = vmatmul.mubr.msk.f32.gmra.mrb[4].mxu0 %vm553_vm1, %v7892_v13 }
  0x79   : > { %6461 = vmatprep.mubr.msk.f32.mxu0 %vm553_vm1, %v7894_v14 }
  0x7c   : > { %6462 = vmatmul.mubr.msk.f32.gmra.mrb[6].mxu0 %vm553_vm1, %v7900_v15 }
  0x7d   : > { %6464 = vmatprep.mubr.msk.f32.mxu0 %vm553_vm1, %v7902_v16 }
  0x80   : > { %6465 = vmatmul.mubr.msk.f32.gmra.mrb[8].mxu0 %vm553_vm1, %v7908_v17 }
  0x81   : > { %6467 = vmatprep.mubr.msk.f32.mxu0 %vm553_vm1, %v7910_v18 }
  0x84   : > { %6468 = vmatmul.mubr.msk.f32.gmra.mrb[10].mxu0 %vm553_vm1, %v7916_v19 }
  0x85   : > { %6470 = vmatprep.mubr.msk.f32.mxu0 %vm553_vm1, %v7918_v20 }
  0x88   : > { %6471 = vmatmul.mubr.msk.f32.gmra.mrb[12].mxu0 %vm553_vm1, %v7924_v21 }
  0x89   : > { %6473 = vmatprep.mubr.msk.f32.mxu0 %vm553_vm1, %v7926_v22 }
  0x8c   : > { %6474 = vmatmul.mubr.msk.f32.gmra.mrb[14].mxu0 %vm553_vm1, %v7932_v23 }
  0x8d   : > { %6476 = vmatprep.mubr.msk.f32.mxu0 %vm553_vm1, %v7934_v24 }
  0x90   : > { %6477 = vmatmul.mubr.msk.f32.gmra.mrb[16].mxu0 %vm553_vm1, %v7940_v25 }
  0x91   : > { %6479 = vmatprep.mubr.msk.f32.mxu0 %vm553_vm1, %v7942_v26 }
  0x94   : > { %6480 = vmatmul.mubr.msk.f32.gmra.mrb[18].mxu0 %vm553_vm1, %v7948_v27 }
  0x95   : > { %6484 = vmatprep.mubr.msk.f32.mxu0 %vm553_vm1, %v7719_v34  ;;  %v2477_v34 = vld [vmem:[%s8972_s3 + $0x1c] sm:$0xf] }
  0x98   : > { %6485 = vmatmul.mubr.msk.f32.vlgmr.msra.gmra.mrb[0].mxu0 %vm553_vm1, %v7730_v36  ;;  %v8095_v36 = vld [vmem:[#allocation2 + $0xfa] sm:$0xff] }
  0x99   : > { %6515 = vmatpush3.msk.msra.mxu0 %vm714_vm2, %v1670_v10  ;;  %6487 = vmatprep.mubr.msk.f32.mxu0 %vm553_vm1, %v7732_v37 }
  0x9a   : > { %6546 = vmatprep.subr.msk.mxu0 %vm714_vm2, %v1939_v28 }
  0x9c   : > { %6488 = vmatmul.mubr.msk.f32.gmra.mrb[2].mxu0 %vm553_vm1, %v7740_v38 }
  0x9d   : > { %6490 = vmatprep.mubr.msk.f32.mxu0 %vm553_vm1, %v7744_v40 }
  0xa0   : > { %6491 = vmatmul.mubr.msk.f32.gmra.mrb[4].mxu0 %vm553_vm1, %v7760_v43 }
  0xa1   : > { %6493 = vmatprep.mubr.msk.f32.mxu0 %vm553_vm1, %v7762_v44 }
  0xa4   : > { %6494 = vmatmul.mubr.msk.f32.gmra.mrb[6].mxu0 %vm553_vm1, %v7776_v47 }
  0xa5   : > { %6496 = vmatprep.mubr.msk.f32.mxu0 %vm553_vm1, %v7778_v48 }
  0xa8   : > { %6497 = vmatmul.mubr.msk.f32.gmra.mrb[8].mxu0 %vm553_vm1, %v7792_v51 }
  0xa9   : > { %6499 = vmatprep.mubr.msk.f32.mxu0 %vm553_vm1, %v7794_v52 }
  0xac   : > { %6500 = vmatmul.mubr.msk.f32.gmra.mrb[10].mxu0 %vm553_vm1, %v7808_v55 }
  0xad   : > { %6502 = vmatprep.mubr.msk.f32.mxu0 %vm553_vm1, %v7810_v56 }
  0xb0   : > { %6503 = vmatmul.mubr.msk.f32.gmra.mrb[12].mxu0 %vm553_vm1, %v7824_v59 }
  0xb1   : > { %6505 = vmatprep.mubr.msk.f32.mxu0 %vm553_vm1, %v7826_v60 }
  0xb4   : > { %6506 = vmatmul.mubr.msk.f32.gmra.mrb[14].mxu0 %vm553_vm1, %v7840_v63 }
  0xb5   : > { %6508 = vmatprep.mubr.msk.f32.mxu0 %vm553_vm1, %v7842_v0 }
  0xb8   : > { %6509 = vmatmul.mubr.msk.f32.gmra.mrb[16].mxu0 %vm553_vm1, %v7856_v3 }
  0xb9   : > { %6511 = vmatprep.mubr.msk.f32.mxu0 %vm553_vm1, %v7991_v29 }
  0xbc   : > { %6512 = vmatmul.mubr.msk.f32.gmra.mrb[18].mxu0 %vm553_vm1, %v7997_v30 }
  0xbd   : > { %6516 = vmatprep.mubr.msk.f32.mxu0 %vm553_vm1, %v7742_v39  ;;  %v2746_v39 = vld [vmem:[%s8972_s3 + $0x20] sm:$0xf] }
  0xc0   : > { %6517 = vmatmul.mubr.msk.f32.vlgmr.msra.gmra.mrb[0].mxu0 %vm553_vm1, %v7746_v41  ;;  %v2476_v41 = vld [vmem:[#allocation2 + $0x111] sm:$0xff] }
  0xc1   : > { %6547 = vmatpush3.msk.msra.mxu0 %vm714_vm2, %v1939_v28  ;;  %6519 = vmatprep.mubr.msk.f32.mxu0 %vm553_vm1, %v7750_v42 }
  0xc2   : > { %6578 = vmatprep.subr.msk.mxu0 %vm714_vm2, %v2208_v31 }
  0xc4   : > { %6520 = vmatmul.mubr.msk.f32.gmra.mrb[2].mxu0 %vm553_vm1, %v7764_v45 }
  0xc5   : > { %6522 = vmatprep.mubr.msk.f32.mxu0 %vm553_vm1, %v7766_v46 }
  0xc8   : > { %6523 = vmatmul.mubr.msk.f32.gmra.mrb[4].mxu0 %vm553_vm1, %v7780_v49 }
  0xc9   : > { %6525 = vmatprep.mubr.msk.f32.mxu0 %vm553_vm1, %v7782_v50 }
  0xcc   : > { %6526 = vmatmul.mubr.msk.f32.gmra.mrb[6].mxu0 %vm553_vm1, %v7796_v53 }
  0xcd   : > { %6528 = vmatprep.mubr.msk.f32.mxu0 %vm553_vm1, %v7798_v54 }
  0xd0   : > { %6529 = vmatmul.mubr.msk.f32.gmra.mrb[8].mxu0 %vm553_vm1, %v7812_v57 }
  0xd1   : > { %6531 = vmatprep.mubr.msk.f32.mxu0 %vm553_vm1, %v7814_v58 }
  0xd4   : > { %6532 = vmatmul.mubr.msk.f32.gmra.mrb[10].mxu0 %vm553_vm1, %v7828_v61 }
  0xd5   : > { %6534 = vmatprep.mubr.msk.f32.mxu0 %vm553_vm1, %v7830_v62 }
  0xd8   : > { %6535 = vmatmul.mubr.msk.f32.gmra.mrb[12].mxu0 %vm553_vm1, %v7844_v1 }
  0xd9   : > { %6537 = vmatprep.mubr.msk.f32.mxu0 %vm553_vm1, %v7846_v2 }
  0xdc   : > { %6538 = vmatmul.mubr.msk.f32.gmra.mrb[14].mxu0 %vm553_vm1, %v7858_v5 }
  0xdd   : > { %6540 = vmatprep.mubr.msk.f32.mxu0 %vm553_vm1, %v7860_v6 }
  0xe0   : > { %6541 = vmatmul.mubr.msk.f32.gmra.mrb[16].mxu0 %vm553_vm1, %v7871_v9 }
  0xe1   : > { %6543 = vmatprep.mubr.msk.f32.mxu0 %vm553_vm1, %v8040_v32 }
  0xe4   : > { %6544 = vmatmul.mubr.msk.f32.gmra.mrb[18].mxu0 %vm553_vm1, %v8046_v33 }
  0xe5   : > { %6548 = vmatprep.mubr.msk.f32.mxu0 %vm553_vm1, %v7869_v8 }
  0xe8   : > { %6549 = vmatmul.mubr.msk.f32.vlgmr.msra.gmra.mrb[0].mxu0 %vm553_vm1, %v7883_v11 }
  0xe9   : > { %6579 = vmatpush3.msk.msra.mxu0 %vm714_vm2, %v2208_v31  ;;  %6551 = vmatprep.mubr.msk.f32.mxu0 %vm553_vm1, %v7885_v12 }
  0xea   : > { %6610 = vmatprep.subr.msk.mxu0 %vm714_vm2, %v2477_v34 }
  0xec   : > { %6552 = vmatmul.mubr.msk.f32.gmra.mrb[2].mxu0 %vm553_vm1, %v7892_v13 }
  0xed   : > { %6554 = vmatprep.mubr.msk.f32.mxu0 %vm553_vm1, %v7894_v14 }
  0xf0   : > { %6555 = vmatmul.mubr.msk.f32.gmra.mrb[4].mxu0 %vm553_vm1, %v7900_v15 }
  0xf1   : > { %6557 = vmatprep.mubr.msk.f32.mxu0 %vm553_vm1, %v7902_v16 }
  0xf4   : > { %6558 = vmatmul.mubr.msk.f32.gmra.mrb[6].mxu0 %vm553_vm1, %v7908_v17 }
  0xf5   : > { %6560 = vmatprep.mubr.msk.f32.mxu0 %vm553_vm1, %v7910_v18 }
  0xf8   : > { %6561 = vmatmul.mubr.msk.f32.gmra.mrb[8].mxu0 %vm553_vm1, %v7916_v19 }
  0xf9   : > { %6563 = vmatprep.mubr.msk.f32.mxu0 %vm553_vm1, %v7918_v20 }
  0xfc   : > { %6564 = vmatmul.mubr.msk.f32.gmra.mrb[10].mxu0 %vm553_vm1, %v7924_v21 }
  0xfd   : > { %6566 = vmatprep.mubr.msk.f32.mxu0 %vm553_vm1, %v7926_v22 }
 0x100   : > { %6567 = vmatmul.mubr.msk.f32.gmra.mrb[12].mxu0 %vm553_vm1, %v7932_v23 }
 0x101   : > { %6569 = vmatprep.mubr.msk.f32.mxu0 %vm553_vm1, %v7934_v24 }
 0x104   : > { %6570 = vmatmul.mubr.msk.f32.gmra.mrb[14].mxu0 %vm553_vm1, %v7940_v25 }
 0x105   : > { %6572 = vmatprep.mubr.msk.f32.mxu0 %vm553_vm1, %v7942_v26 }
 0x108   : > { %6573 = vmatmul.mubr.msk.f32.gmra.mrb[16].mxu0 %vm553_vm1, %v7948_v27 }
 0x109   : > { %6575 = vmatprep.mubr.msk.f32.mxu0 %vm553_vm1, %v8089_v35 }
 0x10c   : > { %6576 = vmatmul.mubr.msk.f32.gmra.mrb[18].mxu0 %vm553_vm1, %v8095_v36 }
 0x10d   : > { %6580 = vmatprep.mubr.msk.f32.mxu0 %vm553_vm1, %v7732_v37  ;;  %v2206_v37 = vld [vmem:[#allocation2 + $0x108] sm:$0xff] }
 0x110   : > { %6581 = vmatmul.mubr.msk.f32.vlgmr.msra.gmra.mrb[0].mxu0 %vm553_vm1, %v7740_v38  ;;  %v2207_v38 = vld [vmem:[#allocation2 + $0x110] sm:$0xff] }
 0x111   : > { %6611 = vmatpush3.msk.msra.mxu0 %vm714_vm2, %v2477_v34  ;;  %6583 = vmatprep.mubr.msk.f32.mxu0 %vm553_vm1, %v7744_v40  ;;  %v2475_v40 = vld [vmem:[#allocation2 + $0x109] sm:$0xff] }
 0x112   : > { %6642 = vmatprep.subr.msk.mxu0 %vm714_vm2, %v2746_v39 }
 0x114   : > { %6584 = vmatmul.mubr.msk.f32.gmra.mrb[2].mxu0 %vm553_vm1, %v7760_v43  ;;  %v2745_v43 = vld [vmem:[#allocation2 + $0x112] sm:$0xff] }
 0x115   : > { %6586 = vmatprep.mubr.msk.f32.mxu0 %vm553_vm1, %v7762_v44 }
 0x118   : > { %6587 = vmatmul.mubr.msk.f32.gmra.mrb[4].mxu0 %vm553_vm1, %v7776_v47 }
 0x119   : > { %6589 = vmatprep.mubr.msk.f32.mxu0 %vm553_vm1, %v7778_v48 }
 0x11a   : > { %v6393_v44 = vpop.f32.mrb[0].mxu1 }
 0x11c   : > { %6590 = vmatmul.mubr.msk.f32.gmra.mrb[6].mxu0 %vm553_vm1, %v7792_v51 }
 0x11d   : > { %6592 = vmatprep.mubr.msk.f32.mxu0 %vm553_vm1, %v7794_v52 }
 0x120   : > { %6593 = vmatmul.mubr.msk.f32.gmra.mrb[8].mxu0 %vm553_vm1, %v7808_v55 }
 0x121   : > { %6595 = vmatprep.mubr.msk.f32.mxu0 %vm553_vm1, %v7810_v56 }
 0x124   : > { %6596 = vmatmul.mubr.msk.f32.gmra.mrb[10].mxu0 %vm553_vm1, %v7824_v59 }
 0x125   : > { %6598 = vmatprep.mubr.msk.f32.mxu0 %vm553_vm1, %v7826_v60 }
 0x128   : > { %6599 = vmatmul.mubr.msk.f32.gmra.mrb[12].mxu0 %vm553_vm1, %v7840_v63 }
 0x129   : > { %6601 = vmatprep.mubr.msk.f32.mxu0 %vm553_vm1, %v7842_v0  ;;  %v8247_v0 = vld [vmem:[%s8974_s5] ss:$0 sm:$0xff] }
 0x12c   : > { %6602 = vmatmul.mubr.msk.f32.gmra.mrb[14].mxu0 %vm553_vm1, %v7856_v3 }
 0x12d   : > { %6604 = vmatprep.mubr.msk.f32.mxu0 %vm553_vm1, %v7991_v29 }
 0x130   : > { %6605 = vmatmul.mubr.msk.f32.gmra.mrb[16].mxu0 %vm553_vm1, %v7997_v30 }
 0x131   : > { %6607 = vmatprep.mubr.msk.f32.mxu0 %vm553_vm1, %v2206_v37 }
 0x134   : > { %6608 = vmatmul.mubr.msk.f32.gmra.mrb[18].mxu0 %vm553_vm1, %v2207_v38 }
 0x135   : > { %6612 = vmatprep.mubr.msk.f32.mxu0 %vm553_vm1, %v7750_v42  ;;  %v2744_v42 = vld [vmem:[#allocation2 + $0x10a] sm:$0xff] }
 0x138   : > { %6613 = vmatmul.mubr.msk.f32.vlgmr.msra.gmra.mrb[0].mxu0 %vm553_vm1, %v7764_v45  ;;  %v794_v45 = vpop.f32.mrb[1].mxu1 }
 0x139   : > { %6643 = vmatpush3.msk.msra.mxu0 %vm714_vm2, %v2746_v39  ;;  %6615 = vmatprep.mubr.msk.f32.mxu0 %vm553_vm1, %v7766_v46  ;;  %v6396_v46 = vpop.f32.mrb[2].mxu1 }
 0x13a   : > { %v804_v47 = vpop.f32.mrb[3].mxu1 }
 0x13b   : > { %v6399_v48 = vpop.f32.mrb[4].mxu1 }
 0x13c   : > { %6616 = vmatmul.mubr.msk.f32.gmra.mrb[2].mxu0 %vm553_vm1, %v7780_v49  ;;  %v814_v49 = vpop.f32.mrb[5].mxu1 }
 0x13d   : > { %6618 = vmatprep.mubr.msk.f32.mxu0 %vm553_vm1, %v7782_v50  ;;  %v6402_v50 = vpop.f32.mrb[6].mxu1 }
 0x13e   : > { %v824_v51 = vpop.f32.mrb[7].mxu1 }
 0x13f   : > { %v8219_v52 = vpop.f32.mrb[8].mxu1 }
 0x140   : > { %6619 = vmatmul.mubr.msk.f32.gmra.mrb[4].mxu0 %vm553_vm1, %v7796_v53  ;;  %v8221_v53 = vpop.f32.mrb[9].mxu1 }
 0x141   : > { %6621 = vmatprep.mubr.msk.f32.mxu0 %vm553_vm1, %v7798_v54  ;;  %v8223_v54 = vpop.f32.mrb[10].mxu1 }
 0x142   : > { %v8225_v55 = vpop.f32.mrb[11].mxu1 }
 0x143   : > { %v8227_v56 = vpop.f32.mrb[12].mxu1 }
 0x144   : > { %6622 = vmatmul.mubr.msk.f32.gmra.mrb[6].mxu0 %vm553_vm1, %v7812_v57  ;;  %v8229_v57 = vpop.f32.mrb[13].mxu1 }
 0x145   : > { %6624 = vmatprep.mubr.msk.f32.mxu0 %vm553_vm1, %v7814_v58  ;;  %v8231_v58 = vpop.f32.mrb[14].mxu1 }
 0x146   : > { %v8233_v59 = vpop.f32.mrb[15].mxu1 }
 0x147   : > { %v8235_v60 = vpop.f32.mrb[16].mxu1 }
 0x148   : > { %6625 = vmatmul.mubr.msk.f32.gmra.mrb[8].mxu0 %vm553_vm1, %v7828_v61  ;;  %v8237_v61 = vpop.f32.mrb[17].mxu1 }
 0x149   : > { %6627 = vmatprep.mubr.msk.f32.mxu0 %vm553_vm1, %v7830_v62  ;;  %v8242_v62 = vld [vmem:[%s8973_s4] ss:$0 sm:$0xff] }
 0x14c   : > { %6628 = vmatmul.mubr.msk.f32.gmra.mrb[10].mxu0 %vm553_vm1, %v7844_v1 }
 0x14d   : > { %6630 = vmatprep.mubr.msk.f32.mxu0 %vm553_vm1, %v7846_v2 }
 0x150   : > { %6631 = vmatmul.mubr.msk.f32.gmra.mrb[12].mxu0 %vm553_vm1, %v7858_v5 }
 0x151   : > { %6633 = vmatprep.mubr.msk.f32.mxu0 %vm553_vm1, %v7860_v6 }
 0x154   : > { %6634 = vmatmul.mubr.msk.f32.gmra.mrb[14].mxu0 %vm553_vm1, %v7871_v9 }
 0x155   : > { %6636 = vmatprep.mubr.msk.f32.mxu0 %vm553_vm1, %v8040_v32 }
 0x158   : > { %6637 = vmatmul.mubr.msk.f32.gmra.mrb[16].mxu0 %vm553_vm1, %v8046_v33 }
 0x159   : > { %6639 = vmatprep.mubr.msk.f32.mxu0 %vm553_vm1, %v2475_v40 }
 0x15c   : > { %6640 = vmatmul.mubr.msk.f32.gmra.mrb[18].mxu0 %vm553_vm1, %v2476_v41 }
 0x15d   : > { %6644 = vmatprep.mubr.msk.f32.mxu0 %vm553_vm1, %v7885_v12 }
 0x160   : > { %6645 = vmatmul.mubr.msk.f32.vlgmr.msra.gmra.mrb[0].mxu0 %vm553_vm1, %v7892_v13 }
 0x161   : > { %6647 = vmatprep.mubr.msk.f32.mxu0 %vm553_vm1, %v7894_v14 }
 0x164   : > { %6648 = vmatmul.mubr.msk.f32.gmra.mrb[2].mxu0 %vm553_vm1, %v7900_v15 }
 0x165   : > { %6650 = vmatprep.mubr.msk.f32.mxu0 %vm553_vm1, %v7902_v16 }
 0x168   : > { %6651 = vmatmul.mubr.msk.f32.gmra.mrb[4].mxu0 %vm553_vm1, %v7908_v17 }
 0x169   : > { %6653 = vmatprep.mubr.msk.f32.mxu0 %vm553_vm1, %v7910_v18 }
 0x16c   : > { %6654 = vmatmul.mubr.msk.f32.gmra.mrb[6].mxu0 %vm553_vm1, %v7916_v19 }
 0x16d   : > { %6656 = vmatprep.mubr.msk.f32.mxu0 %vm553_vm1, %v7918_v20 }
 0x170   : > { %6657 = vmatmul.mubr.msk.f32.gmra.mrb[8].mxu0 %vm553_vm1, %v7924_v21 }
 0x171   : > { %6659 = vmatprep.mubr.msk.f32.mxu0 %vm553_vm1, %v7926_v22 }
 0x174   : > { %6660 = vmatmul.mubr.msk.f32.gmra.mrb[10].mxu0 %vm553_vm1, %v7932_v23 }
 0x175   : > { %6662 = vmatprep.mubr.msk.f32.mxu0 %vm553_vm1, %v7934_v24 }
 0x178   : > { %6663 = vmatmul.mubr.msk.f32.gmra.mrb[12].mxu0 %vm553_vm1, %v7940_v25 }
 0x179   : > { %6665 = vmatprep.mubr.msk.f32.mxu0 %vm553_vm1, %v7942_v26 }
 0x17c   : > { %6666 = vmatmul.mubr.msk.f32.gmra.mrb[14].mxu0 %vm553_vm1, %v7948_v27 }
 0x17d   : > { %6668 = vmatprep.mubr.msk.f32.mxu0 %vm553_vm1, %v8089_v35 }
 0x180   : > { %6669 = vmatmul.mubr.msk.f32.gmra.mrb[16].mxu0 %vm553_vm1, %v8095_v36 }
 0x181   : > { %6671 = vmatprep.mubr.msk.f32.mxu0 %vm553_vm1, %v2744_v42 }
 0x184   : > { %6672 = vmatmul.mubr.msk.f32.gmra.mrb[18].mxu0 %vm553_vm1, %v2745_v43 }
 0x233   : > { %v6646_v63 = vpop.f32.mrb[0].mxu0 }
 0x234   : > { %v3003_v1 = vmul.f32 %v6646_v63, %v8242_v62  ;;  %v2876_v2 = vpop.f32.mrb[1].mxu0 }
 0x235   : > { %v3002_v3 = vmul.f32 %v8242_v62, %v2876_v2 }
 0x236   : > { %v8252_v4 = vadd.f32 %v8247_v0, %v3003_v1 }
 0x237   : > { %v8255_v5 = vadd.f32 %v8247_v0, %v3002_v3  ;;  %v6649_v6 = vpop.f32.mrb[2].mxu0 }
 0x238   : > { %v5844_v7 = vmul.f32 -1.442695, %v8252_v4  ;;  %v6910_v8 = vadd.f32 %v6649_v6, %v6393_v44  ;;  %v2886_v9 = vpop.f32.mrb[3].mxu0 }
 0x239   : > { %v5843_v10 = vmul.f32 -1.442695, %v8255_v5  ;;  %v6911_v11 = vadd.f32 %v2886_v9, %v794_v45 }
 0x23a   : > { %7243 = vpow2.f32 %v5844_v7  ;;  %v3005_v12 = vmul.f32 %v6910_v8, %v8242_v62 }
 0x23b   : > { %7245 = vpow2.f32 %v5843_v10  ;;  %v3004_v13 = vmul.f32 %v6911_v11, %v8242_v62  ;;  %v6652_v14 = vpop.f32.mrb[4].mxu0 }
 0x23c   : > { %v8262_v15 = vadd.f32 %v8247_v0, %v3005_v12  ;;  %v6912_v16 = vadd.f32 %v6652_v14, %v6396_v46  ;;  %v2896_v17 = vpop.f32.mrb[5].mxu0 }
 0x23d   : > { %v8265_v18 = vadd.f32 %v8247_v0, %v3004_v13  ;;  %v6913_v19 = vadd.f32 %v2896_v17, %v804_v47 }
 0x23e   : > { %v5846_v20 = vmul.f32 -1.442695, %v8262_v15  ;;  %v3007_v21 = vmul.f32 %v6912_v16, %v8242_v62 }
 0x23f   : > { %v5845_v22 = vmul.f32 -1.442695, %v8265_v18  ;;  %v3006_v23 = vmul.f32 %v6913_v19, %v8242_v62  ;;  %v6655_v24 = vpop.f32.mrb[6].mxu0 }
 0x240   : > { %7247 = vpow2.f32 %v5846_v20  ;;  %v8272_v25 = vadd.f32 %v8247_v0, %v3007_v21  ;;  %v6914_v26 = vadd.f32 %v6655_v24, %v6399_v48  ;;  %v2906_v27 = vpop.f32.mrb[7].mxu0 }
 0x241   : > { %7249 = vpow2.f32 %v5845_v22  ;;  %v8275_v28 = vadd.f32 %v8247_v0, %v3006_v23  ;;  %v6915_v29 = vadd.f32 %v2906_v27, %v814_v49 }
 0x242   : > { %v5848_v30 = vmul.f32 -1.442695, %v8272_v25  ;;  %v3009_v31 = vmul.f32 %v6914_v26, %v8242_v62 }
 0x243   : > { %v5847_v32 = vmul.f32 -1.442695, %v8275_v28  ;;  %v3008_v33 = vmul.f32 %v6915_v29, %v8242_v62  ;;  %v6658_v34 = vpop.f32.mrb[8].mxu0 }
 0x244   : > { %v7244_v35 = vpop.eup %7243  ;;  %7251 = vpow2.f32 %v5848_v30  ;;  %v8282_v36 = vadd.f32 %v8247_v0, %v3009_v31  ;;  %v6916_v39 = vadd.f32 %v6658_v34, %v6402_v50  ;;  %v2916_v37 = vpop.f32.mrb[9].mxu0 }
 0x245   : > { %v7246_v38 = vpop.eup %7245  ;;  %v3110_v40 = vadd.f32 1.0, %v7244_v35  ;;  %7253 = vpow2.f32 %v5847_v32  ;;  %v8285_v41 = vadd.f32 %v8247_v0, %v3008_v33  ;;  %v6917_v42 = vadd.f32 %v2916_v37, %v824_v51 }
 0x246   : > { %v3109_v43 = vadd.f32 1.0, %v7246_v38  ;;  %v5850_v44 = vmul.f32 -1.442695, %v8282_v36  ;;  %v3011_v45 = vmul.f32 %v6916_v39, %v8242_v62 }
 0x247   : > { %7255 = vrcp.f32 %v3110_v40  ;;  %v5849_v46 = vmul.f32 -1.442695, %v8285_v41  ;;  %v3010_v47 = vmul.f32 %v6917_v42, %v8242_v62  ;;  %v6661_v48 = vpop.f32.mrb[10].mxu0 }
 0x248   : > { %7257 = vrcp.f32 %v3109_v43  ;;  %v8292_v49 = vadd.f32 %v8247_v0, %v3011_v45  ;;  %v6918_v50 = vadd.f32 %v6661_v48, %v8219_v52  ;;  %v2926_v63 = vpop.f32.mrb[11].mxu0 }
 0x249   : > { %7259 = vpow2.f32 %v5850_v44  ;;  %v8296_v51 = vadd.f32 %v8247_v0, %v3010_v47  ;;  %v6919_v1 = vadd.f32 %v2926_v63, %v8221_v53 }
 0x24a   : > { %v7248_v2 = vpop.eup %7247  ;;  %7261 = vpow2.f32 %v5849_v46  ;;  %v5852_v3 = vmul.f32 -1.442695, %v8292_v49  ;;  %v3013_v6 = vmul.f32 %v6918_v50, %v8242_v62 }
 0x24b   : > { %v7250_v7 = vpop.eup %7249  ;;  %v3112_v8 = vadd.f32 1.0, %v7248_v2  ;;  %v5851_v9 = vmul.f32 -1.442695, %v8296_v51  ;;  %v3012_v10 = vmul.f32 %v6919_v1, %v8242_v62  ;;  %v6664_v52 = vpop.f32.mrb[12].mxu0 }
 0x24c   : > { %v3111_v11 = vadd.f32 1.0, %v7250_v7  ;;  %7263 = vpow2.f32 %v5852_v3  ;;  %v8304_v12 = vadd.f32 %v8247_v0, %v3013_v6  ;;  %v6920_v53 = vadd.f32 %v6664_v52, %v8223_v54  ;;  %v2936_v13 = vpop.f32.mrb[13].mxu0 }
 0x24d   : > { %7265 = vrcp.f32 %v3112_v8  ;;  %v8308_v14 = vadd.f32 %v8247_v0, %v3012_v10  ;;  %v6921_v16 = vadd.f32 %v2936_v13, %v8225_v55 }
 0x24e   : > { %v7252_v17 = vpop.eup %7251  ;;  %7267 = vrcp.f32 %v3111_v11  ;;  %v5854_v19 = vmul.f32 -1.442695, %v8304_v12  ;;  %v3015_v20 = vmul.f32 %v6920_v53, %v8242_v62 }
 0x24f   : > { %v7254_v21 = vpop.eup %7253  ;;  %v3114_v22 = vadd.f32 1.0, %v7252_v17  ;;  %7269 = vpow2.f32 %v5851_v9  ;;  %v5853_v23 = vmul.f32 -1.442695, %v8308_v14  ;;  %v3014_v54 = vmul.f32 %v6921_v16, %v8242_v62  ;;  %v6667_v24 = vpop.f32.mrb[14].mxu0 }
 0x250   : > { %v3113_v26 = vadd.f32 1.0, %v7254_v21  ;;  %7271 = vpow2.f32 %v5854_v19  ;;  %v8316_v27 = vadd.f32 %v8247_v0, %v3015_v20  ;;  %v6922_v55 = vadd.f32 %v6667_v24, %v8227_v56  ;;  %v2946_v29 = vpop.f32.mrb[15].mxu0 }
 0x251   : > { %v7256_v30 = vpop.eup %7255  ;;  %7273 = vrcp.f32 %v3114_v22  ;;  %v8320_v31 = vadd.f32 %v8247_v0, %v3014_v54  ;;  %v6923_v32 = vadd.f32 %v2946_v29, %v8229_v57 }
 0x252   : > { %v7258_v33 = vpop.eup %7257  ;;  %v3170_v34 = vmul.f32 %v7256_v30, %v8252_v4  ;;  %7275 = vrcp.f32 %v3113_v26  ;;  %v5856_v35 = vmul.f32 -1.442695, %v8316_v27  ;;  %v3017_v39 = vmul.f32 %v6922_v55, %v8242_v62 }
 0x253   : > { %v7260_v37 = vpop.eup %7259  ;;  %v3169_v38 = vmul.f32 %v7258_v33, %v8255_v5  ;;  %7277 = vpow2.f32 %v5853_v23  ;;  %v5855_v56 = vmul.f32 -1.442695, %v8320_v31  ;;  %v3016_v40 = vmul.f32 %v6923_v32, %v8242_v62  ;;  %v6670_v42 = vpop.f32.mrb[16].mxu0 }
 0x254   : > { %v7262_v43 = vpop.eup %7261  ;;  %3210 = vst.msk [vmem:[#allocation3 + $0x9] sm:$0xff] %vm553_vm1, %v3170_v34  ;;  %v3116_v57 = vadd.f32 1.0, %v7260_v37  ;;  %7279 = vpow2.f32 %v5856_v35  ;;  %v8331_v4 = vadd.f32 %v8247_v0, %v3017_v39  ;;  %v6924_v44 = vadd.f32 %v6670_v42, %v8231_v58  ;;  %v2956_v45 = vpop.f32.mrb[17].mxu0 }
 0x255   : > { %3209 = vst.msk [vmem:[#allocation3 + $0x1] sm:$0xff] %vm553_vm1, %v3169_v38  ;;  %v3115_v5 = vadd.f32 1.0, %v7262_v43  ;;  %7281 = vpow2.f32 %v5855_v56  ;;  %v8336_v46 = vadd.f32 %v8247_v0, %v3016_v40  ;;  %v6925_v47 = vadd.f32 %v2956_v45, %v8233_v59 }
 0x256   : > { %v7264_v48 = vpop.eup %7263  ;;  %7283 = vrcp.f32 %v3116_v57  ;;  %v5858_v50 = vmul.f32 -1.442695, %v8331_v4  ;;  %v3019_v63 = vmul.f32 %v6924_v44, %v8242_v62 }
 0x257   : > { %v7266_v1 = vpop.eup %7265  ;;  %7285 = vrcp.f32 %v3115_v5  ;;  %v3118_v2 = vadd.f32 1.0, %v7264_v48  ;;  %v5857_v58 = vmul.f32 -1.442695, %v8336_v46  ;;  %v3018_v3 = vmul.f32 %v6925_v47, %v8242_v62  ;;  %v6673_v6 = vpop.f32.mrb[18].mxu0 }
 0x258   : > { %v7268_v7 = vpop.eup %7267  ;;  %v3172_v8 = vmul.f32 %v7266_v1, %v8262_v15  ;;  %7287 = vpow2.f32 %v5858_v50  ;;  %v8345_v59 = vadd.f32 %v8247_v0, %v3019_v63  ;;  %v6926_v9 = vadd.f32 %v6673_v6, %v8235_v60  ;;  %v2966_v10 = vpop.f32.mrb[19].mxu0 }
 0x259   : > { %v7270_v52 = vpop.eup %7269  ;;  %v3171_v11 = vmul.f32 %v7268_v7, %v8265_v18  ;;  %7289 = vrcp.f32 %v3118_v2  ;;  %v8350_v53 = vadd.f32 %v8247_v0, %v3018_v3  ;;  %v6927_v13 = vadd.f32 %v2966_v10, %v8237_v61 }
 0x25a   : > { %v7272_v16 = vpop.eup %7271  ;;  %3212 = vst.msk [vmem:[#allocation3 + $0x21] sm:$0xff] %vm553_vm1, %v3172_v8  ;;  %v3117_v15 = vadd.f32 1.0, %v7270_v52  ;;  %7291 = vpow2.f32 %v5857_v58  ;;  %v5860_v17 = vmul.f32 -1.442695, %v8345_v59  ;;  %v3021_v19 = vmul.f32 %v6926_v9, %v8242_v62 }
 0x25b   : > { %v7274_v60 = vpop.eup %7273  ;;  %3211 = vst.msk [vmem:[#allocation3 + $0x19] sm:$0xff] %vm553_vm1, %v3171_v11  ;;  %v3120_v20 = vadd.f32 1.0, %v7272_v16  ;;  %v5859_v18 = vmul.f32 -1.442695, %v8350_v53  ;;  %v3020_v21 = vmul.f32 %v6927_v13, %v8242_v62 }
 0x25c   : > { %v7276_v22 = vpop.eup %7275  ;;  %v3174_v61 = vmul.f32 %v7274_v60, %v8272_v25  ;;  %7293 = vrcp.f32 %v3117_v15  ;;  %v8361_v23 = vadd.f32 %v8247_v0, %v3021_v19 }
 0x25d   : > { %v7278_v54 = vpop.eup %7277  ;;  %v3173_v24 = vmul.f32 %v7276_v22, %v8275_v28  ;;  %7295 = vrcp.f32 %v3120_v20  ;;  %v8365_v26 = vadd.f32 %v8247_v0, %v3020_v21 }
 0x25e   : > { %v7280_v55 = vpop.eup %7279  ;;  %3214 = vst.msk [vmem:[#allocation3 + $0x39] sm:$0xff] %vm553_vm1, %v3174_v61  ;;  %v3119_v29 = vadd.f32 1.0, %v7278_v54  ;;  %7297 = vpow2.f32 %v5860_v17  ;;  %v5862_v30 = vmul.f32 -1.442695, %v8361_v23 }
 0x25f   : > { %v7282_v62 = vpop.eup %7281  ;;  %3213 = vst.msk [vmem:[#allocation3 + $0x31] sm:$0xff] %vm553_vm1, %v3173_v24  ;;  %v3122_v25 = vadd.f32 1.0, %v7280_v55  ;;  %7299 = vpow2.f32 %v5859_v18  ;;  %v5861_v28 = vmul.f32 -1.442695, %v8365_v26 }
 0x260   : > { %v7284_v32 = vpop.eup %7283  ;;  %7301 = vrcp.f32 %v3119_v29  ;;  %v3121_v33 = vadd.f32 1.0, %v7282_v62 }
 0x261   : > { %v7286_v34 = vpop.eup %7285  ;;  %v3176_v0 = vmul.f32 %v7284_v32, %v8282_v36  ;;  %7303 = vrcp.f32 %v3122_v25 }
 0x262   : > { %v7288_v35 = vpop.eup %7287  ;;  %v3175_v39 = vmul.f32 %v7286_v34, %v8285_v41  ;;  %7305 = vrcp.f32 %v3121_v33 }
 0x263   : > { %v7290_v37 = vpop.eup %7289  ;;  %3216 = vst.msk [vmem:[#allocation3 + $0x51] sm:$0xff] %vm553_vm1, %v3176_v0  ;;  %v3124_v38 = vadd.f32 1.0, %v7288_v35  ;;  %7307 = vpow2.f32 %v5862_v30 }
 0x264   : > { %v7292_v56 = vpop.eup %7291  ;;  %3215 = vst.msk [vmem:[#allocation3 + $0x49] sm:$0xff] %vm553_vm1, %v3175_v39  ;;  %v3178_v40 = vmul.f32 %v7290_v37, %v8292_v49  ;;  %7309 = vpow2.f32 %v5861_v28 }
 0x265   : > { %7311 = vrcp.f32 %v3124_v38  ;;  %v3123_v42 = vadd.f32 1.0, %v7292_v56 }
 0x266   : > { %v7294_v43 = vpop.eup %7293  ;;  %3218 = vst.msk [vmem:[#allocation3 + $0x69] sm:$0xff] %vm553_vm1, %v3178_v40 }
 0x267   : > { %v7296_v36 = vpop.eup %7295  ;;  %v3177_v41 = vmul.f32 %v7294_v43, %v8296_v51  ;;  %7313 = vrcp.f32 %v3123_v42 }
 0x268   : > { %v7298_v57 = vpop.eup %7297  ;;  %v3180_v44 = vmul.f32 %v7296_v36, %v8304_v12 }
 0x269   : > { %v7300_v45 = vpop.eup %7299  ;;  %3217 = vst.msk [vmem:[#allocation3 + $0x61] sm:$0xff] %vm553_vm1, %v3177_v41  ;;  %v3126_v5 = vadd.f32 1.0, %v7298_v57 }
 0x26a   : > { %v7302_v47 = vpop.eup %7301  ;;  %3220 = vst.msk [vmem:[#allocation3 + $0x81] sm:$0xff] %vm553_vm1, %v3180_v44  ;;  %v3125_v49 = vadd.f32 1.0, %v7300_v45 }
 0x26b   : > { %v7304_v48 = vpop.eup %7303  ;;  %v3179_v50 = vmul.f32 %v7302_v47, %v8308_v14  ;;  %7315 = vrcp.f32 %v3126_v5 }
 0x26c   : > { %v7306_v63 = vpop.eup %7305  ;;  %v3182_v1 = vmul.f32 %v7304_v48, %v8316_v27  ;;  %7317 = vrcp.f32 %v3125_v49 }
 0x26d   : > { %v7308_v51 = vpop.eup %7307  ;;  %3219 = vst.msk [vmem:[#allocation3 + $0x79] sm:$0xff] %vm553_vm1, %v3179_v50  ;;  %v3181_v12 = vmul.f32 %v7306_v63, %v8320_v31 }
 0x26e   : > { %v7310_v2 = vpop.eup %7309  ;;  %3222 = vst.msk [vmem:[#allocation3 + $0x99] sm:$0xff] %vm553_vm1, %v3182_v1  ;;  %v3128_v58 = vadd.f32 1.0, %v7308_v51 }
 0x26f   : > { %v7312_v3 = vpop.eup %7311  ;;  %3221 = vst.msk [vmem:[#allocation3 + $0x91] sm:$0xff] %vm553_vm1, %v3181_v12  ;;  %v3127_v6 = vadd.f32 1.0, %v7310_v2 }
 0x270   : > { %v3184_v14 = vmul.f32 %v7312_v3, %v8331_v4  ;;  %7319 = vrcp.f32 %v3128_v58 }
 0x271   : > { %v7314_v7 = vpop.eup %7313  ;;  %7321 = vrcp.f32 %v3127_v6 }
 0x272   : > { %3224 = vst.msk [vmem:[#allocation3 + $0xb1] sm:$0xff] %vm553_vm1, %v3184_v14  ;;  %v3183_v27 = vmul.f32 %v7314_v7, %v8336_v46  ;;  %v7430_v46 = vmov (!%p5649_p12), 0.0  }
 0x273   : > { %3232 = vst.msk [vmem:[#allocation3 + $0x1] sm:$0xff] (!%p5649_p12), %vm553_vm1, %v7430_v46  ;;  %3233 = vst.msk [vmem:[#allocation3 + $0x9] sm:$0xff] (!%p5649_p12), %vm553_vm1, %v7430_v46 }
 0x274   : > { %3223 = vst.msk [vmem:[#allocation3 + $0xa9] sm:$0xff] %vm553_vm1, %v3183_v27 }
 0x275   : > { %v7316_v31 = vpop.eup %7315 }
 0x276   : > { %v7318_v8 = vpop.eup %7317  ;;  %v3186_v9 = vmul.f32 %v7316_v31, %v8345_v59 }
 0x277   : > { %v3185_v10 = vmul.f32 %v7318_v8, %v8350_v53 }
 0x278   : > { %3226 = vst.msk [vmem:[#allocation3 + $0xc9] sm:$0xff] %vm553_vm1, %v3186_v9  ;;  %3231 = sbr.rel (%p5649_p12) target bundleno = 639 (0x27f), region = 76 }
 0x279   : > { %3225 = vst.msk [vmem:[#allocation3 + $0xc1] sm:$0xff] %vm553_vm1, %v3185_v10 }
 0x27a   : > { %v7320_v4 = vpop.eup %7319 }
 0x27b   : > { %v7322_v52 = vpop.eup %7321  ;;  %v3188_v11 = vmul.f32 %v7320_v4, %v8361_v23 }
 0x27c   : > { %v3187_v13 = vmul.f32 %v7322_v52, %v8365_v26 }
 0x27d   : > { %3228 = vst.msk [vmem:[#allocation3 + $0xe1] sm:$0xff] %vm553_vm1, %v3188_v11 }
 0x27e   : > { %3227 = vst.msk [vmem:[#allocation3 + $0xd9] sm:$0xff] %vm553_vm1, %v3187_v13 }
 0x27f PF: > { %3236 = sbr.rel (%p5651_p0) target bundleno = 646 (0x286), region = 80  ;;  %v7431_v59 = vmov (!%p5651_p0), 0.0  }
 0x280   : > { %3238 = vst.msk [vmem:[#allocation3 + $0xd9] sm:$0xff] (!%p5651_p0), %vm553_vm1, %v7431_v59  ;;  %3239 = vst.msk [vmem:[#allocation3 + $0xe1] sm:$0xff] (!%p5651_p0), %vm553_vm1, %v7431_v59 }
 0x286 PF: > { %v3273_v53 = vld [vmem:[%s8975_s6 + $0x4] sm:$0xf]  ;;  %v3258_v15 = vld [vmem:[#allocation3 + $0x9] sm:$0xff]  ;;  %v3256_v17 = vld [vmem:[%s8975_s6] sm:$0xf] }
 0x287   : > { %v3257_v16 = vld [vmem:[#allocation3 + $0x1] sm:$0xff]  ;;  %6674 = vmatprep.subr.msk.mxu1 %vm714_vm2, %v3273_v53  ;;  %v8415_v19 = vld [vmem:[#allocation3 + $0x19] sm:$0xff]  ;;  %v8425_v20 = vld [vmem:[#allocation3 + $0x31] sm:$0xff] }
 0x288   : > { %6676 = vmatprep.mubr.msk.f32.mxu1 %vm553_vm1, %v3257_v16  ;;  %6675 = vmatpush3.msk.msra.mxu1 %vm714_vm2, %v3273_v53  ;;  %v8423_v60 = vld [vmem:[#allocation3 + $0x21] sm:$0xff]  ;;  %v8435_v21 = vld [vmem:[#allocation3 + $0x39] sm:$0xff]  ;;  %v8437_v22 = vld [vmem:[#allocation3 + $0x49] sm:$0xff] }
 0x289   : > { %6677 = vmatmul.mubr.msk.f32.vlgmr.msra.gmra.mrb[18].mxu1 %vm553_vm1, %v3258_v15  ;;  %6700 = vmatprep.subr.msk.mxu1 %vm714_vm2, %v3256_v17  ;;  %v3682_v18 = vld [vmem:[%s8975_s6 + $0x8] sm:$0xf]  ;;  %v8443_v61 = vld [vmem:[#allocation3 + $0x51] sm:$0xff]  ;;  %v8453_v24 = vld [vmem:[#allocation3 + $0x79] sm:$0xff] }
 0x28a   : > { %6701 = vmatpush3.msk.msra.mxu1 %vm714_vm2, %v3256_v17  ;;  %6679 = vmatprep.mubr.msk.f32.mxu1 %vm553_vm1, %v8415_v19  ;;  %v8445_v23 = vld [vmem:[#allocation3 + $0x61] sm:$0xff]  ;;  %v8451_v54 = vld [vmem:[#allocation3 + $0x69] sm:$0xff]  ;;  %v8461_v55 = vld [vmem:[#allocation3 + $0x91] sm:$0xff] }
 0x28b   : > { %6726 = vmatprep.subr.msk.mxu1 %vm714_vm2, %v3682_v18  ;;  %v8459_v26 = vld [vmem:[#allocation3 + $0x81] sm:$0xff]  ;;  %v8467_v29 = vld [vmem:[#allocation3 + $0x99] sm:$0xff]  ;;  %v8469_v62 = vld [vmem:[#allocation3 + $0xa9] sm:$0xff] }
 0x28c   : > { %v8475_v25 = vld [vmem:[#allocation3 + $0xb1] sm:$0xff]  ;;  %v3240_v30 = vld [vmem:[#allocation3] sm:$0xff]  ;;  %v3241_v32 = vld [vmem:[#allocation3 + $0x8] sm:$0xff] }
 0x28d   : > { %6680 = vmatmul.mubr.msk.f32.gmra.mrb[20].mxu1 %vm553_vm1, %v8423_v60  ;;  %v8480_v33 = vld [vmem:[#allocation3 + $0x18] sm:$0xff]  ;;  %v3912_v28 = vld [vmem:[%s8975_s6 + $0xc] sm:$0xf]  ;;  %v8489_v34 = vld [vmem:[#allocation3 + $0x20] sm:$0xff] }
 0x28e   : > { %6682 = vmatprep.mubr.msk.f32.mxu1 %vm553_vm1, %v8425_v20  ;;  %v8491_v0 = vld [vmem:[#allocation3 + $0x30] sm:$0xff]  ;;  %v8498_v35 = vld [vmem:[#allocation3 + $0x38] sm:$0xff]  ;;  %v8500_v39 = vld [vmem:[#allocation3 + $0x48] sm:$0xff] }
 0x28f   : > { %v8506_v37 = vld [vmem:[#allocation3 + $0x50] sm:$0xff]  ;;  %v8508_v38 = vld [vmem:[#allocation3 + $0x60] sm:$0xff]  ;;  %v8514_v56 = vld [vmem:[#allocation3 + $0x68] sm:$0xff] }
 0x290   : > { %v8516_v40 = vld [vmem:[#allocation3 + $0x78] sm:$0xff]  ;;  %v8522_v42 = vld [vmem:[#allocation3 + $0x80] sm:$0xff]  ;;  %v8524_v43 = vld [vmem:[#allocation3 + $0x90] sm:$0xff] }
 0x291   : > { %6683 = vmatmul.mubr.msk.f32.gmra.mrb[22].mxu1 %vm553_vm1, %v8435_v21  ;;  %v8530_v36 = vld [vmem:[#allocation3 + $0x98] sm:$0xff]  ;;  %v8532_v41 = vld [vmem:[#allocation3 + $0xa8] sm:$0xff]  ;;  %v8538_v57 = vld [vmem:[#allocation3 + $0xb0] sm:$0xff] }
 0x292   : > { %6685 = vmatprep.mubr.msk.f32.mxu1 %vm553_vm1, %v8437_v22  ;;  %v3666_v44 = vld [vmem:[#allocation3 + $0x2] sm:$0xff]  ;;  %v3667_v45 = vld [vmem:[#allocation3 + $0xa] sm:$0xff]  ;;  %v8543_v5 = vld [vmem:[#allocation3 + $0x1a] sm:$0xff] }
 0x293   : > { %v4141_v47 = vld [vmem:[%s8975_s6 + $0x10] sm:$0xf]  ;;  %v8552_v49 = vld [vmem:[#allocation3 + $0x22] sm:$0xff]  ;;  %v8561_v50 = vld [vmem:[#allocation3 + $0x3a] sm:$0xff] }
 0x294   : > { %v8554_v48 = vld [vmem:[#allocation3 + $0x32] sm:$0xff]  ;;  %v8563_v63 = vld [vmem:[#allocation3 + $0x4a] sm:$0xff]  ;;  %v8571_v51 = vld [vmem:[#allocation3 + $0x62] sm:$0xff] }
 0x295   : > { %6686 = vmatmul.mubr.msk.f32.gmra.mrb[24].mxu1 %vm553_vm1, %v8443_v61  ;;  %v8569_v1 = vld [vmem:[#allocation3 + $0x52] sm:$0xff]  ;;  %v8577_v12 = vld [vmem:[#allocation3 + $0x6a] sm:$0xff]  ;;  %v8579_v2 = vld [vmem:[#allocation3 + $0x7a] sm:$0xff] }
 0x296   : > { %6688 = vmatprep.mubr.msk.f32.mxu1 %vm553_vm1, %v8445_v23  ;;  %v8585_v58 = vld [vmem:[#allocation3 + $0x82] sm:$0xff]  ;;  %v8587_v3 = vld [vmem:[#allocation3 + $0x92] sm:$0xff]  ;;  %v8593_v6 = vld [vmem:[#allocation3 + $0x9a] sm:$0xff] }
 0x297   : > { %v8595_v14 = vld [vmem:[#allocation3 + $0xaa] sm:$0xff]  ;;  %v8601_v7 = vld [vmem:[#allocation3 + $0xb2] sm:$0xff]  ;;  %v3910_v31 = vld [vmem:[#allocation3 + $0xc0] sm:$0xff] }
 0x298   : > { %v4370_v27 = vld [vmem:[%s8975_s6 + $0x14] sm:$0xf]  ;;  %v3911_v8 = vld [vmem:[#allocation3 + $0xc8] sm:$0xff]  ;;  %v4600_v9 = vld [vmem:[%s8975_s6 + $0x18] sm:$0xf] }
 0x299   : > { %6689 = vmatmul.mubr.msk.f32.gmra.mrb[26].mxu1 %vm553_vm1, %v8451_v54  ;;  %v4139_v10 = vld [vmem:[#allocation3 + $0xc1] sm:$0xff]  ;;  %v4140_v4 = vld [vmem:[#allocation3 + $0xc9] sm:$0xff]  ;;  %v4829_v52 = vld [vmem:[%s8975_s6 + $0x1c] sm:$0xf] }
 0x29a   : > { %6691 = vmatprep.mubr.msk.f32.mxu1 %vm553_vm1, %v8453_v24  ;;  %v4368_v11 = vld [vmem:[#allocation3 + $0xc2] sm:$0xff]  ;;  %v4369_v13 = vld [vmem:[#allocation3 + $0xca] sm:$0xff]  ;;  %v4598_v59 = vld [vmem:[#allocation3 + $0xd8] sm:$0xff] }
 0x29b   : > { %v5058_v46 = vld [vmem:[%s8975_s6 + $0x20] sm:$0xf] }
 0x29c   : > { %v4599_v53 = vld [vmem:[#allocation3 + $0xe0] sm:$0xff] }
 0x29d   : > { %6692 = vmatmul.mubr.msk.f32.gmra.mrb[28].mxu1 %vm553_vm1, %v8459_v26  ;;  %v4827_v16 = vld [vmem:[#allocation3 + $0xd9] sm:$0xff]  ;;  %v4828_v15 = vld [vmem:[#allocation3 + $0xe1] sm:$0xff] }
 0x29e   : > { %6694 = vmatprep.mubr.msk.f32.mxu1 %vm553_vm1, %v8461_v55  ;;  %v5056_v17 = vld [vmem:[#allocation3 + $0xda] sm:$0xff] }
 0x2a1   : > { %6695 = vmatmul.mubr.msk.f32.gmra.mrb[30].mxu1 %vm553_vm1, %v8467_v29 }
 0x2a2   : > { %6697 = vmatprep.mubr.msk.f32.mxu1 %vm553_vm1, %v8469_v62 }
 0x2a5   : > { %6698 = vmatmul.mubr.msk.f32.gmra.mrb[32].mxu1 %vm553_vm1, %v8475_v25 }
 0x2a6   : > { %6702 = vmatprep.mubr.msk.f32.mxu1 %vm553_vm1, %v3240_v30 }
 0x2a9   : > { %6703 = vmatmul.mubr.msk.f32.vlgmr.msra.gmra.mrb[18].mxu1 %vm553_vm1, %v3241_v32 }
 0x2aa   : > { %6727 = vmatpush3.msk.msra.mxu1 %vm714_vm2, %v3682_v18  ;;  %6705 = vmatprep.mubr.msk.f32.mxu1 %vm553_vm1, %v8480_v33  ;;  %v8808_v18 = vld [vmem:[%s8977_s8] ss:$0 sm:$0xff] }
 0x2ab   : > { %6752 = vmatprep.subr.msk.mxu1 %vm714_vm2, %v3912_v28 }
 0x2ad   : > { %6706 = vmatmul.mubr.msk.f32.gmra.mrb[20].mxu1 %vm553_vm1, %v8489_v34 }
 0x2ae   : > { %6708 = vmatprep.mubr.msk.f32.mxu1 %vm553_vm1, %v8491_v0 }
 0x2b1   : > { %6709 = vmatmul.mubr.msk.f32.gmra.mrb[22].mxu1 %vm553_vm1, %v8498_v35 }
 0x2b2   : > { %6711 = vmatprep.mubr.msk.f32.mxu1 %vm553_vm1, %v8500_v39 }
 0x2b5   : > { %6712 = vmatmul.mubr.msk.f32.gmra.mrb[24].mxu1 %vm553_vm1, %v8506_v37 }
 0x2b6   : > { %6714 = vmatprep.mubr.msk.f32.mxu1 %vm553_vm1, %v8508_v38 }
 0x2b9   : > { %6715 = vmatmul.mubr.msk.f32.gmra.mrb[26].mxu1 %vm553_vm1, %v8514_v56 }
 0x2ba   : > { %6717 = vmatprep.mubr.msk.f32.mxu1 %vm553_vm1, %v8516_v40 }
 0x2bd   : > { %6718 = vmatmul.mubr.msk.f32.gmra.mrb[28].mxu1 %vm553_vm1, %v8522_v42 }
 0x2be   : > { %6720 = vmatprep.mubr.msk.f32.mxu1 %vm553_vm1, %v8524_v43 }
 0x2c1   : > { %6721 = vmatmul.mubr.msk.f32.gmra.mrb[30].mxu1 %vm553_vm1, %v8530_v36 }
 0x2c2   : > { %6723 = vmatprep.mubr.msk.f32.mxu1 %vm553_vm1, %v8532_v41 }
 0x2c5   : > { %6724 = vmatmul.mubr.msk.f32.gmra.mrb[32].mxu1 %vm553_vm1, %v8538_v57 }
 0x2c6   : > { %6728 = vmatprep.mubr.msk.f32.mxu1 %vm553_vm1, %v3666_v44 }
 0x2c9   : > { %6729 = vmatmul.mubr.msk.f32.vlgmr.msra.gmra.mrb[18].mxu1 %vm553_vm1, %v3667_v45 }
 0x2ca   : > { %6753 = vmatpush3.msk.msra.mxu1 %vm714_vm2, %v3912_v28  ;;  %6731 = vmatprep.mubr.msk.f32.mxu1 %vm553_vm1, %v8543_v5 }
 0x2cb   : > { %6778 = vmatprep.subr.msk.mxu1 %vm714_vm2, %v4141_v47 }
 0x2cd   : > { %6732 = vmatmul.mubr.msk.f32.gmra.mrb[20].mxu1 %vm553_vm1, %v8552_v49 }
 0x2ce   : > { %6734 = vmatprep.mubr.msk.f32.mxu1 %vm553_vm1, %v8554_v48 }
 0x2d1   : > { %6735 = vmatmul.mubr.msk.f32.gmra.mrb[22].mxu1 %vm553_vm1, %v8561_v50 }
 0x2d2   : > { %6737 = vmatprep.mubr.msk.f32.mxu1 %vm553_vm1, %v8563_v63 }
 0x2d5   : > { %6738 = vmatmul.mubr.msk.f32.gmra.mrb[24].mxu1 %vm553_vm1, %v8569_v1 }
 0x2d6   : > { %6740 = vmatprep.mubr.msk.f32.mxu1 %vm553_vm1, %v8571_v51 }
 0x2d9   : > { %6741 = vmatmul.mubr.msk.f32.gmra.mrb[26].mxu1 %vm553_vm1, %v8577_v12 }
 0x2da   : > { %6743 = vmatprep.mubr.msk.f32.mxu1 %vm553_vm1, %v8579_v2 }
 0x2dd   : > { %6744 = vmatmul.mubr.msk.f32.gmra.mrb[28].mxu1 %vm553_vm1, %v8585_v58 }
 0x2de   : > { %6746 = vmatprep.mubr.msk.f32.mxu1 %vm553_vm1, %v8587_v3 }
 0x2e1   : > { %6747 = vmatmul.mubr.msk.f32.gmra.mrb[30].mxu1 %vm553_vm1, %v8593_v6 }
 0x2e2   : > { %6749 = vmatprep.mubr.msk.f32.mxu1 %vm553_vm1, %v8595_v14 }
 0x2e5   : > { %6750 = vmatmul.mubr.msk.f32.gmra.mrb[32].mxu1 %vm553_vm1, %v8601_v7 }
 0x2e6   : > { %6754 = vmatprep.mubr.msk.f32.mxu1 %vm553_vm1, %v8480_v33 }
 0x2e9   : > { %6755 = vmatmul.mubr.msk.f32.vlgmr.msra.gmra.mrb[18].mxu1 %vm553_vm1, %v8489_v34 }
 0x2ea   : > { %6779 = vmatpush3.msk.msra.mxu1 %vm714_vm2, %v4141_v47  ;;  %6757 = vmatprep.mubr.msk.f32.mxu1 %vm553_vm1, %v8491_v0 }
 0x2eb   : > { %6804 = vmatprep.subr.msk.mxu1 %vm714_vm2, %v4370_v27 }
 0x2ed   : > { %6758 = vmatmul.mubr.msk.f32.gmra.mrb[20].mxu1 %vm553_vm1, %v8498_v35 }
 0x2ee   : > { %6760 = vmatprep.mubr.msk.f32.mxu1 %vm553_vm1, %v8500_v39 }
 0x2f1   : > { %6761 = vmatmul.mubr.msk.f32.gmra.mrb[22].mxu1 %vm553_vm1, %v8506_v37 }
 0x2f2   : > { %6763 = vmatprep.mubr.msk.f32.mxu1 %vm553_vm1, %v8508_v38 }
 0x2f5   : > { %6764 = vmatmul.mubr.msk.f32.gmra.mrb[24].mxu1 %vm553_vm1, %v8514_v56 }
 0x2f6   : > { %6766 = vmatprep.mubr.msk.f32.mxu1 %vm553_vm1, %v8516_v40 }
 0x2f9   : > { %6767 = vmatmul.mubr.msk.f32.gmra.mrb[26].mxu1 %vm553_vm1, %v8522_v42 }
 0x2fa   : > { %6769 = vmatprep.mubr.msk.f32.mxu1 %vm553_vm1, %v8524_v43 }
 0x2fd   : > { %6770 = vmatmul.mubr.msk.f32.gmra.mrb[28].mxu1 %vm553_vm1, %v8530_v36 }
 0x2fe   : > { %6772 = vmatprep.mubr.msk.f32.mxu1 %vm553_vm1, %v8532_v41 }
 0x301   : > { %6773 = vmatmul.mubr.msk.f32.gmra.mrb[30].mxu1 %vm553_vm1, %v8538_v57 }
 0x302   : > { %6775 = vmatprep.mubr.msk.f32.mxu1 %vm553_vm1, %v3910_v31 }
 0x305   : > { %6776 = vmatmul.mubr.msk.f32.gmra.mrb[32].mxu1 %vm553_vm1, %v3911_v8 }
 0x306   : > { %6780 = vmatprep.mubr.msk.f32.mxu1 %vm553_vm1, %v8415_v19  ;;  %v5057_v19 = vld [vmem:[#allocation3 + $0xe2] sm:$0xff] }
 0x309   : > { %6781 = vmatmul.mubr.msk.f32.vlgmr.msra.gmra.mrb[18].mxu1 %vm553_vm1, %v8423_v60  ;;  %v8803_v60 = vld [vmem:[%s8976_s7] ss:$0 sm:$0xff] }
 0x30a   : > { %6805 = vmatpush3.msk.msra.mxu1 %vm714_vm2, %v4370_v27  ;;  %6783 = vmatprep.mubr.msk.f32.mxu1 %vm553_vm1, %v8425_v20 }
 0x30b   : > { %6830 = vmatprep.subr.msk.mxu1 %vm714_vm2, %v4600_v9 }
 0x30d   : > { %6784 = vmatmul.mubr.msk.f32.gmra.mrb[20].mxu1 %vm553_vm1, %v8435_v21 }
 0x30e   : > { %6786 = vmatprep.mubr.msk.f32.mxu1 %vm553_vm1, %v8437_v22 }
 0x311   : > { %6787 = vmatmul.mubr.msk.f32.gmra.mrb[22].mxu1 %vm553_vm1, %v8443_v61 }
 0x312   : > { %6789 = vmatprep.mubr.msk.f32.mxu1 %vm553_vm1, %v8445_v23 }
 0x315   : > { %6790 = vmatmul.mubr.msk.f32.gmra.mrb[24].mxu1 %vm553_vm1, %v8451_v54 }
 0x316   : > { %6792 = vmatprep.mubr.msk.f32.mxu1 %vm553_vm1, %v8453_v24 }
 0x319   : > { %6793 = vmatmul.mubr.msk.f32.gmra.mrb[26].mxu1 %vm553_vm1, %v8459_v26 }
 0x31a   : > { %6795 = vmatprep.mubr.msk.f32.mxu1 %vm553_vm1, %v8461_v55 }
 0x31d   : > { %6796 = vmatmul.mubr.msk.f32.gmra.mrb[28].mxu1 %vm553_vm1, %v8467_v29 }
 0x31e   : > { %6798 = vmatprep.mubr.msk.f32.mxu1 %vm553_vm1, %v8469_v62 }
 0x321   : > { %6799 = vmatmul.mubr.msk.f32.gmra.mrb[30].mxu1 %vm553_vm1, %v8475_v25 }
 0x322   : > { %6801 = vmatprep.mubr.msk.f32.mxu1 %vm553_vm1, %v4139_v10 }
 0x325   : > { %6802 = vmatmul.mubr.msk.f32.gmra.mrb[32].mxu1 %vm553_vm1, %v4140_v4 }
 0x326   : > { %6806 = vmatprep.mubr.msk.f32.mxu1 %vm553_vm1, %v8543_v5 }
 0x329   : > { %6807 = vmatmul.mubr.msk.f32.vlgmr.msra.gmra.mrb[18].mxu1 %vm553_vm1, %v8552_v49 }
 0x32a   : > { %6831 = vmatpush3.msk.msra.mxu1 %vm714_vm2, %v4600_v9  ;;  %6809 = vmatprep.mubr.msk.f32.mxu1 %vm553_vm1, %v8554_v48 }
 0x32b   : > { %6856 = vmatprep.subr.msk.mxu1 %vm714_vm2, %v4829_v52 }
 0x32d   : > { %6810 = vmatmul.mubr.msk.f32.gmra.mrb[20].mxu1 %vm553_vm1, %v8561_v50 }
 0x32e   : > { %6812 = vmatprep.mubr.msk.f32.mxu1 %vm553_vm1, %v8563_v63 }
 0x331   : > { %6813 = vmatmul.mubr.msk.f32.gmra.mrb[22].mxu1 %vm553_vm1, %v8569_v1 }
 0x332   : > { %6815 = vmatprep.mubr.msk.f32.mxu1 %vm553_vm1, %v8571_v51 }
 0x335   : > { %6816 = vmatmul.mubr.msk.f32.gmra.mrb[24].mxu1 %vm553_vm1, %v8577_v12 }
 0x336   : > { %6818 = vmatprep.mubr.msk.f32.mxu1 %vm553_vm1, %v8579_v2 }
 0x339   : > { %6819 = vmatmul.mubr.msk.f32.gmra.mrb[26].mxu1 %vm553_vm1, %v8585_v58 }
 0x33a   : > { %6821 = vmatprep.mubr.msk.f32.mxu1 %vm553_vm1, %v8587_v3 }
 0x33d   : > { %6822 = vmatmul.mubr.msk.f32.gmra.mrb[28].mxu1 %vm553_vm1, %v8593_v6 }
 0x33e   : > { %6824 = vmatprep.mubr.msk.f32.mxu1 %vm553_vm1, %v8595_v14 }
 0x341   : > { %6825 = vmatmul.mubr.msk.f32.gmra.mrb[30].mxu1 %vm553_vm1, %v8601_v7 }
 0x342   : > { %6827 = vmatprep.mubr.msk.f32.mxu1 %vm553_vm1, %v4368_v11 }
 0x345   : > { %6828 = vmatmul.mubr.msk.f32.gmra.mrb[32].mxu1 %vm553_vm1, %v4369_v13 }
 0x346   : > { %6832 = vmatprep.mubr.msk.f32.mxu1 %vm553_vm1, %v8491_v0 }
 0x349   : > { %6833 = vmatmul.mubr.msk.f32.vlgmr.msra.gmra.mrb[18].mxu1 %vm553_vm1, %v8498_v35 }
 0x34a   : > { %6857 = vmatpush3.msk.msra.mxu1 %vm714_vm2, %v4829_v52  ;;  %6835 = vmatprep.mubr.msk.f32.mxu1 %vm553_vm1, %v8500_v39 }
 0x34b   : > { %6882 = vmatprep.subr.msk.mxu1 %vm714_vm2, %v5058_v46 }
 0x34d   : > { %6836 = vmatmul.mubr.msk.f32.gmra.mrb[20].mxu1 %vm553_vm1, %v8506_v37 }
 0x34e   : > { %6838 = vmatprep.mubr.msk.f32.mxu1 %vm553_vm1, %v8508_v38 }
 0x351   : > { %6839 = vmatmul.mubr.msk.f32.gmra.mrb[22].mxu1 %vm553_vm1, %v8514_v56 }
 0x352   : > { %6841 = vmatprep.mubr.msk.f32.mxu1 %vm553_vm1, %v8516_v40 }
 0x355   : > { %6842 = vmatmul.mubr.msk.f32.gmra.mrb[24].mxu1 %vm553_vm1, %v8522_v42 }
 0x356   : > { %6844 = vmatprep.mubr.msk.f32.mxu1 %vm553_vm1, %v8524_v43 }
 0x359   : > { %6845 = vmatmul.mubr.msk.f32.gmra.mrb[26].mxu1 %vm553_vm1, %v8530_v36 }
 0x35a   : > { %6847 = vmatprep.mubr.msk.f32.mxu1 %vm553_vm1, %v8532_v41 }
 0x35d   : > { %6848 = vmatmul.mubr.msk.f32.gmra.mrb[28].mxu1 %vm553_vm1, %v8538_v57 }
 0x35e   : > { %6850 = vmatprep.mubr.msk.f32.mxu1 %vm553_vm1, %v3910_v31 }
 0x361   : > { %6851 = vmatmul.mubr.msk.f32.gmra.mrb[30].mxu1 %vm553_vm1, %v3911_v8 }
 0x362   : > { %6853 = vmatprep.mubr.msk.f32.mxu1 %vm553_vm1, %v4598_v59 }
 0x365   : > { %6854 = vmatmul.mubr.msk.f32.gmra.mrb[32].mxu1 %vm553_vm1, %v4599_v53 }
 0x366   : > { %6858 = vmatprep.mubr.msk.f32.mxu1 %vm553_vm1, %v8425_v20 }
 0x369   : > { %6859 = vmatmul.mubr.msk.f32.vlgmr.msra.gmra.mrb[18].mxu1 %vm553_vm1, %v8435_v21 }
 0x36a   : > { %6883 = vmatpush3.msk.msra.mxu1 %vm714_vm2, %v5058_v46  ;;  %6861 = vmatprep.mubr.msk.f32.mxu1 %vm553_vm1, %v8437_v22 }
 0x36d   : > { %6862 = vmatmul.mubr.msk.f32.gmra.mrb[20].mxu1 %vm553_vm1, %v8443_v61 }
 0x36e   : > { %6864 = vmatprep.mubr.msk.f32.mxu1 %vm553_vm1, %v8445_v23 }
 0x371   : > { %6865 = vmatmul.mubr.msk.f32.gmra.mrb[22].mxu1 %vm553_vm1, %v8451_v54 }
 0x372   : > { %6867 = vmatprep.mubr.msk.f32.mxu1 %vm553_vm1, %v8453_v24 }
 0x375   : > { %6868 = vmatmul.mubr.msk.f32.gmra.mrb[24].mxu1 %vm553_vm1, %v8459_v26 }
 0x376   : > { %6870 = vmatprep.mubr.msk.f32.mxu1 %vm553_vm1, %v8461_v55 }
 0x379   : > { %6871 = vmatmul.mubr.msk.f32.gmra.mrb[26].mxu1 %vm553_vm1, %v8467_v29 }
 0x37a   : > { %6873 = vmatprep.mubr.msk.f32.mxu1 %vm553_vm1, %v8469_v62 }
 0x37d   : > { %6874 = vmatmul.mubr.msk.f32.gmra.mrb[28].mxu1 %vm553_vm1, %v8475_v25 }
 0x37e   : > { %6876 = vmatprep.mubr.msk.f32.mxu1 %vm553_vm1, %v4139_v10 }
 0x381   : > { %6877 = vmatmul.mubr.msk.f32.gmra.mrb[30].mxu1 %vm553_vm1, %v4140_v4 }
 0x382   : > { %6879 = vmatprep.mubr.msk.f32.mxu1 %vm553_vm1, %v4827_v16 }
 0x385   : > { %6880 = vmatmul.mubr.msk.f32.gmra.mrb[32].mxu1 %vm553_vm1, %v4828_v15 }
 0x386   : > { %6884 = vmatprep.mubr.msk.f32.mxu1 %vm553_vm1, %v8554_v48 }
 0x389   : > { %6885 = vmatmul.mubr.msk.f32.vlgmr.msra.gmra.mrb[18].mxu1 %vm553_vm1, %v8561_v50 }
 0x38a   : > { %6887 = vmatprep.mubr.msk.f32.mxu1 %vm553_vm1, %v8563_v63 }
 0x38d   : > { %6888 = vmatmul.mubr.msk.f32.gmra.mrb[20].mxu1 %vm553_vm1, %v8569_v1 }
 0x38e   : > { %6890 = vmatprep.mubr.msk.f32.mxu1 %vm553_vm1, %v8571_v51 }
 0x391   : > { %6891 = vmatmul.mubr.msk.f32.gmra.mrb[22].mxu1 %vm553_vm1, %v8577_v12 }
 0x392   : > { %6893 = vmatprep.mubr.msk.f32.mxu1 %vm553_vm1, %v8579_v2 }
 0x395   : > { %6894 = vmatmul.mubr.msk.f32.gmra.mrb[24].mxu1 %vm553_vm1, %v8585_v58 }
 0x396   : > { %6896 = vmatprep.mubr.msk.f32.mxu1 %vm553_vm1, %v8587_v3 }
 0x399   : > { %6897 = vmatmul.mubr.msk.f32.gmra.mrb[26].mxu1 %vm553_vm1, %v8593_v6 }
 0x39a   : > { %6899 = vmatprep.mubr.msk.f32.mxu1 %vm553_vm1, %v8595_v14 }
 0x39d   : > { %6900 = vmatmul.mubr.msk.f32.gmra.mrb[28].mxu1 %vm553_vm1, %v8601_v7 }
 0x39e   : > { %6902 = vmatprep.mubr.msk.f32.mxu1 %vm553_vm1, %v4368_v11 }
 0x3a1   : > { %6903 = vmatmul.mubr.msk.f32.gmra.mrb[30].mxu1 %vm553_vm1, %v4369_v13 }
 0x3a2   : > { %6905 = vmatprep.mubr.msk.f32.mxu1 %vm553_vm1, %v5056_v17 }
 0x3a5   : > { %6906 = vmatmul.mubr.msk.f32.gmra.mrb[32].mxu1 %vm553_vm1, %v5057_v19 }
 0x45c   : > { %v6886_v20 = vpop.f32.mrb[18].mxu1 }
 0x45d   : > { %v5279_v21 = vmul.f32 %v6886_v20, %v8803_v60  ;;  %v5176_v22 = vpop.f32.mrb[19].mxu1 }
 0x45e   : > { %v5278_v61 = vmul.f32 %v8803_v60, %v5176_v22 }
 0x45f   : > { %v8813_v23 = vadd.f32 %v8808_v18, %v5279_v21 }
 0x460   : > { %v8816_v54 = vadd.f32 %v8808_v18, %v5278_v61  ;;  %v6889_v24 = vpop.f32.mrb[20].mxu1 }
 0x461   : > { %v6021_v26 = vmul.f32 -1.442695, %v8813_v23  ;;  %v5281_v55 = vmul.f32 %v6889_v24, %v8803_v60  ;;  %v5186_v29 = vpop.f32.mrb[21].mxu1 }
 0x462   : > { %v6020_v62 = vmul.f32 -1.442695, %v8816_v54  ;;  %v5280_v25 = vmul.f32 %v8803_v60, %v5186_v29 }
 0x463   : > { %7323 = vpow2.f32 %v6021_v26  ;;  %v8823_v30 = vadd.f32 %v8808_v18, %v5281_v55 }
 0x464   : > { %7325 = vpow2.f32 %v6020_v62  ;;  %v8826_v32 = vadd.f32 %v8808_v18, %v5280_v25  ;;  %v6892_v33 = vpop.f32.mrb[22].mxu1 }
 0x465   : > { %v6023_v28 = vmul.f32 -1.442695, %v8823_v30  ;;  %v5283_v34 = vmul.f32 %v6892_v33, %v8803_v60  ;;  %v5196_v0 = vpop.f32.mrb[23].mxu1  ;;  %v5430_v33 = vld [vmem:[%s7581_s10 + $0x8] sm:$0xff] }
 0x466   : > { %v6022_v35 = vmul.f32 -1.442695, %v8826_v32  ;;  %v5282_v39 = vmul.f32 %v8803_v60, %v5196_v0 }
 0x467   : > { %7327 = vpow2.f32 %v6023_v28  ;;  %v8833_v37 = vadd.f32 %v8808_v18, %v5283_v34 }
 0x468   : > { %7329 = vpow2.f32 %v6022_v35  ;;  %v8836_v38 = vadd.f32 %v8808_v18, %v5282_v39  ;;  %v6895_v56 = vpop.f32.mrb[24].mxu1 }
 0x469   : > { %v6025_v40 = vmul.f32 -1.442695, %v8833_v37  ;;  %v5285_v42 = vmul.f32 %v6895_v56, %v8803_v60  ;;  %v5206_v43 = vpop.f32.mrb[25].mxu1  ;;  %v5429_v56 = vld [vmem:[%s7581_s10] sm:$0xff] }
 0x46a   : > { %v6024_v36 = vmul.f32 -1.442695, %v8836_v38  ;;  %v5284_v41 = vmul.f32 %v8803_v60, %v5206_v43 }
 0x46b   : > { %7331 = vpow2.f32 %v6025_v40  ;;  %v8843_v57 = vadd.f32 %v8808_v18, %v5285_v42 }
 0x46c   : > { %7333 = vpow2.f32 %v6024_v36  ;;  %v8846_v44 = vadd.f32 %v8808_v18, %v5284_v41  ;;  %v6898_v45 = vpop.f32.mrb[26].mxu1 }
 0x46d   : > { %v7324_v5 = vpop.eup %7323  ;;  %v6027_v47 = vmul.f32 -1.442695, %v8843_v57  ;;  %v5287_v49 = vmul.f32 %v6898_v45, %v8803_v60  ;;  %v5216_v48 = vpop.f32.mrb[27].mxu1 }
 0x46e   : > { %v7326_v50 = vpop.eup %7325  ;;  %v5366_v63 = vadd.f32 1.0, %v7324_v5  ;;  %v6026_v1 = vmul.f32 -1.442695, %v8846_v44  ;;  %v5286_v51 = vmul.f32 %v8803_v60, %v5216_v48 }
 0x46f   : > { %v5365_v12 = vadd.f32 1.0, %v7326_v50  ;;  %7335 = vpow2.f32 %v6027_v47  ;;  %v8853_v2 = vadd.f32 %v8808_v18, %v5287_v49  ;;  %v5432_v49 = vld [vmem:[%s7581_s10 + $0x18] sm:$0xff] }
 0x470   : > { %7337 = vrcp.f32 %v5366_v63  ;;  %v8856_v58 = vadd.f32 %v8808_v18, %v5286_v51  ;;  %v6901_v3 = vpop.f32.mrb[28].mxu1  ;;  %v5431_v63 = vld [vmem:[%s7581_s10 + $0x10] sm:$0xff] }
 0x471   : > { %v7328_v6 = vpop.eup %7327  ;;  %7339 = vrcp.f32 %v5365_v12  ;;  %v6029_v14 = vmul.f32 -1.442695, %v8853_v2  ;;  %v5289_v7 = vmul.f32 %v6901_v3, %v8803_v60  ;;  %v5226_v27 = vpop.f32.mrb[29].mxu1 }
 0x472   : > { %v7330_v31 = vpop.eup %7329  ;;  %v5368_v8 = vadd.f32 1.0, %v7328_v6  ;;  %7341 = vpow2.f32 %v6026_v1  ;;  %v6028_v9 = vmul.f32 -1.442695, %v8856_v58  ;;  %v5288_v10 = vmul.f32 %v8803_v60, %v5226_v27  ;;  %v5434_v27 = vld [vmem:[%s7581_s10 + $0x28] sm:$0xff] }
 0x473   : > { %v5367_v4 = vadd.f32 1.0, %v7330_v31  ;;  %7343 = vpow2.f32 %v6029_v14  ;;  %v8863_v52 = vadd.f32 %v8808_v18, %v5289_v7 }
 0x474   : > { %7345 = vrcp.f32 %v5368_v8  ;;  %v8866_v11 = vadd.f32 %v8808_v18, %v5288_v10  ;;  %v6904_v13 = vpop.f32.mrb[30].mxu1 }
 0x475   : > { %v7332_v46 = vpop.eup %7331  ;;  %7347 = vrcp.f32 %v5367_v4  ;;  %v6031_v59 = vmul.f32 -1.442695, %v8863_v52  ;;  %v5291_v53 = vmul.f32 %v6904_v13, %v8803_v60  ;;  %v5236_v16 = vpop.f32.mrb[31].mxu1 }
 0x476   : > { %v7334_v15 = vpop.eup %7333  ;;  %v5370_v17 = vadd.f32 1.0, %v7332_v46  ;;  %7349 = vpow2.f32 %v6028_v9  ;;  %v6030_v19 = vmul.f32 -1.442695, %v8866_v11  ;;  %v5290_v20 = vmul.f32 %v8803_v60, %v5236_v16  ;;  %v5433_v9 = vld [vmem:[%s7581_s10 + $0x20] sm:$0xff]  ;;  %v5436_v16 = vld [vmem:[%s7581_s10 + $0x38] sm:$0xff] }
 0x477   : > { %v5369_v21 = vadd.f32 1.0, %v7334_v15  ;;  %7351 = vpow2.f32 %v6031_v59  ;;  %v8873_v22 = vadd.f32 %v8808_v18, %v5291_v53 }
 0x478   : > { %7353 = vrcp.f32 %v5370_v17  ;;  %v8876_v61 = vadd.f32 %v8808_v18, %v5290_v20  ;;  %v6907_v24 = vpop.f32.mrb[32].mxu1 }
 0x479   : > { %v7336_v26 = vpop.eup %7335  ;;  %7355 = vrcp.f32 %v5369_v21  ;;  %v6033_v55 = vmul.f32 -1.442695, %v8873_v22  ;;  %v5293_v29 = vmul.f32 %v6907_v24, %v8803_v60  ;;  %v5246_v62 = vpop.f32.mrb[33].mxu1  ;;  %v5435_v21 = vld [vmem:[%s7581_s10 + $0x30] sm:$0xff] }
 0x47a   : > { %v7338_v25 = vpop.eup %7337  ;;  %v5372_v28 = vadd.f32 1.0, %v7336_v26  ;;  %7357 = vpow2.f32 %v6030_v19  ;;  %v6032_v34 = vmul.f32 -1.442695, %v8876_v61  ;;  %v5292_v0 = vmul.f32 %v8803_v60, %v5246_v62 }
 0x47b   : > { %v7340_v35 = vpop.eup %7339  ;;  %v5414_v39 = vmul.f32 %v7338_v25, %v8813_v23  ;;  %7359 = vpow2.f32 %v6033_v55  ;;  %v8886_v40 = vadd.f32 %v8808_v18, %v5293_v29  ;;  %v5438_v55 = vld [vmem:[%s7581_s10 + $0x48] sm:$0xff] }
 0x47c   : > { %v7342_v42 = vpop.eup %7341  ;;  %v5413_v43 = vmul.f32 %v7340_v35, %v8816_v54  ;;  %7361 = vrcp.f32 %v5372_v28  ;;  %v8890_v36 = vadd.f32 %v8808_v18, %v5292_v0  ;;  %v5437_v0 = vld [vmem:[%s7581_s10 + $0x40] sm:$0xff] }
 0x47d   : > { %v7344_v41 = vpop.eup %7343  ;;  %v5446_v60 = vadd.f32 %v5430_v33, %v5414_v39  ;;  %v5371_v45 = vadd.f32 1.0, %v7342_v42  ;;  %7363 = vpow2.f32 %v6032_v34  ;;  %v6035_v23 = vmul.f32 -1.442695, %v8886_v40 }
 0x47e   : > { %v7346_v5 = vpop.eup %7345  ;;  %v5445_v47 = vadd.f32 %v5429_v56, %v5413_v43  ;;  %v5374_v48 = vadd.f32 1.0, %v7344_v41  ;;  %v6034_v50 = vmul.f32 -1.442695, %v8890_v36  ;;  %v5440_v56 = vld [vmem:[%s7581_s10 + $0x58] sm:$0xff] }
 0x47f   : > { %v7348_v54 = vpop.eup %7347  ;;  %5462 = vst.msk [vmem:[%s7591_s22 + $0x8] sm:$0xff] %vm553_vm1, %v5446_v60  ;;  %v5416_v18 = vmul.f32 %v7346_v5, %v8823_v30  ;;  %7365 = vrcp.f32 %v5371_v45  ;;  %v5439_v60 = vld [vmem:[%s7581_s10 + $0x50] sm:$0xff] }
 0x480   : > { %v7350_v1 = vpop.eup %7349  ;;  %5461 = vst.msk [vmem:[%s7591_s22] sm:$0xff] %vm553_vm1, %v5445_v47  ;;  %v5415_v51 = vmul.f32 %v7348_v54, %v8826_v32  ;;  %7367 = vrcp.f32 %v5374_v48 }
 0x481   : > { %v7352_v12 = vpop.eup %7351  ;;  %v5448_v3 = vadd.f32 %v5432_v49, %v5416_v18  ;;  %v5373_v6 = vadd.f32 1.0, %v7350_v1  ;;  %7369 = vpow2.f32 %v6035_v23  ;;  %v5442_v23 = vld [vmem:[%s7581_s10 + $0x68] sm:$0xff]  ;;  %v5441_v49 = vld [vmem:[%s7581_s10 + $0x60] sm:$0xff]  ;;  %v5444_v18 = vld [vmem:[%s7581_s10 + $0x78] sm:$0xff] }
 0x482   : > { %v7354_v14 = vpop.eup %7353  ;;  %v5447_v7 = vadd.f32 %v5431_v63, %v5415_v51  ;;  %v5376_v31 = vadd.f32 1.0, %v7352_v12  ;;  %7371 = vpow2.f32 %v6034_v50  ;;  %v5443_v1 = vld [vmem:[%s7581_s10 + $0x70] sm:$0xff] }
 0x483   : > { %v7356_v30 = vpop.eup %7355  ;;  %5464 = vst.msk [vmem:[%s7591_s22 + $0x18] sm:$0xff] %vm553_vm1, %v5448_v3  ;;  %v5418_v8 = vmul.f32 %v7354_v14, %v8833_v37  ;;  %7373 = vrcp.f32 %v5373_v6 }
 0x484   : > { %v7358_v32 = vpop.eup %7357  ;;  %5463 = vst.msk [vmem:[%s7591_s22 + $0x10] sm:$0xff] %vm553_vm1, %v5447_v7  ;;  %v5417_v10 = vmul.f32 %v7356_v30, %v8836_v38  ;;  %7375 = vrcp.f32 %v5376_v31 }
 0x485   : > { %v7360_v4 = vpop.eup %7359  ;;  %v5450_v13 = vadd.f32 %v5434_v27, %v5418_v8  ;;  %v5375_v46 = vadd.f32 1.0, %v7358_v32 }
 0x486   : > { %v7362_v59 = vpop.eup %7361  ;;  %v5449_v53 = vadd.f32 %v5433_v9, %v5417_v10  ;;  %v5378_v15 = vadd.f32 1.0, %v7360_v4 }
 0x487   : > { %v7364_v37 = vpop.eup %7363  ;;  %5466 = vst.msk [vmem:[%s7591_s22 + $0x28] sm:$0xff] %vm553_vm1, %v5450_v13  ;;  %v5420_v17 = vmul.f32 %v7362_v59, %v8843_v57  ;;  %7377 = vrcp.f32 %v5375_v46 }
 0x488   : > { %5465 = vst.msk [vmem:[%s7591_s22 + $0x20] sm:$0xff] %vm553_vm1, %v5449_v53  ;;  %7379 = vrcp.f32 %v5378_v15  ;;  %v5377_v38 = vadd.f32 1.0, %v7364_v37 }
 0x489   : > { %v7366_v19 = vpop.eup %7365  ;;  %v5452_v20 = vadd.f32 %v5436_v16, %v5420_v17 }
 0x48a   : > { %v7368_v24 = vpop.eup %7367  ;;  %v5419_v26 = vmul.f32 %v7366_v19, %v8846_v44  ;;  %7381 = vrcp.f32 %v5377_v38 }
 0x48b   : > { %v7370_v29 = vpop.eup %7369  ;;  %5468 = vst.msk [vmem:[%s7591_s22 + $0x38] sm:$0xff] %vm553_vm1, %v5452_v20  ;;  %v5422_v57 = vmul.f32 %v7368_v24, %v8853_v2 }
 0x48c   : > { %v7372_v62 = vpop.eup %7371  ;;  %v5451_v25 = vadd.f32 %v5435_v21, %v5419_v26  ;;  %v5380_v33 = vadd.f32 1.0, %v7370_v29 }
 0x48d   : > { %v7374_v28 = vpop.eup %7373  ;;  %v5454_v34 = vadd.f32 %v5438_v55, %v5422_v57  ;;  %v5379_v35 = vadd.f32 1.0, %v7372_v62 }
 0x48e   : > { %v7376_v44 = vpop.eup %7375  ;;  %5467 = vst.msk [vmem:[%s7591_s22 + $0x30] sm:$0xff] %vm553_vm1, %v5451_v25  ;;  %v5421_v39 = vmul.f32 %v7374_v28, %v8856_v58  ;;  %7383 = vrcp.f32 %v5380_v33 }
 0x48f   : > { %5470 = vst.msk [vmem:[%s7591_s22 + $0x48] sm:$0xff] %vm553_vm1, %v5454_v34  ;;  %v5424_v2 = vmul.f32 %v7376_v44, %v8863_v52  ;;  %7385 = vrcp.f32 %v5379_v35 }
 0x490   : > { %v5453_v42 = vadd.f32 %v5437_v0, %v5421_v39 }
 0x491   : > { %v7378_v43 = vpop.eup %7377  ;;  %v5456_v41 = vadd.f32 %v5440_v56, %v5424_v2 }
 0x492   : > { %v7380_v45 = vpop.eup %7379  ;;  %5469 = vst.msk [vmem:[%s7591_s22 + $0x40] sm:$0xff] %vm553_vm1, %v5453_v42  ;;  %v5423_v58 = vmul.f32 %v7378_v43, %v8866_v11 }
 0x493   : > { %5472 = vst.msk [vmem:[%s7591_s22 + $0x58] sm:$0xff] %vm553_vm1, %v5456_v41  ;;  %v5426_v52 = vmul.f32 %v7380_v45, %v8873_v22 }
 0x494   : > { %v7382_v5 = vpop.eup %7381  ;;  %v5455_v47 = vadd.f32 %v5439_v60, %v5423_v58 }
 0x495   : > { %v5458_v48 = vadd.f32 %v5442_v23, %v5426_v52  ;;  %v5425_v50 = vmul.f32 %v7382_v5, %v8876_v61 }
 0x496   : > { %5471 = vst.msk [vmem:[%s7591_s22 + $0x50] sm:$0xff] %vm553_vm1, %v5455_v47 }
 0x497   : > { %5474 = vst.msk [vmem:[%s7591_s22 + $0x68] sm:$0xff] %vm553_vm1, %v5458_v48  ;;  %v5457_v54 = vadd.f32 %v5441_v49, %v5425_v50 }
 0x498   : > { %v7384_v11 = vpop.eup %7383 }
 0x499   : > { %v7386_v63 = vpop.eup %7385  ;;  %5473 = vst.msk [vmem:[%s7591_s22 + $0x60] sm:$0xff] %vm553_vm1, %v5457_v54  ;;  %v5428_v22 = vmul.f32 %v7384_v11, %v8886_v40 }
 0x49a   : > { %v5427_v51 = vmul.f32 %v7386_v63, %v8890_v36 }
 0x49b   : > { %v5460_v12 = vadd.f32 %v5444_v18, %v5428_v22 }
 0x49c   : > { %v5459_v3 = vadd.f32 %v5443_v1, %v5427_v51 }
 0x49d   : > { %5476 = vst.msk [vmem:[%s7591_s22 + $0x78] sm:$0xff] %vm553_vm1, %v5460_v12 }
 0x49e   : > { %5475 = vst.msk [vmem:[%s7591_s22 + $0x70] sm:$0xff] %vm553_vm1, %v5459_v3 }
 0x49f PF: > { %s19_s13 = sadd.s32 1, %s7425_s13   ;;  %s8980_s20 = sld [smem:[#allocation4_spill]] }
 0x4a0   : > { %p16_p1 = scmp.ge.s32.totalorder %s19_s13, 6   ;;  %s8981_s30 = smov %s7417_s11 }
 0x4a1   : > { %s8982_s10 = smov %s7421_s12  ;;  %s8983_s11 = smov %s8986_s14 }
 0x4a2   :  { %18 = sbr.rel (!%p16_p1) target bundleno = 3 (0x3), region = 123 }
 0x4a5   : > { %s8984_s12 = smov %s8980_s20 }

</bundles_post_ra>
